<compile_context>
chip_gen: v7x
topology: tpu7x:2x2x1
jax: 0.10.0
libtpu: 0.0.40
codegen_flags: <defaults>
</compile_context>

<pallas_src>
import math
import functools

import jax
import jax.numpy as jnp
from jax.experimental import pallas as pl
from jax.experimental.pallas import tpu as pltpu  # noqa: F401  (TPU backend)

# Flip to True on v6e/v7x to feed the MXU bf16 operands (f32 accumulation and
# f32 element-wise math are kept either way; leave False on v5e / for exact f32).
USE_BF16_MATMUL = False


def _mm(a, b):
    if USE_BF16_MATMUL:
        a = a.astype(jnp.bfloat16)
        b = b.astype(jnp.bfloat16)
    return jnp.dot(a, b, preferred_element_type=jnp.float32)


def _layernorm(y, g, b, eps):
    mean = jnp.mean(y, axis=-1, keepdims=True)
    var = jnp.mean(jnp.square(y - mean), axis=-1, keepdims=True)
    return (y - mean) * jax.lax.rsqrt(var + eps) * g + b


# ---------------------------------------------------------------------------
# Pallas kernels (single block, everything resident in VMEM)
# ---------------------------------------------------------------------------

def fused_self_attn_kernel(xq_ref, xt_ref, wqk_ref, bqk_ref, wv_ref, bv_ref,
                           wo_ref, bo_ref, g_ref, beta_ref, o_ref,
                           *, B, L, H, hd, eps):
    """QK proj (from tgt+pos) + V proj (from tgt) + MHA + out_proj + residual + LN1."""
    D = H * hd
    scale = 1.0 / math.sqrt(hd)
    qk = _mm(xq_ref[...], wqk_ref[...]) + bqk_ref[...]   # [M, 2D]  (q | k)
    v = _mm(xt_ref[...], wv_ref[...]) + bv_ref[...]      # [M, D]

    # per-(batch, head) attention, statically unrolled (tiny 2-D dots — avoids
    # batched 4-D einsums / in-kernel transposes at these shapes)
    batch_outs = []
    for b in range(B):
        r0, r1 = b * L, (b + 1) * L
        head_outs = []
        for h in range(H):
            c0, c1 = h * hd, (h + 1) * hd
            qb = qk[r0:r1, c0:c1]                         # [L, hd]
            kb = qk[r0:r1, D + c0:D + c1]                 # [L, hd]
            vb = v[r0:r1, c0:c1]                          # [L, hd]
            s = jax.lax.dot_general(qb, kb, (((1,), (1,)), ((), ())),
                                    preferred_element_type=jnp.float32) * scale
            m = jnp.max(s, axis=-1, keepdims=True)
            e = jnp.exp(s - m)
            p = e / jnp.sum(e, axis=-1, keepdims=True)
            head_outs.append(jnp.dot(p, vb, preferred_element_type=jnp.float32))
        batch_outs.append(jnp.concatenate(head_outs, axis=-1))   # [L, D]
    attn = jnp.concatenate(batch_outs, axis=0)                   # [M, D]

    y = _mm(attn, wo_ref[...]) + bo_ref[...] + xt_ref[...]       # out_proj + residual
    o_ref[...] = _layernorm(y, g_ref[...], beta_ref[...], eps).astype(o_ref.dtype)


def deform_prep_kernel(q_ref, vin_ref, wf_ref, bf_ref, wv_ref, bv_ref,
                       off_ref, aw_ref, val_ref, *, H, LP):
    """Fused [sampling_offsets | attention_weights] projection + per-head group
    softmax over the last LP logits of each head, plus value_proj."""
    proj = _mm(q_ref[...], wf_ref[...]) + bf_ref[...]            # [Mq, 2*H*LP + H*LP]
    n_off = off_ref.shape[-1]
    off_ref[...] = proj[:, :n_off].astype(off_ref.dtype)

    logits = proj[:, n_off:]                                     # [Mq, H*LP]
    groups = []
    for h in range(H):
        g = logits[:, h * LP:(h + 1) * LP]
        m = jnp.max(g, axis=-1, keepdims=True)
        e = jnp.exp(g - m)
        groups.append(e / jnp.sum(e, axis=-1, keepdims=True))
    aw_ref[...] = jnp.concatenate(groups, axis=-1).astype(aw_ref.dtype)

    val_ref[...] = (_mm(vin_ref[...], wv_ref[...]) + bv_ref[...]).astype(val_ref.dtype)


def linear_residual_ln_kernel(x_ref, res_ref, w_ref, b_ref, g_ref, beta_ref, o_ref,
                              *, eps):
    y = _mm(x_ref[...], w_ref[...]) + b_ref[...] + res_ref[...]
    o_ref[...] = _layernorm(y, g_ref[...], beta_ref[...], eps).astype(o_ref.dtype)


def ffn_residual_ln_kernel(x_ref, w1_ref, b1_ref, w2_ref, b2_ref, g_ref, beta_ref,
                           o_ref, *, eps):
    x = x_ref[...]
    h = _mm(x, w1_ref[...]) + b1_ref[...]
    h = h * jax.nn.sigmoid(h)                                    # silu (dropout p=0)
    y = _mm(h, w2_ref[...]) + b2_ref[...] + x                    # linear2 + residual
    o_ref[...] = _layernorm(y, g_ref[...], beta_ref[...], eps).astype(o_ref.dtype)


# ---------------------------------------------------------------------------
# Pallas wrappers (whole-tensor VMEM blocks; tile over M for real DETR sizes)
# ---------------------------------------------------------------------------

def _spec(shape):
    n = len(shape)
    return pl.BlockSpec(shape, lambda i, _n=n: (0,) * _n)


def _full_call(kernel, out_shape, *inputs):
    single = isinstance(out_shape, jax.ShapeDtypeStruct)
    outs = (out_shape,) if single else tuple(out_shape)
    res = pl.pallas_call(
        kernel,
        grid=(1,),
        out_shape=outs,
        in_specs=[_spec(x.shape) for x in inputs],
        out_specs=tuple(_spec(o.shape) for o in outs),
    )(*inputs)
    return res[0] if single else res


def fused_self_attention_block(q_in, tgt, sa, norm_g, norm_b, n_head, eps=1e-5):
    B, L, D = tgt.shape
    M = B * L
    hd = D // n_head
    kern = functools.partial(fused_self_attn_kernel, B=B, L=L, H=n_head, hd=hd, eps=eps)
    out = _full_call(
        kern, jax.ShapeDtypeStruct((M, D), tgt.dtype),
        q_in.reshape(M, D), tgt.reshape(M, D),
        sa['w_qk'], sa['b_qk'].reshape(1, -1),
        sa['w_v'], sa['b_v'].reshape(1, -1),
        sa['w_out'], sa['b_out'].reshape(1, -1),
        norm_g.reshape(1, -1), norm_b.reshape(1, -1))
    return out.reshape(B, L, D)


def deform_prep(query, value_in, p, n_head, n_levels, n_points):
    B, Lq, D = query.shape
    Len_v = value_in.shape[1]
    Mq, Mv = B * Lq, B * Len_v
    total = n_head * n_levels * n_points
    kern = functools.partial(deform_prep_kernel, H=n_head, LP=n_levels * n_points)
    off, aw, val = _full_call(
        kern,
        (jax.ShapeDtypeStruct((Mq, total * 2), query.dtype),
         jax.ShapeDtypeStruct((Mq, total), query.dtype),
         jax.ShapeDtypeStruct((Mv, D), value_in.dtype)),
        query.reshape(Mq, D), value_in.reshape(Mv, D),
        p['front_w'], p['front_b'].reshape(1, -1),
        p['value_proj_w'], p['value_proj_b'].reshape(1, -1))
    sampling_offsets = off.reshape(B, Lq, n_head, n_levels, n_points, 2)
    attention_weights = aw.reshape(B, Lq, n_head, n_levels, n_points)
    value = val.reshape(B, Len_v, D)
    return sampling_offsets, attention_weights, value


def linear_residual_ln(x, res, w, b, g, beta, eps=1e-5):
    B, L, K = x.shape
    N = w.shape[1]
    M = B * L
    kern = functools.partial(linear_residual_ln_kernel, eps=eps)
    out = _full_call(
        kern, jax.ShapeDtypeStruct((M, N), x.dtype),
        x.reshape(M, K), res.reshape(M, N),
        w, b.reshape(1, N), g.reshape(1, N), beta.reshape(1, N))
    return out.reshape(B, L, N)


def ffn_residual_ln(x, w1, b1, w2, b2, g, beta, eps=1e-5):
    B, L, D = x.shape
    F = w1.shape[1]
    M = B * L
    kern = functools.partial(ffn_residual_ln_kernel, eps=eps)
    out = _full_call(
        kern, jax.ShapeDtypeStruct((M, D), x.dtype),
        x.reshape(M, D), w1, b1.reshape(1, F),
        w2, b2.reshape(1, D), g.reshape(1, D), beta.reshape(1, D))
    return out.reshape(B, L, D)


# ---------------------------------------------------------------------------
# Deformable attention core (bilinear, zeros padding, align_corners=False)
# TODO(synk): the bilinear grid-sample is a data-dependent, ragged-per-level gather
# with no clean single Pallas kernel; it is expressed here as one-hot matmuls in
# plain JAX (no gather/scatter HLOs), which XLA maps to MXU/VPU work.
# ---------------------------------------------------------------------------

def _bilinear_onehot(x, y, H, W):
    """x, y: [N, Q] pixel coords; returns bilinear weight matrix [N, Q, H*W]."""
    x0 = jnp.floor(x)
    y0 = jnp.floor(y)
    dx = x - x0
    dy = y - y0
    cols = jnp.arange(W, dtype=jnp.float32)
    rows = jnp.arange(H, dtype=jnp.float32)

    def corner(cx, cy, wgt):
        ohx = (cx[..., None] == cols).astype(jnp.float32)          # [N, Q, W]
        ohy = (cy[..., None] == rows).astype(jnp.float32)          # [N, Q, H]
        oh = ohy[..., :, None] * ohx[..., None, :]                 # [N, Q, H, W]
        return oh.reshape(wgt.shape + (H * W,)) * wgt[..., None]   # OOB -> all-zero row

    return (corner(x0, y0, (1.0 - dx) * (1.0 - dy))
            + corner(x0 + 1.0, y0, dx * (1.0 - dy))
            + corner(x0, y0 + 1.0, (1.0 - dx) * dy)
            + corner(x0 + 1.0, y0 + 1.0, dx * dy))


def deformable_attention_core(value, spatial_shapes, sampling_locations, attention_weights):
    # value: [bs, Len_v, n_head, c]
    bs, _, n_head, c = value.shape
    _, Lq, _, n_levels, n_points, _ = sampling_locations.shape
    N = bs * n_head
    offset = 0
    sampled = []
    for lvl, (h, w) in enumerate(spatial_shapes):
        hw = h * w
        v_l = value[:, offset:offset + hw]                              # [bs, hw, H, c]
        offset += hw
        v_l = jnp.transpose(v_l, (0, 2, 1, 3)).reshape(N, hw, c)        # [N, hw, c]
        loc = jnp.transpose(sampling_locations[:, :, :, lvl], (0, 2, 1, 3, 4))
        loc = loc.reshape(N, Lq * n_points, 2)
        x = loc[..., 0] * w - 0.5
        y = loc[..., 1] * h - 0.5
        wmat = _bilinear_onehot(x, y, h, w)                             # [N, Lq*P, hw]
        s = jnp.einsum('nqk,nkc->nqc', wmat, v_l,
                       preferred_element_type=jnp.float32)              # [N, Lq*P, c]
        sampled.append(s.reshape(N, Lq, n_points, c))
    stacked = jnp.stack(sampled, axis=2)                                # [N, Lq, L, P, c]
    attn = jnp.transpose(attention_weights, (0, 2, 1, 3, 4))
    attn = attn.reshape(N, Lq, n_levels, n_points, 1)
    out = (stacked * attn).sum(axis=(2, 3))                             # [N, Lq, c]
    out = out.reshape(bs, n_head, Lq, c)
    return jnp.transpose(out, (0, 2, 1, 3)).reshape(bs, Lq, n_head * c)


# ---------------------------------------------------------------------------
# TransformerDecoderLayer.forward
# ---------------------------------------------------------------------------

def transformer_decoder_layer_forward(params, tgt, reference_points, memory,
                                      memory_spatial_shapes, memory_level_start_index,
                                      attn_mask=None, memory_mask=None,
                                      query_pos_embed=None, *, n_head=8, n_levels=4,
                                      deform_levels=2, n_points=4):
    del memory_level_start_index, attn_mask  # unused (attn_mask=None path)
    start_idx = n_levels - deform_levels
    level_sizes = [h * w for h, w in memory_spatial_shapes]
    levels_idxs_start = sum(level_sizes[:start_idx])

    B, Lq, D = tgt.shape

    def with_pos(t):
        return t if query_pos_embed is None else t + query_pos_embed

    # --- self attention + residual + norm1 (one fused pallas_call) ---
    tgt = fused_self_attention_block(with_pos(tgt), tgt, params['self_attn'],
                                     params['norm1_g'], params['norm1_b'], n_head)

    # --- deformable cross attention ---
    p = params['cross_attn']
    value_in = memory[:, levels_idxs_start:]
    value_shapes = memory_spatial_shapes[start_idx:]
    Len_v = value_in.shape[1]
    head_dim = D // n_head

    sampling_offsets, attention_weights, value = deform_prep(
        with_pos(tgt), value_in, p, n_head, deform_levels, n_points)
    if memory_mask is not None:
        value = value * memory_mask.astype(value.dtype)[..., None]
    value = value.reshape(B, Len_v, n_head, head_dim)

    # reference_points.shape[-1] == 2 branch of the module
    offset_normalizer = jnp.asarray(value_shapes, dtype=jnp.float32)[:, ::-1]   # (W, H)
    offset_normalizer = offset_normalizer.reshape(1, 1, 1, deform_levels, 1, 2)
    sampling_locations = (reference_points.reshape(B, Lq, 1, 1, n_points, 2)
                          + sampling_offsets / offset_normalizer)

    deform_out = deformable_attention_core(value, value_shapes,
                                           sampling_locations, attention_weights)

    # output_proj + residual + norm2 (one fused pallas_call)
    tgt = linear_residual_ln(deform_out, tgt, p['output_proj_w'], p['output_proj_b'],
                             params['norm2_g'], params['norm2_b'])

    # FFN + residual + norm3 (one fused pallas_call)
    tgt = ffn_residual_ln(tgt, params['linear1_w'], params['linear1_b'],
                          params['linear2_w'], params['linear2_b'],
                          params['norm3_g'], params['norm3_b'])
    return tgt, sampling_locations, attention_weights


# ---------------------------------------------------------------------------
# Deterministic parameter init (weights stored pre-transposed / pre-concatenated)
# ---------------------------------------------------------------------------

def init_params(key, d_model, n_head, dim_feedforward, deform_levels, n_points):
    keys = jax.random.split(key, 8)
    D = d_model

    def xavier_t(k, fan_in, fan_out):
        # stored as [fan_in, fan_out] (i.e. torch weight already transposed)
        bound = math.sqrt(6.0 / (fan_in + fan_out))
        return jax.random.uniform(k, (fan_in, fan_out), jnp.float32, -bound, bound)

    total = n_head * deform_levels * n_points

    # MSDeformableAttention._reset_parameters : sampling_offsets bias = directional grid
    thetas = jnp.arange(n_head, dtype=jnp.float32) * (2.0 * math.pi / n_head)
    grid_init = jnp.stack([jnp.cos(thetas), jnp.sin(thetas)], -1)
    grid_init = grid_init / jnp.max(jnp.abs(grid_init), axis=-1, keepdims=True)
    grid_init = jnp.tile(grid_init.reshape(n_head, 1, 1, 2),
                         (1, deform_levels, n_points, 1))
    scaling = jnp.arange(1, n_points + 1, dtype=jnp.float32).reshape(1, 1, -1, 1)
    grid_init = grid_init * scaling

    in_proj = xavier_t(keys[0], D, 3 * D)                      # columns [q | k | v]
    front_w = jnp.concatenate(
        [jnp.zeros((D, total * 2), jnp.float32),               # sampling_offsets.weight = 0
         xavier_t(keys[2], D, total)], axis=1)                 # attention_weights.weight
    front_b = jnp.concatenate(
        [grid_init.reshape(-1), jnp.zeros((total,), jnp.float32)])

    return {
        'self_attn': {
            'w_qk': in_proj[:, :2 * D],
            'b_qk': jnp.zeros((2 * D,), jnp.float32),
            'w_v': in_proj[:, 2 * D:],
            'b_v': jnp.zeros((D,), jnp.float32),
            'w_out': xavier_t(keys[1], D, D),
            'b_out': jnp.zeros((D,), jnp.float32),
        },
        'norm1_g': jnp.ones((D,), jnp.float32),
        'norm1_b': jnp.zeros((D,), jnp.float32),
        'norm2_g': jnp.ones((D,), jnp.float32),
        'norm2_b': jnp.zeros((D,), jnp.float32),
        'norm3_g': jnp.ones((D,), jnp.float32),
        'norm3_b': jnp.zeros((D,), jnp.float32),
        'cross_attn': {
            'front_w': front_w,
            'front_b': front_b,
            'value_proj_w': xavier_t(keys[3], D, D),
            'value_proj_b': jnp.zeros((D,), jnp.float32),
            'output_proj_w': xavier_t(keys[4], D, D),
            'output_proj_b': jnp.zeros((D,), jnp.float32),
        },
        'linear1_w': xavier_t(keys[5], D, dim_feedforward),
        'linear1_b': jnp.zeros((dim_feedforward,), jnp.float32),
        'linear2_w': xavier_t(keys[6], dim_feedforward, D),
        'linear2_b': jnp.zeros((D,), jnp.float32),
    }


# ---------------------------------------------------------------------------

if __name__ == "__main__":
    d_model, n_head, dim_ff = 64, 8, 128
    n_levels, deform_levels, n_points = 4, 2, 4
    bs, Lq = 2, 8

    memory_spatial_shapes = [(8, 8), (4, 4), (4, 4), (2, 2)]
    level_sizes = [h * w for h, w in memory_spatial_shapes]
    Len_v = sum(level_sizes)
    memory_level_start_index = [0]
    for s in level_sizes[:-1]:
        memory_level_start_index.append(memory_level_start_index[-1] + s)

    key = jax.random.PRNGKey(0)
    k_p, k_tgt, k_mem, k_ref, k_pos = jax.random.split(key, 5)
    params = init_params(k_p, d_model, n_head, dim_ff, deform_levels, n_points)

    tgt = jax.random.normal(k_tgt, (bs, Lq, d_model), jnp.float32)
    memory = jax.random.normal(k_mem, (bs, Len_v, d_model), jnp.float32)
    # reference_points last dim == 2 branch: [bs, Lq, n_points, 2] in [0, 1]
    reference_points = jax.random.uniform(k_ref, (bs, Lq, n_points, 2), jnp.float32)
    query_pos = 0.1 * jax.random.normal(k_pos, (bs, Lq, d_model), jnp.float32)

    @jax.jit
    def run(params, tgt, reference_points, memory, query_pos):
        return transformer_decoder_layer_forward(
            params, tgt, reference_points, memory, memory_spatial_shapes,
            memory_level_start_index, attn_mask=None, memory_mask=None,
            query_pos_embed=query_pos, n_head=n_head, n_levels=n_levels,
            deform_levels=deform_levels, n_points=n_points)

    out, sampling_locations, attn_weights = run(
        params, tgt, reference_points, memory, query_pos)

    jax.block_until_ready((out, sampling_locations, attn_weights))
    assert out.shape == (bs, Lq, d_model)
    assert sampling_locations.shape == (bs, Lq, n_head, deform_levels, n_points, 2)
    assert attn_weights.shape == (bs, Lq, n_head, deform_levels, n_points)
    print("KERNEL_OK")
</pallas_src>

<mosaic_0001>
module attributes {stable_mosaic.version = 11 : i64} {
  func.func @fused_self_attn_kernel(%arg0: i32, %arg1: memref<16x64xf32, #tpu.memory_space<vmem>>, %arg2: memref<16x64xf32, #tpu.memory_space<vmem>>, %arg3: memref<64x128xf32, #tpu.memory_space<vmem>>, %arg4: memref<1x128xf32, #tpu.memory_space<vmem>>, %arg5: memref<64x64xf32, #tpu.memory_space<vmem>>, %arg6: memref<1x64xf32, #tpu.memory_space<vmem>>, %arg7: memref<64x64xf32, #tpu.memory_space<vmem>>, %arg8: memref<1x64xf32, #tpu.memory_space<vmem>>, %arg9: memref<1x64xf32, #tpu.memory_space<vmem>>, %arg10: memref<1x64xf32, #tpu.memory_space<vmem>>, %arg11: memref<16x64xf32, #tpu.memory_space<vmem>>) attributes {dimension_semantics = [#tpu.dimension_semantics<arbitrary>], iteration_bounds = array<i64: 1>, scalar_prefetch = 0 : i64, scratch_operands = 0 : i64, tpu.core_type = #tpu.core_type<tc>, window_params = [{pipeline_mode = #tpu.pipeline_mode<synchronous>, transform_indices = @transform_0, window_bounds = array<i64: 16, 64>}, {pipeline_mode = #tpu.pipeline_mode<synchronous>, transform_indices = @transform_1, window_bounds = array<i64: 16, 64>}, {pipeline_mode = #tpu.pipeline_mode<synchronous>, transform_indices = @transform_2, window_bounds = array<i64: 64, 128>}, {pipeline_mode = #tpu.pipeline_mode<synchronous>, transform_indices = @transform_3, window_bounds = array<i64: 1, 128>}, {pipeline_mode = #tpu.pipeline_mode<synchronous>, transform_indices = @transform_4, window_bounds = array<i64: 64, 64>}, {pipeline_mode = #tpu.pipeline_mode<synchronous>, transform_indices = @transform_5, window_bounds = array<i64: 1, 64>}, {pipeline_mode = #tpu.pipeline_mode<synchronous>, transform_indices = @transform_6, window_bounds = array<i64: 64, 64>}, {pipeline_mode = #tpu.pipeline_mode<synchronous>, transform_indices = @transform_7, window_bounds = array<i64: 1, 64>}, {pipeline_mode = #tpu.pipeline_mode<synchronous>, transform_indices = @transform_8, window_bounds = array<i64: 1, 64>}, {pipeline_mode = #tpu.pipeline_mode<synchronous>, transform_indices = @transform_9, window_bounds = array<i64: 1, 64>}, {pipeline_mode = #tpu.pipeline_mode<synchronous>, transform_indices = @transform_10, window_bounds = array<i64: 16, 64>}]} {
    %c0 = arith.constant 0 : index
    %c0_0 = arith.constant 0 : index
    %0 = vector.load %arg1[%c0, %c0_0] : memref<16x64xf32, #tpu.memory_space<vmem>>, vector<16x64xf32>
    %c0_1 = arith.constant 0 : index
    %c0_2 = arith.constant 0 : index
    %1 = vector.load %arg3[%c0_1, %c0_2] : memref<64x128xf32, #tpu.memory_space<vmem>>, vector<64x128xf32>
    %cst = arith.constant dense<0.000000e+00> : vector<16x128xf32>
    %2 = tpu.matmul %0, %1, %cst {dimension_numbers = #tpu.dot_dimension_numbers<[1], [0], [0], [1], [0, 0, 1, 1], [], []>} : vector<16x64xf32>, vector<64x128xf32>, vector<16x128xf32> -> vector<16x128xf32>
    %c0_3 = arith.constant 0 : index
    %c0_4 = arith.constant 0 : index
    %3 = vector.load %arg4[%c0_3, %c0_4] : memref<1x128xf32, #tpu.memory_space<vmem>>, vector<1x128xf32>
    %4 = vector.broadcast %3 : vector<1x128xf32> to vector<16x128xf32>
    %5 = arith.addf %2, %4 : vector<16x128xf32>
    %c0_5 = arith.constant 0 : index
    %c0_6 = arith.constant 0 : index
    %6 = vector.load %arg2[%c0_5, %c0_6] : memref<16x64xf32, #tpu.memory_space<vmem>>, vector<16x64xf32>
    %c0_7 = arith.constant 0 : index
    %c0_8 = arith.constant 0 : index
    %7 = vector.load %arg5[%c0_7, %c0_8] : memref<64x64xf32, #tpu.memory_space<vmem>>, vector<64x64xf32>
    %cst_9 = arith.constant dense<0.000000e+00> : vector<16x64xf32>
    %8 = tpu.matmul %6, %7, %cst_9 {dimension_numbers = #tpu.dot_dimension_numbers<[1], [0], [0], [1], [0, 0, 1, 1], [], []>} : vector<16x64xf32>, vector<64x64xf32>, vector<16x64xf32> -> vector<16x64xf32>
    %c0_10 = arith.constant 0 : index
    %c0_11 = arith.constant 0 : index
    %9 = vector.load %arg6[%c0_10, %c0_11] : memref<1x64xf32, #tpu.memory_space<vmem>>, vector<1x64xf32>
    %10 = vector.broadcast %9 : vector<1x64xf32> to vector<16x64xf32>
    %11 = arith.addf %8, %10 : vector<16x64xf32>
    %12 = vector.extract_strided_slice %5 {offsets = [0, 0], sizes = [8, 8], strides = [1, 1]} : vector<16x128xf32> to vector<8x8xf32>
    %13 = vector.extract_strided_slice %5 {offsets = [0, 64], sizes = [8, 8], strides = [1, 1]} : vector<16x128xf32> to vector<8x8xf32>
    %14 = vector.extract_strided_slice %11 {offsets = [0, 0], sizes = [8, 8], strides = [1, 1]} : vector<16x64xf32> to vector<8x8xf32>
    %cst_12 = arith.constant dense<0.000000e+00> : vector<8x8xf32>
    %15 = tpu.matmul %12, %13, %cst_12 {dimension_numbers = #tpu.dot_dimension_numbers<[1], [1], [0], [0], [0, 0, 1, 0], [], []>} : vector<8x8xf32>, vector<8x8xf32>, vector<8x8xf32> -> vector<8x8xf32>
    %cst_13 = arith.constant 0.353553385 : f32
    %16 = vector.broadcast %cst_13 : f32 to vector<8x8xf32>
    %17 = arith.mulf %15, %16 : vector<8x8xf32>
    %cst_14 = arith.constant dense<0xFF800000> : vector<8xf32>
    %18 = vector.multi_reduction <maximumf>, %17, %cst_14 [1] : vector<8x8xf32> to vector<8xf32>
    %19 = vector.shape_cast %18 : vector<8xf32> to vector<8x1xf32>
    %20 = vector.broadcast %19 : vector<8x1xf32> to vector<8x8xf32>
    %21 = arith.subf %17, %20 : vector<8x8xf32>
    %22 = math.exp %21 : vector<8x8xf32>
    %cst_15 = arith.constant dense<0.000000e+00> : vector<8xf32>
    %23 = vector.multi_reduction <add>, %22, %cst_15 [1] : vector<8x8xf32> to vector<8xf32>
    %24 = vector.shape_cast %23 : vector<8xf32> to vector<8x1xf32>
    %25 = vector.broadcast %24 : vector<8x1xf32> to vector<8x8xf32>
    %26 = arith.divf %22, %25 : vector<8x8xf32>
    %cst_16 = arith.constant dense<0.000000e+00> : vector<8x8xf32>
    %27 = tpu.matmul %26, %14, %cst_16 {dimension_numbers = #tpu.dot_dimension_numbers<[1], [0], [0], [1], [0, 0, 1, 1], [], []>} : vector<8x8xf32>, vector<8x8xf32>, vector<8x8xf32> -> vector<8x8xf32>
    %28 = vector.extract_strided_slice %5 {offsets = [0, 8], sizes = [8, 8], strides = [1, 1]} : vector<16x128xf32> to vector<8x8xf32>
    %29 = vector.extract_strided_slice %5 {offsets = [0, 72], sizes = [8, 8], strides = [1, 1]} : vector<16x128xf32> to vector<8x8xf32>
    %30 = vector.extract_strided_slice %11 {offsets = [0, 8], sizes = [8, 8], strides = [1, 1]} : vector<16x64xf32> to vector<8x8xf32>
    %cst_17 = arith.constant dense<0.000000e+00> : vector<8x8xf32>
    %31 = tpu.matmul %28, %29, %cst_17 {dimension_numbers = #tpu.dot_dimension_numbers<[1], [1], [0], [0], [0, 0, 1, 0], [], []>} : vector<8x8xf32>, vector<8x8xf32>, vector<8x8xf32> -> vector<8x8xf32>
    %cst_18 = arith.constant 0.353553385 : f32
    %32 = vector.broadcast %cst_18 : f32 to vector<8x8xf32>
    %33 = arith.mulf %31, %32 : vector<8x8xf32>
    %cst_19 = arith.constant dense<0xFF800000> : vector<8xf32>
    %34 = vector.multi_reduction <maximumf>, %33, %cst_19 [1] : vector<8x8xf32> to vector<8xf32>
    %35 = vector.shape_cast %34 : vector<8xf32> to vector<8x1xf32>
    %36 = vector.broadcast %35 : vector<8x1xf32> to vector<8x8xf32>
    %37 = arith.subf %33, %36 : vector<8x8xf32>
    %38 = math.exp %37 : vector<8x8xf32>
    %cst_20 = arith.constant dense<0.000000e+00> : vector<8xf32>
    %39 = vector.multi_reduction <add>, %38, %cst_20 [1] : vector<8x8xf32> to vector<8xf32>
    %40 = vector.shape_cast %39 : vector<8xf32> to vector<8x1xf32>
    %41 = vector.broadcast %40 : vector<8x1xf32> to vector<8x8xf32>
    %42 = arith.divf %38, %41 : vector<8x8xf32>
    %cst_21 = arith.constant dense<0.000000e+00> : vector<8x8xf32>
    %43 = tpu.matmul %42, %30, %cst_21 {dimension_numbers = #tpu.dot_dimension_numbers<[1], [0], [0], [1], [0, 0, 1, 1], [], []>} : vector<8x8xf32>, vector<8x8xf32>, vector<8x8xf32> -> vector<8x8xf32>
    %44 = vector.extract_strided_slice %5 {offsets = [0, 16], sizes = [8, 8], strides = [1, 1]} : vector<16x128xf32> to vector<8x8xf32>
    %45 = vector.extract_strided_slice %5 {offsets = [0, 80], sizes = [8, 8], strides = [1, 1]} : vector<16x128xf32> to vector<8x8xf32>
    %46 = vector.extract_strided_slice %11 {offsets = [0, 16], sizes = [8, 8], strides = [1, 1]} : vector<16x64xf32> to vector<8x8xf32>
    %cst_22 = arith.constant dense<0.000000e+00> : vector<8x8xf32>
    %47 = tpu.matmul %44, %45, %cst_22 {dimension_numbers = #tpu.dot_dimension_numbers<[1], [1], [0], [0], [0, 0, 1, 0], [], []>} : vector<8x8xf32>, vector<8x8xf32>, vector<8x8xf32> -> vector<8x8xf32>
    %cst_23 = arith.constant 0.353553385 : f32
    %48 = vector.broadcast %cst_23 : f32 to vector<8x8xf32>
    %49 = arith.mulf %47, %48 : vector<8x8xf32>
    %cst_24 = arith.constant dense<0xFF800000> : vector<8xf32>
    %50 = vector.multi_reduction <maximumf>, %49, %cst_24 [1] : vector<8x8xf32> to vector<8xf32>
    %51 = vector.shape_cast %50 : vector<8xf32> to vector<8x1xf32>
    %52 = vector.broadcast %51 : vector<8x1xf32> to vector<8x8xf32>
    %53 = arith.subf %49, %52 : vector<8x8xf32>
    %54 = math.exp %53 : vector<8x8xf32>
    %cst_25 = arith.constant dense<0.000000e+00> : vector<8xf32>
    %55 = vector.multi_reduction <add>, %54, %cst_25 [1] : vector<8x8xf32> to vector<8xf32>
    %56 = vector.shape_cast %55 : vector<8xf32> to vector<8x1xf32>
    %57 = vector.broadcast %56 : vector<8x1xf32> to vector<8x8xf32>
    %58 = arith.divf %54, %57 : vector<8x8xf32>
    %cst_26 = arith.constant dense<0.000000e+00> : vector<8x8xf32>
    %59 = tpu.matmul %58, %46, %cst_26 {dimension_numbers = #tpu.dot_dimension_numbers<[1], [0], [0], [1], [0, 0, 1, 1], [], []>} : vector<8x8xf32>, vector<8x8xf32>, vector<8x8xf32> -> vector<8x8xf32>
    %60 = vector.extract_strided_slice %5 {offsets = [0, 24], sizes = [8, 8], strides = [1, 1]} : vector<16x128xf32> to vector<8x8xf32>
    %61 = vector.extract_strided_slice %5 {offsets = [0, 88], sizes = [8, 8], strides = [1, 1]} : vector<16x128xf32> to vector<8x8xf32>
    %62 = vector.extract_strided_slice %11 {offsets = [0, 24], sizes = [8, 8], strides = [1, 1]} : vector<16x64xf32> to vector<8x8xf32>
    %cst_27 = arith.constant dense<0.000000e+00> : vector<8x8xf32>
    %63 = tpu.matmul %60, %61, %cst_27 {dimension_numbers = #tpu.dot_dimension_numbers<[1], [1], [0], [0], [0, 0, 1, 0], [], []>} : vector<8x8xf32>, vector<8x8xf32>, vector<8x8xf32> -> vector<8x8xf32>
    %cst_28 = arith.constant 0.353553385 : f32
    %64 = vector.broadcast %cst_28 : f32 to vector<8x8xf32>
    %65 = arith.mulf %63, %64 : vector<8x8xf32>
    %cst_29 = arith.constant dense<0xFF800000> : vector<8xf32>
    %66 = vector.multi_reduction <maximumf>, %65, %cst_29 [1] : vector<8x8xf32> to vector<8xf32>
    %67 = vector.shape_cast %66 : vector<8xf32> to vector<8x1xf32>
    %68 = vector.broadcast %67 : vector<8x1xf32> to vector<8x8xf32>
    %69 = arith.subf %65, %68 : vector<8x8xf32>
    %70 = math.exp %69 : vector<8x8xf32>
    %cst_30 = arith.constant dense<0.000000e+00> : vector<8xf32>
    %71 = vector.multi_reduction <add>, %70, %cst_30 [1] : vector<8x8xf32> to vector<8xf32>
    %72 = vector.shape_cast %71 : vector<8xf32> to vector<8x1xf32>
    %73 = vector.broadcast %72 : vector<8x1xf32> to vector<8x8xf32>
    %74 = arith.divf %70, %73 : vector<8x8xf32>
    %cst_31 = arith.constant dense<0.000000e+00> : vector<8x8xf32>
    %75 = tpu.matmul %74, %62, %cst_31 {dimension_numbers = #tpu.dot_dimension_numbers<[1], [0], [0], [1], [0, 0, 1, 1], [], []>} : vector<8x8xf32>, vector<8x8xf32>, vector<8x8xf32> -> vector<8x8xf32>
    %76 = vector.extract_strided_slice %5 {offsets = [0, 32], sizes = [8, 8], strides = [1, 1]} : vector<16x128xf32> to vector<8x8xf32>
    %77 = vector.extract_strided_slice %5 {offsets = [0, 96], sizes = [8, 8], strides = [1, 1]} : vector<16x128xf32> to vector<8x8xf32>
    %78 = vector.extract_strided_slice %11 {offsets = [0, 32], sizes = [8, 8], strides = [1, 1]} : vector<16x64xf32> to vector<8x8xf32>
    %cst_32 = arith.constant dense<0.000000e+00> : vector<8x8xf32>
    %79 = tpu.matmul %76, %77, %cst_32 {dimension_numbers = #tpu.dot_dimension_numbers<[1], [1], [0], [0], [0, 0, 1, 0], [], []>} : vector<8x8xf32>, vector<8x8xf32>, vector<8x8xf32> -> vector<8x8xf32>
    %cst_33 = arith.constant 0.353553385 : f32
    %80 = vector.broadcast %cst_33 : f32 to vector<8x8xf32>
    %81 = arith.mulf %79, %80 : vector<8x8xf32>
    %cst_34 = arith.constant dense<0xFF800000> : vector<8xf32>
    %82 = vector.multi_reduction <maximumf>, %81, %cst_34 [1] : vector<8x8xf32> to vector<8xf32>
    %83 = vector.shape_cast %82 : vector<8xf32> to vector<8x1xf32>
    %84 = vector.broadcast %83 : vector<8x1xf32> to vector<8x8xf32>
    %85 = arith.subf %81, %84 : vector<8x8xf32>
    %86 = math.exp %85 : vector<8x8xf32>
    %cst_35 = arith.constant dense<0.000000e+00> : vector<8xf32>
    %87 = vector.multi_reduction <add>, %86, %cst_35 [1] : vector<8x8xf32> to vector<8xf32>
    %88 = vector.shape_cast %87 : vector<8xf32> to vector<8x1xf32>
    %89 = vector.broadcast %88 : vector<8x1xf32> to vector<8x8xf32>
    %90 = arith.divf %86, %89 : vector<8x8xf32>
    %cst_36 = arith.constant dense<0.000000e+00> : vector<8x8xf32>
    %91 = tpu.matmul %90, %78, %cst_36 {dimension_numbers = #tpu.dot_dimension_numbers<[1], [0], [0], [1], [0, 0, 1, 1], [], []>} : vector<8x8xf32>, vector<8x8xf32>, vector<8x8xf32> -> vector<8x8xf32>
    %92 = vector.extract_strided_slice %5 {offsets = [0, 40], sizes = [8, 8], strides = [1, 1]} : vector<16x128xf32> to vector<8x8xf32>
    %93 = vector.extract_strided_slice %5 {offsets = [0, 104], sizes = [8, 8], strides = [1, 1]} : vector<16x128xf32> to vector<8x8xf32>
    %94 = vector.extract_strided_slice %11 {offsets = [0, 40], sizes = [8, 8], strides = [1, 1]} : vector<16x64xf32> to vector<8x8xf32>
    %cst_37 = arith.constant dense<0.000000e+00> : vector<8x8xf32>
    %95 = tpu.matmul %92, %93, %cst_37 {dimension_numbers = #tpu.dot_dimension_numbers<[1], [1], [0], [0], [0, 0, 1, 0], [], []>} : vector<8x8xf32>, vector<8x8xf32>, vector<8x8xf32> -> vector<8x8xf32>
    %cst_38 = arith.constant 0.353553385 : f32
    %96 = vector.broadcast %cst_38 : f32 to vector<8x8xf32>
    %97 = arith.mulf %95, %96 : vector<8x8xf32>
    %cst_39 = arith.constant dense<0xFF800000> : vector<8xf32>
    %98 = vector.multi_reduction <maximumf>, %97, %cst_39 [1] : vector<8x8xf32> to vector<8xf32>
    %99 = vector.shape_cast %98 : vector<8xf32> to vector<8x1xf32>
    %100 = vector.broadcast %99 : vector<8x1xf32> to vector<8x8xf32>
    %101 = arith.subf %97, %100 : vector<8x8xf32>
    %102 = math.exp %101 : vector<8x8xf32>
    %cst_40 = arith.constant dense<0.000000e+00> : vector<8xf32>
    %103 = vector.multi_reduction <add>, %102, %cst_40 [1] : vector<8x8xf32> to vector<8xf32>
    %104 = vector.shape_cast %103 : vector<8xf32> to vector<8x1xf32>
    %105 = vector.broadcast %104 : vector<8x1xf32> to vector<8x8xf32>
    %106 = arith.divf %102, %105 : vector<8x8xf32>
    %cst_41 = arith.constant dense<0.000000e+00> : vector<8x8xf32>
    %107 = tpu.matmul %106, %94, %cst_41 {dimension_numbers = #tpu.dot_dimension_numbers<[1], [0], [0], [1], [0, 0, 1, 1], [], []>} : vector<8x8xf32>, vector<8x8xf32>, vector<8x8xf32> -> vector<8x8xf32>
    %108 = vector.extract_strided_slice %5 {offsets = [0, 48], sizes = [8, 8], strides = [1, 1]} : vector<16x128xf32> to vector<8x8xf32>
    %109 = vector.extract_strided_slice %5 {offsets = [0, 112], sizes = [8, 8], strides = [1, 1]} : vector<16x128xf32> to vector<8x8xf32>
    %110 = vector.extract_strided_slice %11 {offsets = [0, 48], sizes = [8, 8], strides = [1, 1]} : vector<16x64xf32> to vector<8x8xf32>
    %cst_42 = arith.constant dense<0.000000e+00> : vector<8x8xf32>
    %111 = tpu.matmul %108, %109, %cst_42 {dimension_numbers = #tpu.dot_dimension_numbers<[1], [1], [0], [0], [0, 0, 1, 0], [], []>} : vector<8x8xf32>, vector<8x8xf32>, vector<8x8xf32> -> vector<8x8xf32>
    %cst_43 = arith.constant 0.353553385 : f32
    %112 = vector.broadcast %cst_43 : f32 to vector<8x8xf32>
    %113 = arith.mulf %111, %112 : vector<8x8xf32>
    %cst_44 = arith.constant dense<0xFF800000> : vector<8xf32>
    %114 = vector.multi_reduction <maximumf>, %113, %cst_44 [1] : vector<8x8xf32> to vector<8xf32>
    %115 = vector.shape_cast %114 : vector<8xf32> to vector<8x1xf32>
    %116 = vector.broadcast %115 : vector<8x1xf32> to vector<8x8xf32>
    %117 = arith.subf %113, %116 : vector<8x8xf32>
    %118 = math.exp %117 : vector<8x8xf32>
    %cst_45 = arith.constant dense<0.000000e+00> : vector<8xf32>
    %119 = vector.multi_reduction <add>, %118, %cst_45 [1] : vector<8x8xf32> to vector<8xf32>
    %120 = vector.shape_cast %119 : vector<8xf32> to vector<8x1xf32>
    %121 = vector.broadcast %120 : vector<8x1xf32> to vector<8x8xf32>
    %122 = arith.divf %118, %121 : vector<8x8xf32>
    %cst_46 = arith.constant dense<0.000000e+00> : vector<8x8xf32>
    %123 = tpu.matmul %122, %110, %cst_46 {dimension_numbers = #tpu.dot_dimension_numbers<[1], [0], [0], [1], [0, 0, 1, 1], [], []>} : vector<8x8xf32>, vector<8x8xf32>, vector<8x8xf32> -> vector<8x8xf32>
    %124 = vector.extract_strided_slice %5 {offsets = [0, 56], sizes = [8, 8], strides = [1, 1]} : vector<16x128xf32> to vector<8x8xf32>
    %125 = vector.extract_strided_slice %5 {offsets = [0, 120], sizes = [8, 8], strides = [1, 1]} : vector<16x128xf32> to vector<8x8xf32>
    %126 = vector.extract_strided_slice %11 {offsets = [0, 56], sizes = [8, 8], strides = [1, 1]} : vector<16x64xf32> to vector<8x8xf32>
    %cst_47 = arith.constant dense<0.000000e+00> : vector<8x8xf32>
    %127 = tpu.matmul %124, %125, %cst_47 {dimension_numbers = #tpu.dot_dimension_numbers<[1], [1], [0], [0], [0, 0, 1, 0], [], []>} : vector<8x8xf32>, vector<8x8xf32>, vector<8x8xf32> -> vector<8x8xf32>
    %cst_48 = arith.constant 0.353553385 : f32
    %128 = vector.broadcast %cst_48 : f32 to vector<8x8xf32>
    %129 = arith.mulf %127, %128 : vector<8x8xf32>
    %cst_49 = arith.constant dense<0xFF800000> : vector<8xf32>
    %130 = vector.multi_reduction <maximumf>, %129, %cst_49 [1] : vector<8x8xf32> to vector<8xf32>
    %131 = vector.shape_cast %130 : vector<8xf32> to vector<8x1xf32>
    %132 = vector.broadcast %131 : vector<8x1xf32> to vector<8x8xf32>
    %133 = arith.subf %129, %132 : vector<8x8xf32>
    %134 = math.exp %133 : vector<8x8xf32>
    %cst_50 = arith.constant dense<0.000000e+00> : vector<8xf32>
    %135 = vector.multi_reduction <add>, %134, %cst_50 [1] : vector<8x8xf32> to vector<8xf32>
    %136 = vector.shape_cast %135 : vector<8xf32> to vector<8x1xf32>
    %137 = vector.broadcast %136 : vector<8x1xf32> to vector<8x8xf32>
    %138 = arith.divf %134, %137 : vector<8x8xf32>
    %cst_51 = arith.constant dense<0.000000e+00> : vector<8x8xf32>
    %139 = tpu.matmul %138, %126, %cst_51 {dimension_numbers = #tpu.dot_dimension_numbers<[1], [0], [0], [1], [0, 0, 1, 1], [], []>} : vector<8x8xf32>, vector<8x8xf32>, vector<8x8xf32> -> vector<8x8xf32>
    %140 = tpu.concatenate %27, %43, %59, %75, %91, %107, %123, %139 in 1 : vector<8x8xf32>, vector<8x8xf32>, vector<8x8xf32>, vector<8x8xf32>, vector<8x8xf32>, vector<8x8xf32>, vector<8x8xf32>, vector<8x8xf32> -> vector<8x64xf32>
    %141 = vector.extract_strided_slice %5 {offsets = [8, 0], sizes = [8, 8], strides = [1, 1]} : vector<16x128xf32> to vector<8x8xf32>
    %142 = vector.extract_strided_slice %5 {offsets = [8, 64], sizes = [8, 8], strides = [1, 1]} : vector<16x128xf32> to vector<8x8xf32>
    %143 = vector.extract_strided_slice %11 {offsets = [8, 0], sizes = [8, 8], strides = [1, 1]} : vector<16x64xf32> to vector<8x8xf32>
    %cst_52 = arith.constant dense<0.000000e+00> : vector<8x8xf32>
    %144 = tpu.matmul %141, %142, %cst_52 {dimension_numbers = #tpu.dot_dimension_numbers<[1], [1], [0], [0], [0, 0, 1, 0], [], []>} : vector<8x8xf32>, vector<8x8xf32>, vector<8x8xf32> -> vector<8x8xf32>
    %cst_53 = arith.constant 0.353553385 : f32
    %145 = vector.broadcast %cst_53 : f32 to vector<8x8xf32>
    %146 = arith.mulf %144, %145 : vector<8x8xf32>
    %cst_54 = arith.constant dense<0xFF800000> : vector<8xf32>
    %147 = vector.multi_reduction <maximumf>, %146, %cst_54 [1] : vector<8x8xf32> to vector<8xf32>
    %148 = vector.shape_cast %147 : vector<8xf32> to vector<8x1xf32>
    %149 = vector.broadcast %148 : vector<8x1xf32> to vector<8x8xf32>
    %150 = arith.subf %146, %149 : vector<8x8xf32>
    %151 = math.exp %150 : vector<8x8xf32>
    %cst_55 = arith.constant dense<0.000000e+00> : vector<8xf32>
    %152 = vector.multi_reduction <add>, %151, %cst_55 [1] : vector<8x8xf32> to vector<8xf32>
    %153 = vector.shape_cast %152 : vector<8xf32> to vector<8x1xf32>
    %154 = vector.broadcast %153 : vector<8x1xf32> to vector<8x8xf32>
    %155 = arith.divf %151, %154 : vector<8x8xf32>
    %cst_56 = arith.constant dense<0.000000e+00> : vector<8x8xf32>
    %156 = tpu.matmul %155, %143, %cst_56 {dimension_numbers = #tpu.dot_dimension_numbers<[1], [0], [0], [1], [0, 0, 1, 1], [], []>} : vector<8x8xf32>, vector<8x8xf32>, vector<8x8xf32> -> vector<8x8xf32>
    %157 = vector.extract_strided_slice %5 {offsets = [8, 8], sizes = [8, 8], strides = [1, 1]} : vector<16x128xf32> to vector<8x8xf32>
    %158 = vector.extract_strided_slice %5 {offsets = [8, 72], sizes = [8, 8], strides = [1, 1]} : vector<16x128xf32> to vector<8x8xf32>
    %159 = vector.extract_strided_slice %11 {offsets = [8, 8], sizes = [8, 8], strides = [1, 1]} : vector<16x64xf32> to vector<8x8xf32>
    %cst_57 = arith.constant dense<0.000000e+00> : vector<8x8xf32>
    %160 = tpu.matmul %157, %158, %cst_57 {dimension_numbers = #tpu.dot_dimension_numbers<[1], [1], [0], [0], [0, 0, 1, 0], [], []>} : vector<8x8xf32>, vector<8x8xf32>, vector<8x8xf32> -> vector<8x8xf32>
    %cst_58 = arith.constant 0.353553385 : f32
    %161 = vector.broadcast %cst_58 : f32 to vector<8x8xf32>
    %162 = arith.mulf %160, %161 : vector<8x8xf32>
    %cst_59 = arith.constant dense<0xFF800000> : vector<8xf32>
    %163 = vector.multi_reduction <maximumf>, %162, %cst_59 [1] : vector<8x8xf32> to vector<8xf32>
    %164 = vector.shape_cast %163 : vector<8xf32> to vector<8x1xf32>
    %165 = vector.broadcast %164 : vector<8x1xf32> to vector<8x8xf32>
    %166 = arith.subf %162, %165 : vector<8x8xf32>
    %167 = math.exp %166 : vector<8x8xf32>
    %cst_60 = arith.constant dense<0.000000e+00> : vector<8xf32>
    %168 = vector.multi_reduction <add>, %167, %cst_60 [1] : vector<8x8xf32> to vector<8xf32>
    %169 = vector.shape_cast %168 : vector<8xf32> to vector<8x1xf32>
    %170 = vector.broadcast %169 : vector<8x1xf32> to vector<8x8xf32>
    %171 = arith.divf %167, %170 : vector<8x8xf32>
    %cst_61 = arith.constant dense<0.000000e+00> : vector<8x8xf32>
    %172 = tpu.matmul %171, %159, %cst_61 {dimension_numbers = #tpu.dot_dimension_numbers<[1], [0], [0], [1], [0, 0, 1, 1], [], []>} : vector<8x8xf32>, vector<8x8xf32>, vector<8x8xf32> -> vector<8x8xf32>
    %173 = vector.extract_strided_slice %5 {offsets = [8, 16], sizes = [8, 8], strides = [1, 1]} : vector<16x128xf32> to vector<8x8xf32>
    %174 = vector.extract_strided_slice %5 {offsets = [8, 80], sizes = [8, 8], strides = [1, 1]} : vector<16x128xf32> to vector<8x8xf32>
    %175 = vector.extract_strided_slice %11 {offsets = [8, 16], sizes = [8, 8], strides = [1, 1]} : vector<16x64xf32> to vector<8x8xf32>
    %cst_62 = arith.constant dense<0.000000e+00> : vector<8x8xf32>
    %176 = tpu.matmul %173, %174, %cst_62 {dimension_numbers = #tpu.dot_dimension_numbers<[1], [1], [0], [0], [0, 0, 1, 0], [], []>} : vector<8x8xf32>, vector<8x8xf32>, vector<8x8xf32> -> vector<8x8xf32>
    %cst_63 = arith.constant 0.353553385 : f32
    %177 = vector.broadcast %cst_63 : f32 to vector<8x8xf32>
    %178 = arith.mulf %176, %177 : vector<8x8xf32>
    %cst_64 = arith.constant dense<0xFF800000> : vector<8xf32>
    %179 = vector.multi_reduction <maximumf>, %178, %cst_64 [1] : vector<8x8xf32> to vector<8xf32>
    %180 = vector.shape_cast %179 : vector<8xf32> to vector<8x1xf32>
    %181 = vector.broadcast %180 : vector<8x1xf32> to vector<8x8xf32>
    %182 = arith.subf %178, %181 : vector<8x8xf32>
    %183 = math.exp %182 : vector<8x8xf32>
    %cst_65 = arith.constant dense<0.000000e+00> : vector<8xf32>
    %184 = vector.multi_reduction <add>, %183, %cst_65 [1] : vector<8x8xf32> to vector<8xf32>
    %185 = vector.shape_cast %184 : vector<8xf32> to vector<8x1xf32>
    %186 = vector.broadcast %185 : vector<8x1xf32> to vector<8x8xf32>
    %187 = arith.divf %183, %186 : vector<8x8xf32>
    %cst_66 = arith.constant dense<0.000000e+00> : vector<8x8xf32>
    %188 = tpu.matmul %187, %175, %cst_66 {dimension_numbers = #tpu.dot_dimension_numbers<[1], [0], [0], [1], [0, 0, 1, 1], [], []>} : vector<8x8xf32>, vector<8x8xf32>, vector<8x8xf32> -> vector<8x8xf32>
    %189 = vector.extract_strided_slice %5 {offsets = [8, 24], sizes = [8, 8], strides = [1, 1]} : vector<16x128xf32> to vector<8x8xf32>
    %190 = vector.extract_strided_slice %5 {offsets = [8, 88], sizes = [8, 8], strides = [1, 1]} : vector<16x128xf32> to vector<8x8xf32>
    %191 = vector.extract_strided_slice %11 {offsets = [8, 24], sizes = [8, 8], strides = [1, 1]} : vector<16x64xf32> to vector<8x8xf32>
    %cst_67 = arith.constant dense<0.000000e+00> : vector<8x8xf32>
    %192 = tpu.matmul %189, %190, %cst_67 {dimension_numbers = #tpu.dot_dimension_numbers<[1], [1], [0], [0], [0, 0, 1, 0], [], []>} : vector<8x8xf32>, vector<8x8xf32>, vector<8x8xf32> -> vector<8x8xf32>
    %cst_68 = arith.constant 0.353553385 : f32
    %193 = vector.broadcast %cst_68 : f32 to vector<8x8xf32>
    %194 = arith.mulf %192, %193 : vector<8x8xf32>
    %cst_69 = arith.constant dense<0xFF800000> : vector<8xf32>
    %195 = vector.multi_reduction <maximumf>, %194, %cst_69 [1] : vector<8x8xf32> to vector<8xf32>
    %196 = vector.shape_cast %195 : vector<8xf32> to vector<8x1xf32>
    %197 = vector.broadcast %196 : vector<8x1xf32> to vector<8x8xf32>
    %198 = arith.subf %194, %197 : vector<8x8xf32>
    %199 = math.exp %198 : vector<8x8xf32>
    %cst_70 = arith.constant dense<0.000000e+00> : vector<8xf32>
    %200 = vector.multi_reduction <add>, %199, %cst_70 [1] : vector<8x8xf32> to vector<8xf32>
    %201 = vector.shape_cast %200 : vector<8xf32> to vector<8x1xf32>
    %202 = vector.broadcast %201 : vector<8x1xf32> to vector<8x8xf32>
    %203 = arith.divf %199, %202 : vector<8x8xf32>
    %cst_71 = arith.constant dense<0.000000e+00> : vector<8x8xf32>
    %204 = tpu.matmul %203, %191, %cst_71 {dimension_numbers = #tpu.dot_dimension_numbers<[1], [0], [0], [1], [0, 0, 1, 1], [], []>} : vector<8x8xf32>, vector<8x8xf32>, vector<8x8xf32> -> vector<8x8xf32>
    %205 = vector.extract_strided_slice %5 {offsets = [8, 32], sizes = [8, 8], strides = [1, 1]} : vector<16x128xf32> to vector<8x8xf32>
    %206 = vector.extract_strided_slice %5 {offsets = [8, 96], sizes = [8, 8], strides = [1, 1]} : vector<16x128xf32> to vector<8x8xf32>
    %207 = vector.extract_strided_slice %11 {offsets = [8, 32], sizes = [8, 8], strides = [1, 1]} : vector<16x64xf32> to vector<8x8xf32>
    %cst_72 = arith.constant dense<0.000000e+00> : vector<8x8xf32>
    %208 = tpu.matmul %205, %206, %cst_72 {dimension_numbers = #tpu.dot_dimension_numbers<[1], [1], [0], [0], [0, 0, 1, 0], [], []>} : vector<8x8xf32>, vector<8x8xf32>, vector<8x8xf32> -> vector<8x8xf32>
    %cst_73 = arith.constant 0.353553385 : f32
    %209 = vector.broadcast %cst_73 : f32 to vector<8x8xf32>
    %210 = arith.mulf %208, %209 : vector<8x8xf32>
    %cst_74 = arith.constant dense<0xFF800000> : vector<8xf32>
    %211 = vector.multi_reduction <maximumf>, %210, %cst_74 [1] : vector<8x8xf32> to vector<8xf32>
    %212 = vector.shape_cast %211 : vector<8xf32> to vector<8x1xf32>
    %213 = vector.broadcast %212 : vector<8x1xf32> to vector<8x8xf32>
    %214 = arith.subf %210, %213 : vector<8x8xf32>
    %215 = math.exp %214 : vector<8x8xf32>
    %cst_75 = arith.constant dense<0.000000e+00> : vector<8xf32>
    %216 = vector.multi_reduction <add>, %215, %cst_75 [1] : vector<8x8xf32> to vector<8xf32>
    %217 = vector.shape_cast %216 : vector<8xf32> to vector<8x1xf32>
    %218 = vector.broadcast %217 : vector<8x1xf32> to vector<8x8xf32>
    %219 = arith.divf %215, %218 : vector<8x8xf32>
    %cst_76 = arith.constant dense<0.000000e+00> : vector<8x8xf32>
    %220 = tpu.matmul %219, %207, %cst_76 {dimension_numbers = #tpu.dot_dimension_numbers<[1], [0], [0], [1], [0, 0, 1, 1], [], []>} : vector<8x8xf32>, vector<8x8xf32>, vector<8x8xf32> -> vector<8x8xf32>
    %221 = vector.extract_strided_slice %5 {offsets = [8, 40], sizes = [8, 8], strides = [1, 1]} : vector<16x128xf32> to vector<8x8xf32>
    %222 = vector.extract_strided_slice %5 {offsets = [8, 104], sizes = [8, 8], strides = [1, 1]} : vector<16x128xf32> to vector<8x8xf32>
    %223 = vector.extract_strided_slice %11 {offsets = [8, 40], sizes = [8, 8], strides = [1, 1]} : vector<16x64xf32> to vector<8x8xf32>
    %cst_77 = arith.constant dense<0.000000e+00> : vector<8x8xf32>
    %224 = tpu.matmul %221, %222, %cst_77 {dimension_numbers = #tpu.dot_dimension_numbers<[1], [1], [0], [0], [0, 0, 1, 0], [], []>} : vector<8x8xf32>, vector<8x8xf32>, vector<8x8xf32> -> vector<8x8xf32>
    %cst_78 = arith.constant 0.353553385 : f32
    %225 = vector.broadcast %cst_78 : f32 to vector<8x8xf32>
    %226 = arith.mulf %224, %225 : vector<8x8xf32>
    %cst_79 = arith.constant dense<0xFF800000> : vector<8xf32>
    %227 = vector.multi_reduction <maximumf>, %226, %cst_79 [1] : vector<8x8xf32> to vector<8xf32>
    %228 = vector.shape_cast %227 : vector<8xf32> to vector<8x1xf32>
    %229 = vector.broadcast %228 : vector<8x1xf32> to vector<8x8xf32>
    %230 = arith.subf %226, %229 : vector<8x8xf32>
    %231 = math.exp %230 : vector<8x8xf32>
    %cst_80 = arith.constant dense<0.000000e+00> : vector<8xf32>
    %232 = vector.multi_reduction <add>, %231, %cst_80 [1] : vector<8x8xf32> to vector<8xf32>
    %233 = vector.shape_cast %232 : vector<8xf32> to vector<8x1xf32>
    %234 = vector.broadcast %233 : vector<8x1xf32> to vector<8x8xf32>
    %235 = arith.divf %231, %234 : vector<8x8xf32>
    %cst_81 = arith.constant dense<0.000000e+00> : vector<8x8xf32>
    %236 = tpu.matmul %235, %223, %cst_81 {dimension_numbers = #tpu.dot_dimension_numbers<[1], [0], [0], [1], [0, 0, 1, 1], [], []>} : vector<8x8xf32>, vector<8x8xf32>, vector<8x8xf32> -> vector<8x8xf32>
    %237 = vector.extract_strided_slice %5 {offsets = [8, 48], sizes = [8, 8], strides = [1, 1]} : vector<16x128xf32> to vector<8x8xf32>
    %238 = vector.extract_strided_slice %5 {offsets = [8, 112], sizes = [8, 8], strides = [1, 1]} : vector<16x128xf32> to vector<8x8xf32>
    %239 = vector.extract_strided_slice %11 {offsets = [8, 48], sizes = [8, 8], strides = [1, 1]} : vector<16x64xf32> to vector<8x8xf32>
    %cst_82 = arith.constant dense<0.000000e+00> : vector<8x8xf32>
    %240 = tpu.matmul %237, %238, %cst_82 {dimension_numbers = #tpu.dot_dimension_numbers<[1], [1], [0], [0], [0, 0, 1, 0], [], []>} : vector<8x8xf32>, vector<8x8xf32>, vector<8x8xf32> -> vector<8x8xf32>
    %cst_83 = arith.constant 0.353553385 : f32
    %241 = vector.broadcast %cst_83 : f32 to vector<8x8xf32>
    %242 = arith.mulf %240, %241 : vector<8x8xf32>
    %cst_84 = arith.constant dense<0xFF800000> : vector<8xf32>
    %243 = vector.multi_reduction <maximumf>, %242, %cst_84 [1] : vector<8x8xf32> to vector<8xf32>
    %244 = vector.shape_cast %243 : vector<8xf32> to vector<8x1xf32>
    %245 = vector.broadcast %244 : vector<8x1xf32> to vector<8x8xf32>
    %246 = arith.subf %242, %245 : vector<8x8xf32>
    %247 = math.exp %246 : vector<8x8xf32>
    %cst_85 = arith.constant dense<0.000000e+00> : vector<8xf32>
    %248 = vector.multi_reduction <add>, %247, %cst_85 [1] : vector<8x8xf32> to vector<8xf32>
    %249 = vector.shape_cast %248 : vector<8xf32> to vector<8x1xf32>
    %250 = vector.broadcast %249 : vector<8x1xf32> to vector<8x8xf32>
    %251 = arith.divf %247, %250 : vector<8x8xf32>
    %cst_86 = arith.constant dense<0.000000e+00> : vector<8x8xf32>
    %252 = tpu.matmul %251, %239, %cst_86 {dimension_numbers = #tpu.dot_dimension_numbers<[1], [0], [0], [1], [0, 0, 1, 1], [], []>} : vector<8x8xf32>, vector<8x8xf32>, vector<8x8xf32> -> vector<8x8xf32>
    %253 = vector.extract_strided_slice %5 {offsets = [8, 56], sizes = [8, 8], strides = [1, 1]} : vector<16x128xf32> to vector<8x8xf32>
    %254 = vector.extract_strided_slice %5 {offsets = [8, 120], sizes = [8, 8], strides = [1, 1]} : vector<16x128xf32> to vector<8x8xf32>
    %255 = vector.extract_strided_slice %11 {offsets = [8, 56], sizes = [8, 8], strides = [1, 1]} : vector<16x64xf32> to vector<8x8xf32>
    %cst_87 = arith.constant dense<0.000000e+00> : vector<8x8xf32>
    %256 = tpu.matmul %253, %254, %cst_87 {dimension_numbers = #tpu.dot_dimension_numbers<[1], [1], [0], [0], [0, 0, 1, 0], [], []>} : vector<8x8xf32>, vector<8x8xf32>, vector<8x8xf32> -> vector<8x8xf32>
    %cst_88 = arith.constant 0.353553385 : f32
    %257 = vector.broadcast %cst_88 : f32 to vector<8x8xf32>
    %258 = arith.mulf %256, %257 : vector<8x8xf32>
    %cst_89 = arith.constant dense<0xFF800000> : vector<8xf32>
    %259 = vector.multi_reduction <maximumf>, %258, %cst_89 [1] : vector<8x8xf32> to vector<8xf32>
    %260 = vector.shape_cast %259 : vector<8xf32> to vector<8x1xf32>
    %261 = vector.broadcast %260 : vector<8x1xf32> to vector<8x8xf32>
    %262 = arith.subf %258, %261 : vector<8x8xf32>
    %263 = math.exp %262 : vector<8x8xf32>
    %cst_90 = arith.constant dense<0.000000e+00> : vector<8xf32>
    %264 = vector.multi_reduction <add>, %263, %cst_90 [1] : vector<8x8xf32> to vector<8xf32>
    %265 = vector.shape_cast %264 : vector<8xf32> to vector<8x1xf32>
    %266 = vector.broadcast %265 : vector<8x1xf32> to vector<8x8xf32>
    %267 = arith.divf %263, %266 : vector<8x8xf32>
    %cst_91 = arith.constant dense<0.000000e+00> : vector<8x8xf32>
    %268 = tpu.matmul %267, %255, %cst_91 {dimension_numbers = #tpu.dot_dimension_numbers<[1], [0], [0], [1], [0, 0, 1, 1], [], []>} : vector<8x8xf32>, vector<8x8xf32>, vector<8x8xf32> -> vector<8x8xf32>
    %269 = tpu.concatenate %156, %172, %188, %204, %220, %236, %252, %268 in 1 : vector<8x8xf32>, vector<8x8xf32>, vector<8x8xf32>, vector<8x8xf32>, vector<8x8xf32>, vector<8x8xf32>, vector<8x8xf32>, vector<8x8xf32> -> vector<8x64xf32>
    %270 = tpu.concatenate %140, %269 in 0 : vector<8x64xf32>, vector<8x64xf32> -> vector<16x64xf32>
    %c0_92 = arith.constant 0 : index
    %c0_93 = arith.constant 0 : index
    %271 = vector.load %arg7[%c0_92, %c0_93] : memref<64x64xf32, #tpu.memory_space<vmem>>, vector<64x64xf32>
    %cst_94 = arith.constant dense<0.000000e+00> : vector<16x64xf32>
    %272 = tpu.matmul %270, %271, %cst_94 {dimension_numbers = #tpu.dot_dimension_numbers<[1], [0], [0], [1], [0, 0, 1, 1], [], []>} : vector<16x64xf32>, vector<64x64xf32>, vector<16x64xf32> -> vector<16x64xf32>
    %c0_95 = arith.constant 0 : index
    %c0_96 = arith.constant 0 : index
    %273 = vector.load %arg8[%c0_95, %c0_96] : memref<1x64xf32, #tpu.memory_space<vmem>>, vector<1x64xf32>
    %274 = vector.broadcast %273 : vector<1x64xf32> to vector<16x64xf32>
    %275 = arith.addf %272, %274 : vector<16x64xf32>
    %c0_97 = arith.constant 0 : index
    %c0_98 = arith.constant 0 : index
    %276 = vector.load %arg2[%c0_97, %c0_98] : memref<16x64xf32, #tpu.memory_space<vmem>>, vector<16x64xf32>
    %277 = arith.addf %275, %276 : vector<16x64xf32>
    %c0_99 = arith.constant 0 : index
    %c0_100 = arith.constant 0 : index
    %278 = vector.load %arg9[%c0_99, %c0_100] : memref<1x64xf32, #tpu.memory_space<vmem>>, vector<1x64xf32>
    %c0_101 = arith.constant 0 : index
    %c0_102 = arith.constant 0 : index
    %279 = vector.load %arg10[%c0_101, %c0_102] : memref<1x64xf32, #tpu.memory_space<vmem>>, vector<1x64xf32>
    %cst_103 = arith.constant dense<0.000000e+00> : vector<16xf32>
    %280 = vector.multi_reduction <add>, %277, %cst_103 [1] : vector<16x64xf32> to vector<16xf32>
    %281 = vector.shape_cast %280 : vector<16xf32> to vector<16x1xf32>
    %cst_104 = arith.constant 6.400000e+01 : f32
    %282 = vector.broadcast %cst_104 : f32 to vector<16x1xf32>
    %283 = arith.divf %281, %282 : vector<16x1xf32>
    %284 = vector.broadcast %283 : vector<16x1xf32> to vector<16x64xf32>
    %285 = arith.subf %277, %284 : vector<16x64xf32>
    %286 = arith.mulf %285, %285 : vector<16x64xf32>
    %cst_105 = arith.constant dense<0.000000e+00> : vector<16xf32>
    %287 = vector.multi_reduction <add>, %286, %cst_105 [1] : vector<16x64xf32> to vector<16xf32>
    %288 = vector.shape_cast %287 : vector<16xf32> to vector<16x1xf32>
    %cst_106 = arith.constant 6.400000e+01 : f32
    %289 = vector.broadcast %cst_106 : f32 to vector<16x1xf32>
    %290 = arith.divf %288, %289 : vector<16x1xf32>
    %291 = vector.broadcast %283 : vector<16x1xf32> to vector<16x64xf32>
    %292 = arith.subf %277, %291 : vector<16x64xf32>
    %cst_107 = arith.constant 9.99999974E-6 : f32
    %293 = vector.broadcast %cst_107 : f32 to vector<16x1xf32>
    %294 = arith.addf %290, %293 : vector<16x1xf32>
    %295 = math.rsqrt %294 : vector<16x1xf32>
    %296 = vector.broadcast %295 : vector<16x1xf32> to vector<16x64xf32>
    %297 = arith.mulf %292, %296 : vector<16x64xf32>
    %298 = vector.broadcast %278 : vector<1x64xf32> to vector<16x64xf32>
    %299 = arith.mulf %297, %298 : vector<16x64xf32>
    %300 = vector.broadcast %279 : vector<1x64xf32> to vector<16x64xf32>
    %301 = arith.addf %299, %300 : vector<16x64xf32>
    %c0_108 = arith.constant 0 : index
    %c0_109 = arith.constant 0 : index
    %302 = vector.load %arg11[%c0_108, %c0_109] : memref<16x64xf32, #tpu.memory_space<vmem>>, vector<16x64xf32>
    tpu.vector_store %arg11[%c0_108, %c0_109], %301 {strides = array<i32>} : memref<16x64xf32, #tpu.memory_space<vmem>>, vector<16x64xf32>,
    return
  }
  func.func @transform_0(%arg0: i32) -> (i32, i32) {
    %c0_i32 = arith.constant 0 : i32
    %c0_i32_0 = arith.constant 0 : i32
    %c0_i32_1 = arith.constant 0 : i32
    return %c0_i32, %c0_i32_0 : i32, i32
  }
  func.func @transform_1(%arg0: i32) -> (i32, i32) {
    %c0_i32 = arith.constant 0 : i32
    %c0_i32_0 = arith.constant 0 : i32
    %c0_i32_1 = arith.constant 0 : i32
    return %c0_i32, %c0_i32_0 : i32, i32
  }
  func.func @transform_2(%arg0: i32) -> (i32, i32) {
    %c0_i32 = arith.constant 0 : i32
    %c0_i32_0 = arith.constant 0 : i32
    %c0_i32_1 = arith.constant 0 : i32
    return %c0_i32, %c0_i32_0 : i32, i32
  }
  func.func @transform_3(%arg0: i32) -> (i32, i32) {
    %c0_i32 = arith.constant 0 : i32
    %c0_i32_0 = arith.constant 0 : i32
    %c0_i32_1 = arith.constant 0 : i32
    return %c0_i32, %c0_i32_0 : i32, i32
  }
  func.func @transform_4(%arg0: i32) -> (i32, i32) {
    %c0_i32 = arith.constant 0 : i32
    %c0_i32_0 = arith.constant 0 : i32
    %c0_i32_1 = arith.constant 0 : i32
    return %c0_i32, %c0_i32_0 : i32, i32
  }
  func.func @transform_5(%arg0: i32) -> (i32, i32) {
    %c0_i32 = arith.constant 0 : i32
    %c0_i32_0 = arith.constant 0 : i32
    %c0_i32_1 = arith.constant 0 : i32
    return %c0_i32, %c0_i32_0 : i32, i32
  }
  func.func @transform_6(%arg0: i32) -> (i32, i32) {
    %c0_i32 = arith.constant 0 : i32
    %c0_i32_0 = arith.constant 0 : i32
    %c0_i32_1 = arith.constant 0 : i32
    return %c0_i32, %c0_i32_0 : i32, i32
  }
  func.func @transform_7(%arg0: i32) -> (i32, i32) {
    %c0_i32 = arith.constant 0 : i32
    %c0_i32_0 = arith.constant 0 : i32
    %c0_i32_1 = arith.constant 0 : i32
    return %c0_i32, %c0_i32_0 : i32, i32
  }
  func.func @transform_8(%arg0: i32) -> (i32, i32) {
    %c0_i32 = arith.constant 0 : i32
    %c0_i32_0 = arith.constant 0 : i32
    %c0_i32_1 = arith.constant 0 : i32
    return %c0_i32, %c0_i32_0 : i32, i32
  }
  func.func @transform_9(%arg0: i32) -> (i32, i32) {
    %c0_i32 = arith.constant 0 : i32
    %c0_i32_0 = arith.constant 0 : i32
    %c0_i32_1 = arith.constant 0 : i32
    return %c0_i32, %c0_i32_0 : i32, i32
  }
  func.func @transform_10(%arg0: i32) -> (i32, i32) {
    %c0_i32 = arith.constant 0 : i32
    %c0_i32_0 = arith.constant 0 : i32
    %c0_i32_1 = arith.constant 0 : i32
    return %c0_i32, %c0_i32_0 : i32, i32
  }
}

module attributes {stable_mosaic.version = 11 : i64} {
  func.func @deform_prep_kernel(%arg0: i32, %arg1: memref<16x64xf32, #tpu.memory_space<vmem>>, %arg2: memref<40x64xf32, #tpu.memory_space<vmem>>, %arg3: memref<64x192xf32, #tpu.memory_space<vmem>>, %arg4: memref<1x192xf32, #tpu.memory_space<vmem>>, %arg5: memref<64x64xf32, #tpu.memory_space<vmem>>, %arg6: memref<1x64xf32, #tpu.memory_space<vmem>>, %arg7: memref<16x128xf32, #tpu.memory_space<vmem>>, %arg8: memref<16x64xf32, #tpu.memory_space<vmem>>, %arg9: memref<40x64xf32, #tpu.memory_space<vmem>>) attributes {dimension_semantics = [#tpu.dimension_semantics<arbitrary>], iteration_bounds = array<i64: 1>, scalar_prefetch = 0 : i64, scratch_operands = 0 : i64, tpu.core_type = #tpu.core_type<tc>, window_params = [{pipeline_mode = #tpu.pipeline_mode<synchronous>, transform_indices = @transform_0, window_bounds = array<i64: 16, 64>}, {pipeline_mode = #tpu.pipeline_mode<synchronous>, transform_indices = @transform_1, window_bounds = array<i64: 40, 64>}, {pipeline_mode = #tpu.pipeline_mode<synchronous>, transform_indices = @transform_2, window_bounds = array<i64: 64, 192>}, {pipeline_mode = #tpu.pipeline_mode<synchronous>, transform_indices = @transform_3, window_bounds = array<i64: 1, 192>}, {pipeline_mode = #tpu.pipeline_mode<synchronous>, transform_indices = @transform_4, window_bounds = array<i64: 64, 64>}, {pipeline_mode = #tpu.pipeline_mode<synchronous>, transform_indices = @transform_5, window_bounds = array<i64: 1, 64>}, {pipeline_mode = #tpu.pipeline_mode<synchronous>, transform_indices = @transform_6, window_bounds = array<i64: 16, 128>}, {pipeline_mode = #tpu.pipeline_mode<synchronous>, transform_indices = @transform_7, window_bounds = array<i64: 16, 64>}, {pipeline_mode = #tpu.pipeline_mode<synchronous>, transform_indices = @transform_8, window_bounds = array<i64: 40, 64>}]} {
    %c0 = arith.constant 0 : index
    %c0_0 = arith.constant 0 : index
    %0 = vector.load %arg1[%c0, %c0_0] : memref<16x64xf32, #tpu.memory_space<vmem>>, vector<16x64xf32>
    %c0_1 = arith.constant 0 : index
    %c0_2 = arith.constant 0 : index
    %1 = vector.load %arg3[%c0_1, %c0_2] : memref<64x192xf32, #tpu.memory_space<vmem>>, vector<64x192xf32>
    %cst = arith.constant dense<0.000000e+00> : vector<16x192xf32>
    %2 = tpu.matmul %0, %1, %cst {dimension_numbers = #tpu.dot_dimension_numbers<[1], [0], [0], [1], [0, 0, 1, 1], [], []>} : vector<16x64xf32>, vector<64x192xf32>, vector<16x192xf32> -> vector<16x192xf32>
    %c0_3 = arith.constant 0 : index
    %c0_4 = arith.constant 0 : index
    %3 = vector.load %arg4[%c0_3, %c0_4] : memref<1x192xf32, #tpu.memory_space<vmem>>, vector<1x192xf32>
    %4 = vector.broadcast %3 : vector<1x192xf32> to vector<16x192xf32>
    %5 = arith.addf %2, %4 : vector<16x192xf32>
    %6 = vector.extract_strided_slice %5 {offsets = [0, 0], sizes = [16, 128], strides = [1, 1]} : vector<16x192xf32> to vector<16x128xf32>
    %c0_5 = arith.constant 0 : index
    %c0_6 = arith.constant 0 : index
    %7 = vector.load %arg7[%c0_5, %c0_6] : memref<16x128xf32, #tpu.memory_space<vmem>>, vector<16x128xf32>
    tpu.vector_store %arg7[%c0_5, %c0_6], %6 {strides = array<i32>} : memref<16x128xf32, #tpu.memory_space<vmem>>, vector<16x128xf32>,
    %8 = vector.extract_strided_slice %5 {offsets = [0, 128], sizes = [16, 64], strides = [1, 1]} : vector<16x192xf32> to vector<16x64xf32>
    %9 = vector.extract_strided_slice %8 {offsets = [0, 0], sizes = [16, 8], strides = [1, 1]} : vector<16x64xf32> to vector<16x8xf32>
    %cst_7 = arith.constant dense<0xFF800000> : vector<16xf32>
    %10 = vector.multi_reduction <maximumf>, %9, %cst_7 [1] : vector<16x8xf32> to vector<16xf32>
    %11 = vector.shape_cast %10 : vector<16xf32> to vector<16x1xf32>
    %12 = vector.broadcast %11 : vector<16x1xf32> to vector<16x8xf32>
    %13 = arith.subf %9, %12 : vector<16x8xf32>
    %14 = math.exp %13 : vector<16x8xf32>
    %cst_8 = arith.constant dense<0.000000e+00> : vector<16xf32>
    %15 = vector.multi_reduction <add>, %14, %cst_8 [1] : vector<16x8xf32> to vector<16xf32>
    %16 = vector.shape_cast %15 : vector<16xf32> to vector<16x1xf32>
    %17 = vector.broadcast %16 : vector<16x1xf32> to vector<16x8xf32>
    %18 = arith.divf %14, %17 : vector<16x8xf32>
    %19 = vector.extract_strided_slice %8 {offsets = [0, 8], sizes = [16, 8], strides = [1, 1]} : vector<16x64xf32> to vector<16x8xf32>
    %cst_9 = arith.constant dense<0xFF800000> : vector<16xf32>
    %20 = vector.multi_reduction <maximumf>, %19, %cst_9 [1] : vector<16x8xf32> to vector<16xf32>
    %21 = vector.shape_cast %20 : vector<16xf32> to vector<16x1xf32>
    %22 = vector.broadcast %21 : vector<16x1xf32> to vector<16x8xf32>
    %23 = arith.subf %19, %22 : vector<16x8xf32>
    %24 = math.exp %23 : vector<16x8xf32>
    %cst_10 = arith.constant dense<0.000000e+00> : vector<16xf32>
    %25 = vector.multi_reduction <add>, %24, %cst_10 [1] : vector<16x8xf32> to vector<16xf32>
    %26 = vector.shape_cast %25 : vector<16xf32> to vector<16x1xf32>
    %27 = vector.broadcast %26 : vector<16x1xf32> to vector<16x8xf32>
    %28 = arith.divf %24, %27 : vector<16x8xf32>
    %29 = vector.extract_strided_slice %8 {offsets = [0, 16], sizes = [16, 8], strides = [1, 1]} : vector<16x64xf32> to vector<16x8xf32>
    %cst_11 = arith.constant dense<0xFF800000> : vector<16xf32>
    %30 = vector.multi_reduction <maximumf>, %29, %cst_11 [1] : vector<16x8xf32> to vector<16xf32>
    %31 = vector.shape_cast %30 : vector<16xf32> to vector<16x1xf32>
    %32 = vector.broadcast %31 : vector<16x1xf32> to vector<16x8xf32>
    %33 = arith.subf %29, %32 : vector<16x8xf32>
    %34 = math.exp %33 : vector<16x8xf32>
    %cst_12 = arith.constant dense<0.000000e+00> : vector<16xf32>
    %35 = vector.multi_reduction <add>, %34, %cst_12 [1] : vector<16x8xf32> to vector<16xf32>
    %36 = vector.shape_cast %35 : vector<16xf32> to vector<16x1xf32>
    %37 = vector.broadcast %36 : vector<16x1xf32> to vector<16x8xf32>
    %38 = arith.divf %34, %37 : vector<16x8xf32>
    %39 = vector.extract_strided_slice %8 {offsets = [0, 24], sizes = [16, 8], strides = [1, 1]} : vector<16x64xf32> to vector<16x8xf32>
    %cst_13 = arith.constant dense<0xFF800000> : vector<16xf32>
    %40 = vector.multi_reduction <maximumf>, %39, %cst_13 [1] : vector<16x8xf32> to vector<16xf32>
    %41 = vector.shape_cast %40 : vector<16xf32> to vector<16x1xf32>
    %42 = vector.broadcast %41 : vector<16x1xf32> to vector<16x8xf32>
    %43 = arith.subf %39, %42 : vector<16x8xf32>
    %44 = math.exp %43 : vector<16x8xf32>
    %cst_14 = arith.constant dense<0.000000e+00> : vector<16xf32>
    %45 = vector.multi_reduction <add>, %44, %cst_14 [1] : vector<16x8xf32> to vector<16xf32>
    %46 = vector.shape_cast %45 : vector<16xf32> to vector<16x1xf32>
    %47 = vector.broadcast %46 : vector<16x1xf32> to vector<16x8xf32>
    %48 = arith.divf %44, %47 : vector<16x8xf32>
    %49 = vector.extract_strided_slice %8 {offsets = [0, 32], sizes = [16, 8], strides = [1, 1]} : vector<16x64xf32> to vector<16x8xf32>
    %cst_15 = arith.constant dense<0xFF800000> : vector<16xf32>
    %50 = vector.multi_reduction <maximumf>, %49, %cst_15 [1] : vector<16x8xf32> to vector<16xf32>
    %51 = vector.shape_cast %50 : vector<16xf32> to vector<16x1xf32>
    %52 = vector.broadcast %51 : vector<16x1xf32> to vector<16x8xf32>
    %53 = arith.subf %49, %52 : vector<16x8xf32>
    %54 = math.exp %53 : vector<16x8xf32>
    %cst_16 = arith.constant dense<0.000000e+00> : vector<16xf32>
    %55 = vector.multi_reduction <add>, %54, %cst_16 [1] : vector<16x8xf32> to vector<16xf32>
    %56 = vector.shape_cast %55 : vector<16xf32> to vector<16x1xf32>
    %57 = vector.broadcast %56 : vector<16x1xf32> to vector<16x8xf32>
    %58 = arith.divf %54, %57 : vector<16x8xf32>
    %59 = vector.extract_strided_slice %8 {offsets = [0, 40], sizes = [16, 8], strides = [1, 1]} : vector<16x64xf32> to vector<16x8xf32>
    %cst_17 = arith.constant dense<0xFF800000> : vector<16xf32>
    %60 = vector.multi_reduction <maximumf>, %59, %cst_17 [1] : vector<16x8xf32> to vector<16xf32>
    %61 = vector.shape_cast %60 : vector<16xf32> to vector<16x1xf32>
    %62 = vector.broadcast %61 : vector<16x1xf32> to vector<16x8xf32>
    %63 = arith.subf %59, %62 : vector<16x8xf32>
    %64 = math.exp %63 : vector<16x8xf32>
    %cst_18 = arith.constant dense<0.000000e+00> : vector<16xf32>
    %65 = vector.multi_reduction <add>, %64, %cst_18 [1] : vector<16x8xf32> to vector<16xf32>
    %66 = vector.shape_cast %65 : vector<16xf32> to vector<16x1xf32>
    %67 = vector.broadcast %66 : vector<16x1xf32> to vector<16x8xf32>
    %68 = arith.divf %64, %67 : vector<16x8xf32>
    %69 = vector.extract_strided_slice %8 {offsets = [0, 48], sizes = [16, 8], strides = [1, 1]} : vector<16x64xf32> to vector<16x8xf32>
    %cst_19 = arith.constant dense<0xFF800000> : vector<16xf32>
    %70 = vector.multi_reduction <maximumf>, %69, %cst_19 [1] : vector<16x8xf32> to vector<16xf32>
    %71 = vector.shape_cast %70 : vector<16xf32> to vector<16x1xf32>
    %72 = vector.broadcast %71 : vector<16x1xf32> to vector<16x8xf32>
    %73 = arith.subf %69, %72 : vector<16x8xf32>
    %74 = math.exp %73 : vector<16x8xf32>
    %cst_20 = arith.constant dense<0.000000e+00> : vector<16xf32>
    %75 = vector.multi_reduction <add>, %74, %cst_20 [1] : vector<16x8xf32> to vector<16xf32>
    %76 = vector.shape_cast %75 : vector<16xf32> to vector<16x1xf32>
    %77 = vector.broadcast %76 : vector<16x1xf32> to vector<16x8xf32>
    %78 = arith.divf %74, %77 : vector<16x8xf32>
    %79 = vector.extract_strided_slice %8 {offsets = [0, 56], sizes = [16, 8], strides = [1, 1]} : vector<16x64xf32> to vector<16x8xf32>
    %cst_21 = arith.constant dense<0xFF800000> : vector<16xf32>
    %80 = vector.multi_reduction <maximumf>, %79, %cst_21 [1] : vector<16x8xf32> to vector<16xf32>
    %81 = vector.shape_cast %80 : vector<16xf32> to vector<16x1xf32>
    %82 = vector.broadcast %81 : vector<16x1xf32> to vector<16x8xf32>
    %83 = arith.subf %79, %82 : vector<16x8xf32>
    %84 = math.exp %83 : vector<16x8xf32>
    %cst_22 = arith.constant dense<0.000000e+00> : vector<16xf32>
    %85 = vector.multi_reduction <add>, %84, %cst_22 [1] : vector<16x8xf32> to vector<16xf32>
    %86 = vector.shape_cast %85 : vector<16xf32> to vector<16x1xf32>
    %87 = vector.broadcast %86 : vector<16x1xf32> to vector<16x8xf32>
    %88 = arith.divf %84, %87 : vector<16x8xf32>
    %89 = tpu.concatenate %18, %28, %38, %48, %58, %68, %78, %88 in 1 : vector<16x8xf32>, vector<16x8xf32>, vector<16x8xf32>, vector<16x8xf32>, vector<16x8xf32>, vector<16x8xf32>, vector<16x8xf32>, vector<16x8xf32> -> vector<16x64xf32>
    %c0_23 = arith.constant 0 : index
    %c0_24 = arith.constant 0 : index
    %90 = vector.load %arg8[%c0_23, %c0_24] : memref<16x64xf32, #tpu.memory_space<vmem>>, vector<16x64xf32>
    tpu.vector_store %arg8[%c0_23, %c0_24], %89 {strides = array<i32>} : memref<16x64xf32, #tpu.memory_space<vmem>>, vector<16x64xf32>,
    %c0_25 = arith.constant 0 : index
    %c0_26 = arith.constant 0 : index
    %91 = vector.load %arg2[%c0_25, %c0_26] : memref<40x64xf32, #tpu.memory_space<vmem>>, vector<40x64xf32>
    %c0_27 = arith.constant 0 : index
    %c0_28 = arith.constant 0 : index
    %92 = vector.load %arg5[%c0_27, %c0_28] : memref<64x64xf32, #tpu.memory_space<vmem>>, vector<64x64xf32>
    %cst_29 = arith.constant dense<0.000000e+00> : vector<40x64xf32>
    %93 = tpu.matmul %91, %92, %cst_29 {dimension_numbers = #tpu.dot_dimension_numbers<[1], [0], [0], [1], [0, 0, 1, 1], [], []>} : vector<40x64xf32>, vector<64x64xf32>, vector<40x64xf32> -> vector<40x64xf32>
    %c0_30 = arith.constant 0 : index
    %c0_31 = arith.constant 0 : index
    %94 = vector.load %arg6[%c0_30, %c0_31] : memref<1x64xf32, #tpu.memory_space<vmem>>, vector<1x64xf32>
    %95 = vector.broadcast %94 : vector<1x64xf32> to vector<40x64xf32>
    %96 = arith.addf %93, %95 : vector<40x64xf32>
    %c0_32 = arith.constant 0 : index
    %c0_33 = arith.constant 0 : index
    %97 = vector.load %arg9[%c0_32, %c0_33] : memref<40x64xf32, #tpu.memory_space<vmem>>, vector<40x64xf32>
    tpu.vector_store %arg9[%c0_32, %c0_33], %96 {strides = array<i32>} : memref<40x64xf32, #tpu.memory_space<vmem>>, vector<40x64xf32>,
    return
  }
  func.func @transform_0(%arg0: i32) -> (i32, i32) {
    %c0_i32 = arith.constant 0 : i32
    %c0_i32_0 = arith.constant 0 : i32
    %c0_i32_1 = arith.constant 0 : i32
    return %c0_i32, %c0_i32_0 : i32, i32
  }
  func.func @transform_1(%arg0: i32) -> (i32, i32) {
    %c0_i32 = arith.constant 0 : i32
    %c0_i32_0 = arith.constant 0 : i32
    %c0_i32_1 = arith.constant 0 : i32
    return %c0_i32, %c0_i32_0 : i32, i32
  }
  func.func @transform_2(%arg0: i32) -> (i32, i32) {
    %c0_i32 = arith.constant 0 : i32
    %c0_i32_0 = arith.constant 0 : i32
    %c0_i32_1 = arith.constant 0 : i32
    return %c0_i32, %c0_i32_0 : i32, i32
  }
  func.func @transform_3(%arg0: i32) -> (i32, i32) {
    %c0_i32 = arith.constant 0 : i32
    %c0_i32_0 = arith.constant 0 : i32
    %c0_i32_1 = arith.constant 0 : i32
    return %c0_i32, %c0_i32_0 : i32, i32
  }
  func.func @transform_4(%arg0: i32) -> (i32, i32) {
    %c0_i32 = arith.constant 0 : i32
    %c0_i32_0 = arith.constant 0 : i32
    %c0_i32_1 = arith.constant 0 : i32
    return %c0_i32, %c0_i32_0 : i32, i32
  }
  func.func @transform_5(%arg0: i32) -> (i32, i32) {
    %c0_i32 = arith.constant 0 : i32
    %c0_i32_0 = arith.constant 0 : i32
    %c0_i32_1 = arith.constant 0 : i32
    return %c0_i32, %c0_i32_0 : i32, i32
  }
  func.func @transform_6(%arg0: i32) -> (i32, i32) {
    %c0_i32 = arith.constant 0 : i32
    %c0_i32_0 = arith.constant 0 : i32
    %c0_i32_1 = arith.constant 0 : i32
    return %c0_i32, %c0_i32_0 : i32, i32
  }
  func.func @transform_7(%arg0: i32) -> (i32, i32) {
    %c0_i32 = arith.constant 0 : i32
    %c0_i32_0 = arith.constant 0 : i32
    %c0_i32_1 = arith.constant 0 : i32
    return %c0_i32, %c0_i32_0 : i32, i32
  }
  func.func @transform_8(%arg0: i32) -> (i32, i32) {
    %c0_i32 = arith.constant 0 : i32
    %c0_i32_0 = arith.constant 0 : i32
    %c0_i32_1 = arith.constant 0 : i32
    return %c0_i32, %c0_i32_0 : i32, i32
  }
}

module attributes {stable_mosaic.version = 11 : i64} {
  func.func @linear_residual_ln_kernel(%arg0: i32, %arg1: memref<16x64xf32, #tpu.memory_space<vmem>>, %arg2: memref<16x64xf32, #tpu.memory_space<vmem>>, %arg3: memref<64x64xf32, #tpu.memory_space<vmem>>, %arg4: memref<1x64xf32, #tpu.memory_space<vmem>>, %arg5: memref<1x64xf32, #tpu.memory_space<vmem>>, %arg6: memref<1x64xf32, #tpu.memory_space<vmem>>, %arg7: memref<16x64xf32, #tpu.memory_space<vmem>>) attributes {dimension_semantics = [#tpu.dimension_semantics<arbitrary>], iteration_bounds = array<i64: 1>, scalar_prefetch = 0 : i64, scratch_operands = 0 : i64, tpu.core_type = #tpu.core_type<tc>, window_params = [{pipeline_mode = #tpu.pipeline_mode<synchronous>, transform_indices = @transform_0, window_bounds = array<i64: 16, 64>}, {pipeline_mode = #tpu.pipeline_mode<synchronous>, transform_indices = @transform_1, window_bounds = array<i64: 16, 64>}, {pipeline_mode = #tpu.pipeline_mode<synchronous>, transform_indices = @transform_2, window_bounds = array<i64: 64, 64>}, {pipeline_mode = #tpu.pipeline_mode<synchronous>, transform_indices = @transform_3, window_bounds = array<i64: 1, 64>}, {pipeline_mode = #tpu.pipeline_mode<synchronous>, transform_indices = @transform_4, window_bounds = array<i64: 1, 64>}, {pipeline_mode = #tpu.pipeline_mode<synchronous>, transform_indices = @transform_5, window_bounds = array<i64: 1, 64>}, {pipeline_mode = #tpu.pipeline_mode<synchronous>, transform_indices = @transform_6, window_bounds = array<i64: 16, 64>}]} {
    %c0 = arith.constant 0 : index
    %c0_0 = arith.constant 0 : index
    %0 = vector.load %arg1[%c0, %c0_0] : memref<16x64xf32, #tpu.memory_space<vmem>>, vector<16x64xf32>
    %c0_1 = arith.constant 0 : index
    %c0_2 = arith.constant 0 : index
    %1 = vector.load %arg3[%c0_1, %c0_2] : memref<64x64xf32, #tpu.memory_space<vmem>>, vector<64x64xf32>
    %cst = arith.constant dense<0.000000e+00> : vector<16x64xf32>
    %2 = tpu.matmul %0, %1, %cst {dimension_numbers = #tpu.dot_dimension_numbers<[1], [0], [0], [1], [0, 0, 1, 1], [], []>} : vector<16x64xf32>, vector<64x64xf32>, vector<16x64xf32> -> vector<16x64xf32>
    %c0_3 = arith.constant 0 : index
    %c0_4 = arith.constant 0 : index
    %3 = vector.load %arg4[%c0_3, %c0_4] : memref<1x64xf32, #tpu.memory_space<vmem>>, vector<1x64xf32>
    %4 = vector.broadcast %3 : vector<1x64xf32> to vector<16x64xf32>
    %5 = arith.addf %2, %4 : vector<16x64xf32>
    %c0_5 = arith.constant 0 : index
    %c0_6 = arith.constant 0 : index
    %6 = vector.load %arg2[%c0_5, %c0_6] : memref<16x64xf32, #tpu.memory_space<vmem>>, vector<16x64xf32>
    %7 = arith.addf %5, %6 : vector<16x64xf32>
    %c0_7 = arith.constant 0 : index
    %c0_8 = arith.constant 0 : index
    %8 = vector.load %arg5[%c0_7, %c0_8] : memref<1x64xf32, #tpu.memory_space<vmem>>, vector<1x64xf32>
    %c0_9 = arith.constant 0 : index
    %c0_10 = arith.constant 0 : index
    %9 = vector.load %arg6[%c0_9, %c0_10] : memref<1x64xf32, #tpu.memory_space<vmem>>, vector<1x64xf32>
    %cst_11 = arith.constant dense<0.000000e+00> : vector<16xf32>
    %10 = vector.multi_reduction <add>, %7, %cst_11 [1] : vector<16x64xf32> to vector<16xf32>
    %11 = vector.shape_cast %10 : vector<16xf32> to vector<16x1xf32>
    %cst_12 = arith.constant 6.400000e+01 : f32
    %12 = vector.broadcast %cst_12 : f32 to vector<16x1xf32>
    %13 = arith.divf %11, %12 : vector<16x1xf32>
    %14 = vector.broadcast %13 : vector<16x1xf32> to vector<16x64xf32>
    %15 = arith.subf %7, %14 : vector<16x64xf32>
    %16 = arith.mulf %15, %15 : vector<16x64xf32>
    %cst_13 = arith.constant dense<0.000000e+00> : vector<16xf32>
    %17 = vector.multi_reduction <add>, %16, %cst_13 [1] : vector<16x64xf32> to vector<16xf32>
    %18 = vector.shape_cast %17 : vector<16xf32> to vector<16x1xf32>
    %cst_14 = arith.constant 6.400000e+01 : f32
    %19 = vector.broadcast %cst_14 : f32 to vector<16x1xf32>
    %20 = arith.divf %18, %19 : vector<16x1xf32>
    %21 = vector.broadcast %13 : vector<16x1xf32> to vector<16x64xf32>
    %22 = arith.subf %7, %21 : vector<16x64xf32>
    %cst_15 = arith.constant 9.99999974E-6 : f32
    %23 = vector.broadcast %cst_15 : f32 to vector<16x1xf32>
    %24 = arith.addf %20, %23 : vector<16x1xf32>
    %25 = math.rsqrt %24 : vector<16x1xf32>
    %26 = vector.broadcast %25 : vector<16x1xf32> to vector<16x64xf32>
    %27 = arith.mulf %22, %26 : vector<16x64xf32>
    %28 = vector.broadcast %8 : vector<1x64xf32> to vector<16x64xf32>
    %29 = arith.mulf %27, %28 : vector<16x64xf32>
    %30 = vector.broadcast %9 : vector<1x64xf32> to vector<16x64xf32>
    %31 = arith.addf %29, %30 : vector<16x64xf32>
    %c0_16 = arith.constant 0 : index
    %c0_17 = arith.constant 0 : index
    %32 = vector.load %arg7[%c0_16, %c0_17] : memref<16x64xf32, #tpu.memory_space<vmem>>, vector<16x64xf32>
    tpu.vector_store %arg7[%c0_16, %c0_17], %31 {strides = array<i32>} : memref<16x64xf32, #tpu.memory_space<vmem>>, vector<16x64xf32>,
    return
  }
  func.func @transform_0(%arg0: i32) -> (i32, i32) {
    %c0_i32 = arith.constant 0 : i32
    %c0_i32_0 = arith.constant 0 : i32
    %c0_i32_1 = arith.constant 0 : i32
    return %c0_i32, %c0_i32_0 : i32, i32
  }
  func.func @transform_1(%arg0: i32) -> (i32, i32) {
    %c0_i32 = arith.constant 0 : i32
    %c0_i32_0 = arith.constant 0 : i32
    %c0_i32_1 = arith.constant 0 : i32
    return %c0_i32, %c0_i32_0 : i32, i32
  }
  func.func @transform_2(%arg0: i32) -> (i32, i32) {
    %c0_i32 = arith.constant 0 : i32
    %c0_i32_0 = arith.constant 0 : i32
    %c0_i32_1 = arith.constant 0 : i32
    return %c0_i32, %c0_i32_0 : i32, i32
  }
  func.func @transform_3(%arg0: i32) -> (i32, i32) {
    %c0_i32 = arith.constant 0 : i32
    %c0_i32_0 = arith.constant 0 : i32
    %c0_i32_1 = arith.constant 0 : i32
    return %c0_i32, %c0_i32_0 : i32, i32
  }
  func.func @transform_4(%arg0: i32) -> (i32, i32) {
    %c0_i32 = arith.constant 0 : i32
    %c0_i32_0 = arith.constant 0 : i32
    %c0_i32_1 = arith.constant 0 : i32
    return %c0_i32, %c0_i32_0 : i32, i32
  }
  func.func @transform_5(%arg0: i32) -> (i32, i32) {
    %c0_i32 = arith.constant 0 : i32
    %c0_i32_0 = arith.constant 0 : i32
    %c0_i32_1 = arith.constant 0 : i32
    return %c0_i32, %c0_i32_0 : i32, i32
  }
  func.func @transform_6(%arg0: i32) -> (i32, i32) {
    %c0_i32 = arith.constant 0 : i32
    %c0_i32_0 = arith.constant 0 : i32
    %c0_i32_1 = arith.constant 0 : i32
    return %c0_i32, %c0_i32_0 : i32, i32
  }
}

module attributes {stable_mosaic.version = 11 : i64} {
  func.func @ffn_residual_ln_kernel(%arg0: i32, %arg1: memref<16x64xf32, #tpu.memory_space<vmem>>, %arg2: memref<64x128xf32, #tpu.memory_space<vmem>>, %arg3: memref<1x128xf32, #tpu.memory_space<vmem>>, %arg4: memref<128x64xf32, #tpu.memory_space<vmem>>, %arg5: memref<1x64xf32, #tpu.memory_space<vmem>>, %arg6: memref<1x64xf32, #tpu.memory_space<vmem>>, %arg7: memref<1x64xf32, #tpu.memory_space<vmem>>, %arg8: memref<16x64xf32, #tpu.memory_space<vmem>>) attributes {dimension_semantics = [#tpu.dimension_semantics<arbitrary>], iteration_bounds = array<i64: 1>, scalar_prefetch = 0 : i64, scratch_operands = 0 : i64, tpu.core_type = #tpu.core_type<tc>, window_params = [{pipeline_mode = #tpu.pipeline_mode<synchronous>, transform_indices = @transform_0, window_bounds = array<i64: 16, 64>}, {pipeline_mode = #tpu.pipeline_mode<synchronous>, transform_indices = @transform_1, window_bounds = array<i64: 64, 128>}, {pipeline_mode = #tpu.pipeline_mode<synchronous>, transform_indices = @transform_2, window_bounds = array<i64: 1, 128>}, {pipeline_mode = #tpu.pipeline_mode<synchronous>, transform_indices = @transform_3, window_bounds = array<i64: 128, 64>}, {pipeline_mode = #tpu.pipeline_mode<synchronous>, transform_indices = @transform_4, window_bounds = array<i64: 1, 64>}, {pipeline_mode = #tpu.pipeline_mode<synchronous>, transform_indices = @transform_5, window_bounds = array<i64: 1, 64>}, {pipeline_mode = #tpu.pipeline_mode<synchronous>, transform_indices = @transform_6, window_bounds = array<i64: 1, 64>}, {pipeline_mode = #tpu.pipeline_mode<synchronous>, transform_indices = @transform_7, window_bounds = array<i64: 16, 64>}]} {
    %c0 = arith.constant 0 : index
    %c0_0 = arith.constant 0 : index
    %0 = vector.load %arg1[%c0, %c0_0] : memref<16x64xf32, #tpu.memory_space<vmem>>, vector<16x64xf32>
    %c0_1 = arith.constant 0 : index
    %c0_2 = arith.constant 0 : index
    %1 = vector.load %arg2[%c0_1, %c0_2] : memref<64x128xf32, #tpu.memory_space<vmem>>, vector<64x128xf32>
    %cst = arith.constant dense<0.000000e+00> : vector<16x128xf32>
    %2 = tpu.matmul %0, %1, %cst {dimension_numbers = #tpu.dot_dimension_numbers<[1], [0], [0], [1], [0, 0, 1, 1], [], []>} : vector<16x64xf32>, vector<64x128xf32>, vector<16x128xf32> -> vector<16x128xf32>
    %c0_3 = arith.constant 0 : index
    %c0_4 = arith.constant 0 : index
    %3 = vector.load %arg3[%c0_3, %c0_4] : memref<1x128xf32, #tpu.memory_space<vmem>>, vector<1x128xf32>
    %4 = vector.broadcast %3 : vector<1x128xf32> to vector<16x128xf32>
    %5 = arith.addf %2, %4 : vector<16x128xf32>
    %6 = arith.negf %5 : vector<16x128xf32>
    %7 = math.exp %6 : vector<16x128xf32>
    %cst_5 = arith.constant 1.000000e+00 : f32
    %8 = vector.broadcast %cst_5 : f32 to vector<16x128xf32>
    %9 = arith.addf %8, %7 : vector<16x128xf32>
    %10 = arith.divf %8, %9 : vector<16x128xf32>
    %11 = arith.mulf %5, %10 : vector<16x128xf32>
    %c0_6 = arith.constant 0 : index
    %c0_7 = arith.constant 0 : index
    %12 = vector.load %arg4[%c0_6, %c0_7] : memref<128x64xf32, #tpu.memory_space<vmem>>, vector<128x64xf32>
    %cst_8 = arith.constant dense<0.000000e+00> : vector<16x64xf32>
    %13 = tpu.matmul %11, %12, %cst_8 {dimension_numbers = #tpu.dot_dimension_numbers<[1], [0], [0], [1], [0, 0, 1, 1], [], []>} : vector<16x128xf32>, vector<128x64xf32>, vector<16x64xf32> -> vector<16x64xf32>
    %c0_9 = arith.constant 0 : index
    %c0_10 = arith.constant 0 : index
    %14 = vector.load %arg5[%c0_9, %c0_10] : memref<1x64xf32, #tpu.memory_space<vmem>>, vector<1x64xf32>
    %15 = vector.broadcast %14 : vector<1x64xf32> to vector<16x64xf32>
    %16 = arith.addf %13, %15 : vector<16x64xf32>
    %17 = arith.addf %16, %0 : vector<16x64xf32>
    %c0_11 = arith.constant 0 : index
    %c0_12 = arith.constant 0 : index
    %18 = vector.load %arg6[%c0_11, %c0_12] : memref<1x64xf32, #tpu.memory_space<vmem>>, vector<1x64xf32>
    %c0_13 = arith.constant 0 : index
    %c0_14 = arith.constant 0 : index
    %19 = vector.load %arg7[%c0_13, %c0_14] : memref<1x64xf32, #tpu.memory_space<vmem>>, vector<1x64xf32>
    %cst_15 = arith.constant dense<0.000000e+00> : vector<16xf32>
    %20 = vector.multi_reduction <add>, %17, %cst_15 [1] : vector<16x64xf32> to vector<16xf32>
    %21 = vector.shape_cast %20 : vector<16xf32> to vector<16x1xf32>
    %cst_16 = arith.constant 6.400000e+01 : f32
    %22 = vector.broadcast %cst_16 : f32 to vector<16x1xf32>
    %23 = arith.divf %21, %22 : vector<16x1xf32>
    %24 = vector.broadcast %23 : vector<16x1xf32> to vector<16x64xf32>
    %25 = arith.subf %17, %24 : vector<16x64xf32>
    %26 = arith.mulf %25, %25 : vector<16x64xf32>
    %cst_17 = arith.constant dense<0.000000e+00> : vector<16xf32>
    %27 = vector.multi_reduction <add>, %26, %cst_17 [1] : vector<16x64xf32> to vector<16xf32>
    %28 = vector.shape_cast %27 : vector<16xf32> to vector<16x1xf32>
    %cst_18 = arith.constant 6.400000e+01 : f32
    %29 = vector.broadcast %cst_18 : f32 to vector<16x1xf32>
    %30 = arith.divf %28, %29 : vector<16x1xf32>
    %31 = vector.broadcast %23 : vector<16x1xf32> to vector<16x64xf32>
    %32 = arith.subf %17, %31 : vector<16x64xf32>
    %cst_19 = arith.constant 9.99999974E-6 : f32
    %33 = vector.broadcast %cst_19 : f32 to vector<16x1xf32>
    %34 = arith.addf %30, %33 : vector<16x1xf32>
    %35 = math.rsqrt %34 : vector<16x1xf32>
    %36 = vector.broadcast %35 : vector<16x1xf32> to vector<16x64xf32>
    %37 = arith.mulf %32, %36 : vector<16x64xf32>
    %38 = vector.broadcast %18 : vector<1x64xf32> to vector<16x64xf32>
    %39 = arith.mulf %37, %38 : vector<16x64xf32>
    %40 = vector.broadcast %19 : vector<1x64xf32> to vector<16x64xf32>
    %41 = arith.addf %39, %40 : vector<16x64xf32>
    %c0_20 = arith.constant 0 : index
    %c0_21 = arith.constant 0 : index
    %42 = vector.load %arg8[%c0_20, %c0_21] : memref<16x64xf32, #tpu.memory_space<vmem>>, vector<16x64xf32>
    tpu.vector_store %arg8[%c0_20, %c0_21], %41 {strides = array<i32>} : memref<16x64xf32, #tpu.memory_space<vmem>>, vector<16x64xf32>,
    return
  }
  func.func @transform_0(%arg0: i32) -> (i32, i32) {
    %c0_i32 = arith.constant 0 : i32
    %c0_i32_0 = arith.constant 0 : i32
    %c0_i32_1 = arith.constant 0 : i32
    return %c0_i32, %c0_i32_0 : i32, i32
  }
  func.func @transform_1(%arg0: i32) -> (i32, i32) {
    %c0_i32 = arith.constant 0 : i32
    %c0_i32_0 = arith.constant 0 : i32
    %c0_i32_1 = arith.constant 0 : i32
    return %c0_i32, %c0_i32_0 : i32, i32
  }
  func.func @transform_2(%arg0: i32) -> (i32, i32) {
    %c0_i32 = arith.constant 0 : i32
    %c0_i32_0 = arith.constant 0 : i32
    %c0_i32_1 = arith.constant 0 : i32
    return %c0_i32, %c0_i32_0 : i32, i32
  }
  func.func @transform_3(%arg0: i32) -> (i32, i32) {
    %c0_i32 = arith.constant 0 : i32
    %c0_i32_0 = arith.constant 0 : i32
    %c0_i32_1 = arith.constant 0 : i32
    return %c0_i32, %c0_i32_0 : i32, i32
  }
  func.func @transform_4(%arg0: i32) -> (i32, i32) {
    %c0_i32 = arith.constant 0 : i32
    %c0_i32_0 = arith.constant 0 : i32
    %c0_i32_1 = arith.constant 0 : i32
    return %c0_i32, %c0_i32_0 : i32, i32
  }
  func.func @transform_5(%arg0: i32) -> (i32, i32) {
    %c0_i32 = arith.constant 0 : i32
    %c0_i32_0 = arith.constant 0 : i32
    %c0_i32_1 = arith.constant 0 : i32
    return %c0_i32, %c0_i32_0 : i32, i32
  }
  func.func @transform_6(%arg0: i32) -> (i32, i32) {
    %c0_i32 = arith.constant 0 : i32
    %c0_i32_0 = arith.constant 0 : i32
    %c0_i32_1 = arith.constant 0 : i32
    return %c0_i32, %c0_i32_0 : i32, i32
  }
  func.func @transform_7(%arg0: i32) -> (i32, i32) {
    %c0_i32 = arith.constant 0 : i32
    %c0_i32_0 = arith.constant 0 : i32
    %c0_i32_1 = arith.constant 0 : i32
    return %c0_i32, %c0_i32_0 : i32, i32
  }
}

</mosaic_0001>

<bundles_post_ra>
// kernel: run.5
= control target key start
LH: loop header
LB: loop body
LE: loop exit
PB: predicated region body
PF: predicated region fallthrough
CT: control target
= control target key end

     0   :  { %v700_v3 = vmov 0.0   ;;  %vm56_vm0 = vcmask 523264   ;;  %v46_v27 = vlaneseq  ;;  %vm196_vm1 = vcmask 195712   ;;  %s704_s21 = smov 112   ;;  %s706_s22 = smov 96   ;;  %s1053_s2 = inlined_call_operand.vmem [shape: f32[64,192], index: 2, kind: input, shape index: {}]   ;;  %s1054_s0 = inlined_call_operand.vmem [shape: f32[16,64], index: 0, kind: input, shape index: {}]   ;;  %s1055_s3 = inlined_call_operand.vmem [shape: f32[1,192], index: 3, kind: input, shape index: {}]   ;;  %s1056_s6 = inlined_call_operand.vmem [shape: f32[16,128], index: 6, kind: output, shape index: {0}]   ;;  %s1057_s4 = inlined_call_operand.vmem [shape: f32[64,64], index: 4, kind: input, shape index: {}]   ;;  %s1058_s1 = inlined_call_operand.vmem [shape: f32[40,64], index: 1, kind: input, shape index: {}]   ;;  %s1059_s5 = inlined_call_operand.vmem [shape: f32[1,64], index: 5, kind: input, shape index: {}]   ;;  %s1060_s8 = inlined_call_operand.vmem [shape: f32[40,64], index: 8, kind: output, shape index: {2}]   ;;  %s1061_s7 = inlined_call_operand.vmem [shape: f32[16,64], index: 7, kind: output, shape index: {1}]  }
   0x1   :  { %v29_v0 = vld [vmem:[%s1053_s2 + $0x8] sm:$0xff]  ;;  %v31_v1 = vld [vmem:[%s1053_s2 + $0x18] sm:$0xff]  ;;  %v28_v2 = vld [vmem:[%s1053_s2] sm:$0xff]  ;;  %127 = vmatprep.mubr.f32.mxu0 %v700_v3  ;;  %vm142_vm2 = vcmask 64512   ;;  %vm227_vm3 = vcmask 261312   ;;  %vm165_vm4 = vcmask 130112  }
   0x2   :  { %v598_v4 = vpack.c.bf16 %v31_v1, %v29_v0  ;;  %v30_v5 = vld [vmem:[%s1053_s2 + $0x10] sm:$0xff]  ;;  %v33_v6 = vld [vmem:[%s1053_s2 + $0x28] sm:$0xff]  ;;  %v35_v7 = vld [vmem:[%s1053_s2 + $0x38] sm:$0xff]  ;;  %v47_v28 = vshrl.u32 %v46_v27, 7  ;;  %vm258_vm5 = vcmask 326912   ;;  %vm289_vm6 = vcmask 392512  }
   0x3   :  { %v600_v8 = vpack.c.bf16 %v30_v5, %v28_v2  ;;  %v602_v9 = vpack.c.bf16 %v35_v7, %v33_v6  ;;  %v32_v10 = vld [vmem:[%s1053_s2 + $0x20] sm:$0xff]  ;;  %v34_v11 = vld [vmem:[%s1053_s2 + $0x30] sm:$0xff]  ;;  %v37_v12 = vld [vmem:[%s1053_s2 + $0x48] sm:$0xff]  ;;  %vm320_vm7 = vcmask 458112   ;;  %vm351_vm8 = vcmask 523712   ;;  %s707_s23 = smov 88  }
   0x4   :  { %599 = vmatprep.subr.bf16.mxu0 %v598_v4  ;;  %v39_v13 = vld [vmem:[%s1053_s2 + $0x58] sm:$0xff]  ;;  %v604_v14 = vpack.c.bf16 %v34_v11, %v32_v10  ;;  %v36_v16 = vld [vmem:[%s1053_s2 + $0x40] sm:$0xff]  ;;  %v38_v17 = vld [vmem:[%s1053_s2 + $0x50] sm:$0xff]  ;;  %v48_v29 = vsub.s32 0, %v47_v28  ;;  %v52_v31 = vsub.s32 1, %v47_v28  ;;  %v701_v58 = vmov 0.0|0.0  }
   0x5   :  { %601 = vmatpush1.bf16.msra.mxu0 %v600_v8  ;;  %v606_v15 = vpack.c.bf16 %v39_v13, %v37_v12  ;;  %v41_v18 = vld [vmem:[%s1053_s2 + $0x68] sm:$0xff]  ;;  %v43_v19 = vld [vmem:[%s1053_s2 + $0x78] sm:$0xff]  ;;  %v608_v20 = vpack.c.bf16 %v38_v17, %v36_v16  ;;  %v40_v22 = vld [vmem:[%s1053_s2 + $0x60] sm:$0xff]  ;;  %614 = vmatprep.subr.bf16.mxu1 %v701_v58  ;;  %vm702_vm9 = vmmov 0   ;;  %s708_s24 = smov 80   ;;  %s709_s25 = smov 72  }
   0x6   :  { %603 = vmatprep.subr.bf16.mxu0 %v602_v9  ;;  %v610_v21 = vpack.c.bf16 %v43_v19, %v41_v18  ;;  %v42_v23 = vld [vmem:[%s1053_s2 + $0x70] sm:$0xff]  ;;  %v26_v25 = vld [vmem:[%s1054_s0] sm:$0xff]  ;;  %v27_v26 = vld [vmem:[%s1054_s0 + $0x8] sm:$0xff]  ;;  %583 = vmatprep.mubr.msk.f32.mxu1 %vm702_vm9, %v700_v3  ;;  %vm384_vm10 = vcmask 130048   ;;  %vm387_vm11 = vcmask 195584   ;;  %vm390_vm12 = vcmask 261120  }
   0x7   :  { %v612_v24 = vpack.c.bf16 %v42_v23, %v40_v22  ;;  %v44_v30 = vld [vmem:[%s1055_s3] sm:$0x3]  ;;  %v410_v60 = vld [vmem:[%s1057_s4 + $0x8] sm:$0xff]  ;;  %v411_v61 = vld [vmem:[%s1057_s4 + $0x10] sm:$0xff]  ;;  %vm393_vm13 = vcmask 326656   ;;  %vm396_vm14 = vcmask 392192  }
   0x8   :  { %v49_v32 = vrot.slane %v44_v30, %v48_v29  ;;  %v53_v33 = vrot.slane %v44_v30, %v52_v31  ;;  %v409_v59 = vld [vmem:[%s1057_s4] sm:$0xff]  ;;  %v412_v63 = vld [vmem:[%s1057_s4 + $0x18] sm:$0xff]  ;;  %v414_v2 = vld [vmem:[%s1057_s4 + $0x28] sm:$0xff]  ;;  %vm399_vm15 = vcmask 457728  }
   0x9   :  { %605 = vmatpush1.bf16.msra.mxu0 %v604_v14  ;;  %v615_v62 = vpack.c.bf16 %v410_v60, %v409_v59  ;;  %v618_v0 = vpack.c.bf16 %v412_v63, %v411_v61  ;;  %v413_v1 = vld [vmem:[%s1057_s4 + $0x20] sm:$0xff]  ;;  %v415_v5 = vld [vmem:[%s1057_s4 + $0x30] sm:$0xff]  ;;  %v416_v6 = vld [vmem:[%s1057_s4 + $0x38] sm:$0xff] }
   0xa   :  { %607 = vmatprep.subr.bf16.mxu0 %v606_v15  ;;  %v621_v4 = vpack.c.bf16 %v414_v2, %v413_v1  ;;  %v624_v7 = vpack.c.bf16 %v416_v6, %v415_v5  ;;  %v404_v8 = vld [vmem:[%s1058_s1] sm:$0xff]  ;;  %v405_v9 = vld [vmem:[%s1058_s1 + $0x8] sm:$0xff]  ;;  %v406_v10 = vld [vmem:[%s1058_s1 + $0x10] sm:$0xff] }
   0xb   :  { %616 = vmatpush3.bf16.msra.mxu1 %v615_v62  ;;  %v407_v11 = vld [vmem:[%s1058_s1 + $0x18] sm:$0xff]  ;;  %v408_v12 = vld [vmem:[%s1058_s1 + $0x20] sm:$0xff]  ;;  %s703_s1 = smov 120  }
   0xc   :  { %617 = vmatprep.subr.bf16.mxu1 %v701_v58 }
   0xd   :  { %609 = vmatpush1.bf16.msra.mxu0 %v608_v20 }
   0xe   :  { %611 = vmatprep.subr.bf16.mxu0 %v610_v21 }
   0xf   :  { %619 = vmatpush3.bf16.msra.mxu1 %v618_v0 }
  0x10   :  { %620 = vmatprep.subr.bf16.mxu1 %v701_v58 }
  0x11   :  { %613 = vmatpush1.bf16.msra.mxu0 %v612_v24 }
  0x13   :  { %622 = vmatpush3.bf16.msra.mxu1 %v621_v4 }
  0x14   :  { %546 = vmatmul.mubr.msk.f32.vlgmr.msra.gmra.mrb[0].mxu0 %vm56_vm0, %v26_v25  ;;  %623 = vmatprep.subr.bf16.mxu1 %v701_v58 }
  0x15   :  { %133 = vmatprep.mubr.f32.mxu0 %v700_v3 }
  0x17   :  { %625 = vmatpush3.bf16.msra.mxu1 %v624_v7 }
  0x18   :  { %547 = vmatmul.mubr.msk.f32.gmra.mrb[2].mxu0 %vm56_vm0, %v27_v26 }
  0x1a   :  { %584 = vmatmul.mubr.msk.f32.vlgmr.msra.gmra.mrb[0].mxu1 %vm56_vm0, %v404_v8 }
  0x1b   :  { %586 = vmatprep.mubr.msk.f32.mxu1 %vm702_vm9, %v700_v3 }
  0x1e   :  { %587 = vmatmul.mubr.msk.f32.gmra.mrb[2].mxu1 %vm56_vm0, %v405_v9 }
  0x1f   :  { %589 = vmatprep.mubr.msk.f32.mxu1 %vm702_vm9, %v700_v3 }
  0x22   :  { %590 = vmatmul.mubr.msk.f32.gmra.mrb[4].mxu1 %vm56_vm0, %v406_v10 }
  0x23   :  { %592 = vmatprep.mubr.msk.f32.mxu1 %vm702_vm9, %v700_v3 }
  0x26   :  { %593 = vmatmul.mubr.msk.f32.gmra.mrb[6].mxu1 %vm56_vm0, %v407_v11 }
  0x27   :  { %595 = vmatprep.mubr.msk.f32.mxu1 %vm702_vm9, %v700_v3 }
  0x2a   :  { %596 = vmatmul.mubr.msk.f32.gmra.mrb[8].mxu1 %vm56_vm0, %v408_v12 }
  0xe7   :  { %v129_v34 = vpop.f32.mrb[0].mxu0 }
  0xe8   :  { %v130_v35 = vadd.f32 %v129_v34, %v49_v32  ;;  %v131_v36 = vpop.f32.mrb[1].mxu0 }
  0xe9   :  { %v816_v37 = vadd.f32 %v131_v36, %v53_v33 }
  0xea   :  { %140 = vst [vmem:[%s1056_s6] sm:$0xff] %v130_v35 }
  0xeb   :  { %v197_v38 = vsel %vm196_vm1, %v816_v37, -inf  ;;  %v143_v39 = vsel %vm142_vm2, %v816_v37, -inf  ;;  %v135_v40 = vpop.f32.mrb[2].mxu0  ;;  %v228_v43 = vsel %vm227_vm3, %v816_v37, -inf  ;;  %v166_v44 = vsel %vm165_vm4, %v816_v37, -inf }
  0xec   :  { %198 = vmax.xlane.f32.xlu1 %v197_v38  ;;  %144 = vmax.xlane.f32.xlu0 %v143_v39  ;;  %v136_v41 = vadd.f32 %v135_v40, %v49_v32  ;;  %v137_v42 = vpop.f32.mrb[3].mxu0  ;;  %v259_v46 = vsel %vm258_vm5, %v816_v37, -inf  ;;  %v290_v47 = vsel %vm289_vm6, %v816_v37, -inf  ;;  %v321_v49 = vsel %vm320_vm7, %v816_v37, -inf }
  0xed   :  { %v832_v45 = vadd.f32 %v137_v42, %v53_v33  ;;  %v352_v50 = vsel %vm351_vm8, %v816_v37, -inf }
  0xee   :  { %141 = vst [vmem:[%s1056_s6 + $0x8] sm:$0xff] %v136_v41  ;;  %s705_s6 = smov 104  }
  0xef   :  { %v146_v48 = vsel %vm142_vm2, %v832_v45, -inf  ;;  %v169_v51 = vsel %vm165_vm4, %v832_v45, -inf  ;;  %v200_v52 = vsel %vm196_vm1, %v832_v45, -inf  ;;  %v231_v53 = vsel %vm227_vm3, %v832_v45, -inf }
  0xf0   :  { %229 = vmax.xlane.f32.xlu1 %v228_v43  ;;  %167 = vmax.xlane.f32.xlu0 %v166_v44  ;;  %v262_v54 = vsel %vm258_vm5, %v832_v45, -inf  ;;  %v293_v55 = vsel %vm289_vm6, %v832_v45, -inf  ;;  %v324_v56 = vsel %vm320_vm7, %v832_v45, -inf  ;;  %v355_v57 = vsel %vm351_vm8, %v832_v45, -inf }
  0xf4   :  { %260 = vmax.xlane.f32.xlu1 %v259_v46  ;;  %291 = vmax.xlane.f32.xlu0 %v290_v47 }
  0xf8   :  { %322 = vmax.xlane.f32.xlu1 %v321_v49  ;;  %147 = vmax.xlane.f32.xlu0 %v146_v48 }
  0xfc   :  { %353 = vmax.xlane.f32.xlu1 %v352_v50 }
 0x100   :  { %170 = vmax.xlane.f32.xlu1 %v169_v51 }
 0x104   :  { %201 = vmax.xlane.f32.xlu1 %v200_v52 }
 0x108   :  { %232 = vmax.xlane.f32.xlu1 %v231_v53 }
 0x10c   :  { %263 = vmax.xlane.f32.xlu1 %v262_v54 }
 0x110   :  { %294 = vmax.xlane.f32.xlu1 %v293_v55 }
 0x114   :  { %325 = vmax.xlane.f32.xlu1 %v324_v56 }
 0x118   :  { %356 = vmax.xlane.f32.xlu1 %v355_v57 }
 0x179   :  { %v199_v13 = vpop.xlane.xlu1 %198  ;;  %v145_v14 = vpop.xlane.xlu0 %144 }
 0x17a   :  { %v149_v15 = vsub.f32 %v816_v37, %v145_v14  ;;  %v203_v20 = vsub.f32 %v816_v37, %v199_v13 }
 0x17c   :  { %v151_v16 = vmul.f32 1.442695, %v149_v15  ;;  %v205_v22 = vmul.f32 1.442695, %v203_v20 }
 0x17d   :  { %v230_v17 = vpop.xlane.xlu1 %229  ;;  %v168_v18 = vpop.xlane.xlu0 %167 }
 0x17e   :  { %v172_v19 = vsub.f32 %v816_v37, %v168_v18  ;;  %636 = vpow2.f32 %v151_v16  ;;  %v234_v23 = vsub.f32 %v816_v37, %v230_v17 }
 0x180   :  { %v174_v21 = vmul.f32 1.442695, %v172_v19  ;;  %v236_v25 = vmul.f32 1.442695, %v234_v23 }
 0x181   :  { %v261_v3 = vpop.xlane.xlu1 %260  ;;  %v292_v27 = vpop.xlane.xlu0 %291 }
 0x182   :  { %638 = vpow2.f32 %v174_v21  ;;  %v265_v26 = vsub.f32 %v816_v37, %v261_v3  ;;  %v296_v32 = vsub.f32 %v816_v37, %v292_v27 }
 0x183   :  { %640 = vpow2.f32 %v205_v22 }
 0x184   :  { %642 = vpow2.f32 %v236_v25  ;;  %v267_v31 = vmul.f32 1.442695, %v265_v26  ;;  %v298_v36 = vmul.f32 1.442695, %v296_v32 }
 0x185   :  { %v323_v24 = vpop.xlane.xlu1 %322  ;;  %v148_v11 = vpop.xlane.xlu0 %147 }
 0x186   :  { %644 = vpow2.f32 %v267_v31  ;;  %v327_v49 = vsub.f32 %v816_v37, %v323_v24  ;;  %v150_v12 = vsub.f32 %v832_v45, %v148_v11 }
 0x188   :  { %v915_v28 = vpop.eup %636  ;;  %v329_v55 = vmul.f32 1.442695, %v327_v49  ;;  %v153_v13 = vmul.f32 1.442695, %v150_v12 }
 0x189   :  { %v354_v29 = vpop.xlane.xlu1 %353  ;;  %v155_v30 = vsel %vm142_vm2, %v915_v28, 0.0 }
 0x18a   :  { %156 = vadd.xlane.f32.xlu1 %v155_v30  ;;  %v358_v57 = vsub.f32 %v816_v37, %v354_v29 }
 0x18c   :  { %v920_v33 = vpop.eup %638  ;;  %v360_v62 = vmul.f32 1.442695, %v358_v57 }
 0x18d   :  { %v171_v34 = vpop.xlane.xlu1 %170  ;;  %180 = vrot.lane.b32.xlu0 %v920_v33, %s703_s1  ;;  %v925_v39 = vpop.eup %640 }
 0x18e   :  { %v173_v35 = vsub.f32 %v832_v45, %v171_v34  ;;  %v930_v43 = vpop.eup %642 }
 0x190   :  { %v176_v38 = vmul.f32 1.442695, %v173_v35  ;;  %v935_v48 = vpop.eup %644 }
 0x191   :  { %v202_v40 = vpop.xlane.xlu1 %201  ;;  %211 = vrot.lane.b32.xlu0 %v925_v39, %s704_s21 }
 0x192   :  { %646 = vpow2.f32 %v176_v38  ;;  %v204_v41 = vsub.f32 %v832_v45, %v202_v40 }
 0x193   :  { %648 = vpow2.f32 %v298_v36 }
 0x194   :  { %v207_v42 = vmul.f32 1.442695, %v204_v41 }
 0x195   :  { %v233_v44 = vpop.xlane.xlu1 %232  ;;  %242 = vrot.lane.b32.xlu0 %v930_v43, %s705_s6 }
 0x196   :  { %650 = vpow2.f32 %v207_v42  ;;  %v235_v46 = vsub.f32 %v832_v45, %v233_v44 }
 0x198   :  { %v238_v47 = vmul.f32 1.442695, %v235_v46 }
 0x199   :  { %v264_v50 = vpop.xlane.xlu1 %263  ;;  %273 = vrot.lane.b32.xlu0 %v935_v48, %s706_s22 }
 0x19a   :  { %652 = vpow2.f32 %v238_v47  ;;  %v266_v51 = vsub.f32 %v832_v45, %v264_v50  ;;  %v505_v50 = vpop.f32.mrb[0].mxu1 }
 0x19c   :  { %v940_v52 = vpop.eup %646  ;;  %v269_v53 = vmul.f32 1.442695, %v266_v51  ;;  %v548_v51 = vld [vmem:[%s1059_s5] ss:$0 sm:$0xff] }
 0x19d   :  { %v942_v54 = vpop.eup %648  ;;  %v295_v56 = vpop.xlane.xlu1 %294  ;;  %182 = vrot.lane.b32.xlu1 %v940_v52, %s703_s1 }
 0x19e   :  { %654 = vpow2.f32 %v269_v53  ;;  %v297_v58 = vsub.f32 %v832_v45, %v295_v56  ;;  %304 = vrot.lane.b32.xlu0 %v942_v54, %s707_s23  ;;  %v585_v53 = vpop.f32.mrb[1].mxu1 }
 0x19f   :  { %656 = vpow2.f32 %v329_v55  ;;  %v506_v55 = vadd.f32 %v548_v51, %v505_v50  ;;  %v510_v56 = vpop.f32.mrb[2].mxu1 }
 0x1a0   :  { %v949_v59 = vpop.eup %650  ;;  %v300_v60 = vmul.f32 1.442695, %v297_v58  ;;  %v588_v57 = vpop.f32.mrb[3].mxu1  ;;  %v511_v58 = vadd.f32 %v548_v51, %v510_v56 }
 0x1a1   :  { %v326_v61 = vpop.xlane.xlu1 %325  ;;  %213 = vrot.lane.b32.xlu1 %v949_v59, %s704_s21  ;;  %529 = vst.msk [vmem:[%s1060_s8] sm:$0xff] %vm56_vm0, %v506_v55 }
 0x1a2   :  { %658 = vpow2.f32 %v300_v60  ;;  %v328_v63 = vsub.f32 %v832_v45, %v326_v61  ;;  %530 = vst.msk [vmem:[%s1060_s8 + $0x8] sm:$0xff] %vm56_vm0, %v511_v58  ;;  %v515_v60 = vpop.f32.mrb[4].mxu1 }
 0x1a3   :  { %660 = vpow2.f32 %v360_v62  ;;  %v591_v61 = vpop.f32.mrb[5].mxu1  ;;  %v516_v62 = vadd.f32 %v548_v51, %v515_v60 }
 0x1a4   :  { %v954_v0 = vpop.eup %652  ;;  %v331_v1 = vmul.f32 1.442695, %v328_v63  ;;  %v520_v63 = vpop.f32.mrb[6].mxu1 }
 0x1a5   :  { %v357_v37 = vpop.xlane.xlu1 %356  ;;  %244 = vrot.lane.b32.xlu0 %v954_v0, %s705_s6  ;;  %531 = vst.msk [vmem:[%s1060_s8 + $0x10] sm:$0xff] %vm56_vm0, %v516_v62 }
 0x1a6   :  { %v359_v2 = vsub.f32 %v832_v45, %v357_v37  ;;  %662 = vpow2.f32 %v331_v1  ;;  %v594_v37 = vpop.f32.mrb[7].mxu1  ;;  %v521_v1 = vadd.f32 %v548_v51, %v520_v63 }
 0x1a8   :  { %v959_v4 = vpop.eup %654  ;;  %v362_v5 = vmul.f32 1.442695, %v359_v2  ;;  %532 = vst.msk [vmem:[%s1060_s8 + $0x18] sm:$0xff] %vm56_vm0, %v521_v1  ;;  %v525_v2 = vpop.f32.mrb[8].mxu1 }
 0x1a9   :  { %275 = vrot.lane.b32.xlu0 %v959_v4, %s706_s22  ;;  %v962_v6 = vpop.eup %656  ;;  %v526_v11 = vadd.f32 %v548_v51, %v525_v2 }
 0x1aa   :  { %664 = vpow2.f32 %v362_v5  ;;  %v597_v5 = vpop.f32.mrb[9].mxu1 }
 0x1ab   :  { %666 = vpow2.f32 %v153_v13  ;;  %533 = vst.msk [vmem:[%s1060_s8 + $0x20] sm:$0xff] %vm56_vm0, %v526_v11 }
 0x1ac   :  { %v964_v7 = vpop.eup %658 }
 0x1ad   :  { %306 = vrot.lane.b32.xlu1 %v964_v7, %s707_s23  ;;  %335 = vrot.lane.b32.xlu0 %v962_v6, %s708_s24  ;;  %v968_v8 = vpop.eup %660 }
 0x1b0   :  { %v971_v9 = vpop.eup %662 }
 0x1b1   :  { %366 = vrot.lane.b32.xlu0 %v968_v8, %s709_s25 }
 0x1b4   :  { %v974_v10 = vpop.eup %664 }
 0x1b5   :  { %337 = vrot.lane.b32.xlu0 %v971_v9, %s708_s24  ;;  %v978_v14 = vpop.eup %666 }
 0x1b6   :  { %v158_v15 = vsel %vm142_vm2, %v978_v14, 0.0 }
 0x1b9   :  { %368 = vrot.lane.b32.xlu0 %v974_v10, %s709_s25 }
 0x1d1   :  { %159 = vadd.xlane.f32.xlu1 %v158_v15 }
 0x1ff   :  { %v181_v16 = vpop.permute.xlu0 %180 }
 0x200   :  { %v186_v17 = vsel %vm142_vm2, %v181_v16, 0.0 }
 0x201   :  { %187 = vadd.xlane.f32.xlu0 %v186_v17 }
 0x203   :  { %v212_v18 = vpop.permute.xlu0 %211 }
 0x204   :  { %v217_v19 = vsel %vm142_vm2, %v212_v18, 0.0 }
 0x205   :  { %218 = vadd.xlane.f32.xlu1 %v217_v19 }
 0x207   :  { %v243_v20 = vpop.permute.xlu0 %242 }
 0x208   :  { %v248_v21 = vsel %vm142_vm2, %v243_v20, 0.0 }
 0x209   :  { %249 = vadd.xlane.f32.xlu0 %v248_v21 }
 0x20b   :  { %v274_v45 = vpop.permute.xlu0 %273 }
 0x20c   :  { %v279_v3 = vsel %vm142_vm2, %v274_v45, 0.0 }
 0x20d   :  { %280 = vadd.xlane.f32.xlu0 %v279_v3 }
 0x210   :  { %v305_v22 = vpop.permute.xlu0 %304 }
 0x211   :  { %v310_v23 = vsel %vm142_vm2, %v305_v22, 0.0 }
 0x212   :  { %311 = vadd.xlane.f32.xlu0 %v310_v23 }
 0x217   :  { %v245_v24 = vpop.permute.xlu0 %244  ;;  %v157_v25 = vpop.xlane.xlu1 %156 }
 0x218   :  { %v251_v41 = vsel %vm142_vm2, %v245_v24, 0.0  ;;  %668 = vrcp.f32 %v157_v25 }
 0x21b   :  { %v276_v26 = vpop.permute.xlu0 %275  ;;  %v183_v27 = vpop.permute.xlu1 %182 }
 0x21c   :  { %v189_v35 = vsel %vm142_vm2, %v183_v27, 0.0  ;;  %v282_v36 = vsel %vm142_vm2, %v276_v26, 0.0 }
 0x21f   :  { %v336_v29 = vpop.permute.xlu0 %335  ;;  %v214_v30 = vpop.permute.xlu1 %213 }
 0x220   :  { %v341_v31 = vsel %vm142_vm2, %v336_v29, 0.0  ;;  %v220_v32 = vsel %vm142_vm2, %v214_v30, 0.0 }
 0x221   :  { %342 = vadd.xlane.f32.xlu0 %v341_v31  ;;  %221 = vadd.xlane.f32.xlu1 %v220_v32 }
 0x222   :  { %v669_v3 = vpop.eup %668 }
 0x223   :  { %v367_v34 = vpop.permute.xlu0 %366  ;;  %v307_v38 = vpop.permute.xlu1 %306 }
 0x224   :  { %v313_v42 = vsel %vm142_vm2, %v307_v38, 0.0  ;;  %v372_v44 = vsel %vm142_vm2, %v367_v34, 0.0 }
 0x225   :  { %190 = vadd.xlane.f32.xlu0 %v189_v35  ;;  %283 = vadd.xlane.f32.xlu1 %v282_v36 }
 0x227   :  { %v338_v40 = vpop.permute.xlu0 %337 }
 0x228   :  { %v344_v46 = vsel %vm142_vm2, %v338_v40, 0.0 }
 0x229   :  { %252 = vadd.xlane.f32.xlu0 %v251_v41  ;;  %314 = vadd.xlane.f32.xlu1 %v313_v42 }
 0x22b   :  { %v369_v47 = vpop.permute.xlu0 %368 }
 0x22c   :  { %v375_v49 = vsel %vm142_vm2, %v369_v47, 0.0  ;;  %v162_v47 = vmul.f32 %v669_v3, %v915_v28 }
 0x22d   :  { %373 = vadd.xlane.f32.xlu0 %v372_v44  ;;  %345 = vadd.xlane.f32.xlu1 %v344_v46 }
 0x231   :  { %376 = vadd.xlane.f32.xlu1 %v375_v49 }
 0x25e   :  { %v160_v16 = vpop.xlane.xlu1 %159 }
 0x25f   :  { %670 = vrcp.f32 %v160_v16 }
 0x269   :  { %v671_v23 = vpop.eup %670 }
 0x26a   :  { %v164_v36 = vmul.f32 %v671_v23, %v978_v14 }
 0x28e   :  { %v188_v12 = vpop.xlane.xlu0 %187 }
 0x28f   :  { %672 = vrcp.f32 %v188_v12 }
 0x292   :  { %v219_v18 = vpop.xlane.xlu1 %218 }
 0x293   :  { %674 = vrcp.f32 %v219_v18 }
 0x296   :  { %v250_v13 = vpop.xlane.xlu0 %249 }
 0x297   :  { %676 = vrcp.f32 %v250_v13 }
 0x299   :  { %v673_v25 = vpop.eup %672 }
 0x29a   :  { %v281_v15 = vpop.xlane.xlu0 %280  ;;  %v193_v38 = vmul.f32 %v673_v25, %v920_v33 }
 0x29b   :  { %678 = vrcp.f32 %v281_v15 }
 0x29d   :  { %v675_v26 = vpop.eup %674 }
 0x29e   :  { %v224_v42 = vmul.f32 %v675_v26, %v925_v39 }
 0x29f   :  { %v312_v17 = vpop.xlane.xlu0 %311 }
 0x2a0   :  { %680 = vrcp.f32 %v312_v17 }
 0x2a1   :  { %v677_v27 = vpop.eup %676 }
 0x2a2   :  { %v255_v49 = vmul.f32 %v677_v27, %v930_v43 }
 0x2a5   :  { %v679_v30 = vpop.eup %678 }
 0x2a6   :  { %v286_v14 = vmul.f32 %v679_v30, %v935_v48 }
 0x2aa   :  { %v681_v32 = vpop.eup %680 }
 0x2ab   :  { %v317_v39 = vmul.f32 %v681_v32, %v942_v54 }
 0x2ae   :  { %v343_v19 = vpop.xlane.xlu0 %342  ;;  %v222_v20 = vpop.xlane.xlu1 %221 }
 0x2b2   :  { %v191_v21 = vpop.xlane.xlu0 %190  ;;  %v284_v45 = vpop.xlane.xlu1 %283 }
 0x2b3   :  { %682 = vrcp.f32 %v191_v21 }
 0x2b4   :  { %684 = vrcp.f32 %v222_v20 }
 0x2b5   :  { %686 = vrcp.f32 %v343_v19 }
 0x2b6   :  { %688 = vrcp.f32 %v284_v45  ;;  %v253_v22 = vpop.xlane.xlu0 %252  ;;  %v315_v24 = vpop.xlane.xlu1 %314 }
 0x2b7   :  { %690 = vrcp.f32 %v253_v22 }
 0x2b8   :  { %692 = vrcp.f32 %v315_v24 }
 0x2ba   :  { %v374_v29 = vpop.xlane.xlu0 %373  ;;  %v346_v31 = vpop.xlane.xlu1 %345 }
 0x2bb   :  { %694 = vrcp.f32 %v374_v29 }
 0x2bc   :  { %696 = vrcp.f32 %v346_v31 }
 0x2bd   :  { %v683_v34 = vpop.eup %682 }
 0x2be   :  { %v685_v35 = vpop.eup %684  ;;  %v195_v40 = vmul.f32 %v683_v34, %v940_v52  ;;  %v377_v44 = vpop.xlane.xlu1 %376  ;;  %v382_v52 = vsel %vm142_vm2, %v162_v47, %v193_v38 }
 0x2bf   :  { %v687_v41 = vpop.eup %686  ;;  %698 = vrcp.f32 %v377_v44  ;;  %v226_v33 = vmul.f32 %v685_v35, %v949_v59  ;;  %v385_v28 = vsel %vm384_vm10, %v382_v52, %v224_v42 }
 0x2c0   :  { %v689_v46 = vpop.eup %688  ;;  %v383_v50 = vsel %vm142_vm2, %v164_v36, %v195_v40  ;;  %v348_v43 = vmul.f32 %v687_v41, %v962_v6  ;;  %v388_v57 = vsel %vm387_vm11, %v385_v28, %v255_v49 }
 0x2c1   :  { %v691_v51 = vpop.eup %690  ;;  %v386_v55 = vsel %vm384_vm10, %v383_v50, %v226_v33  ;;  %v288_v48 = vmul.f32 %v689_v46, %v959_v4  ;;  %v391_v60 = vsel %vm390_vm12, %v388_v57, %v286_v14 }
 0x2c2   :  { %v257_v53 = vmul.f32 %v691_v51, %v954_v0  ;;  %v693_v56 = vpop.eup %692  ;;  %v394_v0 = vsel %vm393_vm13, %v391_v60, %v317_v39 }
 0x2c3   :  { %v397_v6 = vsel %vm396_vm14, %v394_v0, %v348_v43  ;;  %v319_v63 = vmul.f32 %v693_v56, %v964_v7 }
 0x2c4   :  { %v389_v59 = vsel %vm387_vm11, %v386_v55, %v257_v53 }
 0x2c5   :  { %v695_v58 = vpop.eup %694  ;;  %v392_v61 = vsel %vm390_vm12, %v389_v59, %v288_v48 }
 0x2c6   :  { %v697_v54 = vpop.eup %696  ;;  %v379_v62 = vmul.f32 %v695_v58, %v968_v8  ;;  %v395_v4 = vsel %vm393_vm13, %v392_v61, %v319_v63 }
 0x2c7   :  { %v350_v37 = vmul.f32 %v697_v54, %v971_v9 }
 0x2c8   :  { %v400_v1 = vsel %vm399_vm15, %v397_v6, %v379_v62 }
 0x2c9   :  { %402 = vst.msk [vmem:[%s1061_s7] sm:$0xff] %vm56_vm0, %v400_v1  ;;  %v699_v2 = vpop.eup %698  ;;  %v398_v11 = vsel %vm396_vm14, %v395_v4, %v350_v37 }
 0x2ca   :  { %v381_v5 = vmul.f32 %v699_v2, %v974_v10 }
 0x2cc   :  { %v401_v8 = vsel %vm399_vm15, %v398_v11, %v381_v5 }
 0x2cd   :  { %403 = vst.msk [vmem:[%s1061_s7 + $0x8] sm:$0xff] %vm56_vm0, %v401_v8 }

// kernel: run.4
= control target key start
LH: loop header
LB: loop body
LE: loop exit
PB: predicated region body
PF: predicated region fallthrough
CT: control target
= control target key end

     0   :  { %15 = vsyncpa [#allocation3], 0  ;;  %s4310_s0 = inlined_call_operand.vmem [shape: f32[16,64], index: 0, kind: input, shape index: {}]   ;;  %s4311_s1 = inlined_call_operand.vmem [shape: f32[16,64], index: 1, kind: input, shape index: {}]   ;;  %s4312_s2 = inlined_call_operand.vmem [shape: f32[64,128], index: 2, kind: input, shape index: {}]   ;;  %s4313_s3 = inlined_call_operand.vmem [shape: f32[1,128], index: 3, kind: input, shape index: {}]   ;;  %s4314_s4 = inlined_call_operand.hbm [shape: f32[64,64], index: 4, kind: input, shape index: {}]   ;;  %s4315_s5 = inlined_call_operand.vmem [shape: f32[1,64], index: 5, kind: input, shape index: {}]   ;;  %s4316_s6 = inlined_call_operand.hbm [shape: f32[64,64], index: 6, kind: input, shape index: {}]   ;;  %s4317_s7 = inlined_call_operand.vmem [shape: f32[1,64], index: 7, kind: input, shape index: {}]   ;;  %s4318_s8 = inlined_call_operand.vmem [shape: f32[1,64], index: 8, kind: input, shape index: {}]   ;;  %s4319_s9 = inlined_call_operand.vmem [shape: f32[1,64], index: 9, kind: input, shape index: {}]   ;;  %s4320_s10 = inlined_call_operand.vmem [shape: f32[16,64], index: 10, kind: output, shape index: {}]  }
   0x1   :  { %16 = vsyncpa [#allocation5], 0  ;;  %s3694_s13 = smov [#allocation2]   ;;  %s3646_s17 = scalar_lea.hbm %s4314_s4, 1024 }
   0x2   :  { %s30_s14 = sshll.u32 %s3694_s13, 4  ;;  %p3647_p0 = scmp.ne.s32.totalorder %s4314_s4, %s3646_s17  ;;  %s31_s14 = int_to_ptr.vmem [resolvable:$true] %s30_s14 }
   0x3   :  { %p3650_p1 = scmp.lt.u32.totalorder %s3646_s17, %s4314_s4 }
   0x5   :  { %p3652_p2 = pnand %p3650_p1, %p3647_p0 }
   0x7   :  { %3655 = shalt.err (!%p3652_p2)
}
   0x8   :  { %s3656_s22 = scalar_lea.vmem %s31_s14, 1024  ;;  %p3661_p4 = scmp.lt.s32.totalorder %s31_s14, %s31_s14 }
   0x9   :  { %p3657_p3 = scmp.ne.s32.totalorder %s31_s14, %s3656_s22  ;;  %p3662_p5 = scmp.lt.s32.totalorder %s3656_s22, %s3656_s22 }
   0xb   :  { %p3663_p6 = por %p3662_p5, %p3661_p4 }
   0xd   :  { %p3664_p7 = pnand %p3663_p6, %p3657_p3 }
   0xf   :  { %3667 = shalt.err (!%p3664_p7)
}
  0x10   :  { %s3695_s23 = smov 128   ;;  %s3696_s24 = smov 8  }
  0x11   :  { %36 = dma.hbm_to_vmem [thread:$0]  %s4314_s4, 1024, %s31_s14, [#allocation3], %s3695_s23, %s3695_s23, %s3696_s24  }
  0x12   :  { %s3697_s27 = smov [#allocation4]   ;;  %s3668_s11 = scalar_lea.hbm %s4316_s6, 1024 }
  0x13   :  { %s44_s28 = sshll.u32 %s3697_s27, 4  ;;  %p3669_p8 = scmp.ne.s32.totalorder %s4316_s6, %s3668_s11  ;;  %s45_s28 = int_to_ptr.vmem [resolvable:$true] %s44_s28 }
  0x14   :  { %p3672_p9 = scmp.lt.u32.totalorder %s3668_s11, %s4316_s6 }
  0x16   :  { %p3674_p10 = pnand %p3672_p9, %p3669_p8 }
  0x18   :  { %3677 = shalt.err (!%p3674_p10)
}
  0x19   :  { %s3678_s17 = scalar_lea.vmem %s45_s28, 1024  ;;  %p3683_p12 = scmp.lt.s32.totalorder %s45_s28, %s45_s28 }
  0x1a   :  { %p3679_p11 = scmp.ne.s32.totalorder %s45_s28, %s3678_s17  ;;  %p3684_p13 = scmp.lt.s32.totalorder %s3678_s17, %s3678_s17 }
  0x1c   :  { %p3685_p0 = por %p3684_p13, %p3683_p12 }
  0x1e   :  { %p3686_p1 = pnand %p3685_p0, %p3679_p11 }
  0x20   :  { %3689 = shalt.err (!%p3686_p1)
}
  0x21   :  { %50 = dma.hbm_to_vmem [thread:$0]  %s4316_s6, 1024, %s45_s28, [#allocation5], %s3695_s23, %s3695_s23, %s3696_s24  }
  0x22   :  { %3690 = dma.done.wait [#allocation3], 1024  }
  0x23   :  { %3691 = vsyncadd [#allocation3], 4294966272 }
  0x24   :  { %3692 = dma.done.wait [#allocation5], 1024  }
  0x25   :  { %3693 = vsyncadd [#allocation5], 4294966272  ;;  %v65_v0 = vld [vmem:[%s4312_s2] sm:$0xff]  ;;  %v66_v1 = vld [vmem:[%s4312_s2 + $0x8] sm:$0xff]  ;;  %vm80_vm0 = vcmask 523264   ;;  %v3698_v19 = vmov 0.0  }
  0x26   :  { %v67_v2 = vld [vmem:[%s4312_s2 + $0x10] sm:$0xff]  ;;  %v3508_v3 = vpack.c.bf16 %v66_v1, %v65_v0  ;;  %v68_v4 = vld [vmem:[%s4312_s2 + $0x18] sm:$0xff]  ;;  %v69_v6 = vld [vmem:[%s4312_s2 + $0x20] sm:$0xff]  ;;  %vm3699_vm1 = vmmov 0   ;;  %s3700_s21 = smov 56   ;;  %s3701_s22 = smov 64  }
  0x27   :  { %v3512_v5 = vpack.c.bf16 %v68_v4, %v67_v2  ;;  %v70_v7 = vld [vmem:[%s4312_s2 + $0x28] sm:$0xff]  ;;  %v63_v8 = vld [vmem:[%s4310_s0] sm:$0xff]  ;;  %v71_v10 = vld [vmem:[%s4312_s2 + $0x30] sm:$0xff]  ;;  %s3702_s25 = smov 120   ;;  %s3703_s26 = smov 48   ;;  %vm263_vm2 = vcmask 64512  }
  0x28   :  { %3509 = vmatprep.subr.bf16.mxu0 %v3508_v3  ;;  %3307 = vmatprep.mubr.msk.f32.mxu0 %vm80_vm0, %v63_v8  ;;  %v3516_v9 = vpack.c.bf16 %v70_v7, %v69_v6  ;;  %v72_v11 = vld [vmem:[%s4312_s2 + $0x38] sm:$0xff]  ;;  %v64_v13 = vld [vmem:[%s4310_s0 + $0x8] sm:$0xff]  ;;  %v164_v14 = vld [vmem:[#allocation2] sm:$0xff]  ;;  %s3705_s6 = smov 40   ;;  %s3706_s23 = smov 32   ;;  %vm1615_vm3 = vcmask 130048  }
  0x29   :  { %3511 = vmatpush3.bf16.msra.mxu0 %v3508_v3  ;;  %v3520_v12 = vpack.c.bf16 %v72_v11, %v71_v10  ;;  %v165_v15 = vld [vmem:[#allocation2 + $0x8] sm:$0xff]  ;;  %v166_v16 = vld [vmem:[#allocation2 + $0x10] sm:$0xff]  ;;  %v167_v18 = vld [vmem:[#allocation2 + $0x18] sm:$0xff]  ;;  %s3708_s29 = smov 80   ;;  %s3709_s30 = smov 72   ;;  %vm1617_vm4 = vcmask 195584  }
  0x2a   :  { %3513 = vmatprep.subr.bf16.mxu0 %v3512_v5  ;;  %v3524_v17 = vpack.c.bf16 %v165_v15, %v164_v14  ;;  %v3528_v20 = vpack.c.bf16 %v167_v18, %v166_v16  ;;  %v168_v21 = vld [vmem:[#allocation2 + $0x20] sm:$0xff]  ;;  %v169_v22 = vld [vmem:[#allocation2 + $0x28] sm:$0xff]  ;;  %v170_v25 = vld [vmem:[#allocation2 + $0x30] sm:$0xff]  ;;  %s3710_s11 = smov 24   ;;  %s3711_s12 = smov 16   ;;  %vm1619_vm5 = vcmask 261120  }
  0x2b   :  { %v162_v23 = vld [vmem:[%s4311_s1] sm:$0xff]  ;;  %v3532_v24 = vpack.c.bf16 %v169_v22, %v168_v21  ;;  %v171_v26 = vld [vmem:[#allocation2 + $0x38] sm:$0xff]  ;;  %v163_v28 = vld [vmem:[%s4311_s1 + $0x8] sm:$0xff]  ;;  %s3712_s13 = smov 96   ;;  %s3713_s15 = smov 88   ;;  %vm1621_vm6 = vcmask 326656  }
  0x2c   :  { %3525 = vmatprep.subr.bf16.mxu1 %v3524_v17  ;;  %3326 = vmatprep.mubr.msk.f32.mxu1 %vm80_vm0, %v162_v23  ;;  %v3536_v27 = vpack.c.bf16 %v171_v26, %v170_v25  ;;  %v3138_v29 = vld [vmem:[%s4313_s3] ss:$0 sm:$0xff]  ;;  %s3704_s3 = smov 112   ;;  %vm1623_vm7 = vcmask 392192   ;;  %vm1625_vm8 = vcmask 457728  }
  0x2d   :  { %3515 = vmatpush3.bf16.msra.mxu0 %v3512_v5  ;;  %3527 = vmatpush3.bf16.msra.mxu1 %v3524_v17  ;;  %v3141_v37 = vld [vmem:[%s4315_s5] ss:$0 sm:$0xff]  ;;  %s3707_s5 = smov 104  }
  0x2e   :  { %3517 = vmatprep.subr.bf16.mxu0 %v3516_v9  ;;  %3529 = vmatprep.subr.bf16.mxu1 %v3528_v20 }
  0x31   :  { %3519 = vmatpush3.bf16.msra.mxu0 %v3516_v9  ;;  %3531 = vmatpush3.bf16.msra.mxu1 %v3528_v20 }
  0x32   :  { %3521 = vmatprep.subr.bf16.mxu0 %v3520_v12  ;;  %3533 = vmatprep.subr.bf16.mxu1 %v3532_v24 }
  0x35   :  { %3523 = vmatpush3.bf16.msra.mxu0 %v3520_v12  ;;  %3535 = vmatpush3.bf16.msra.mxu1 %v3532_v24 }
  0x36   :  { %3349 = vmatprep.subr.mxu0 %v3698_v19  ;;  %3537 = vmatprep.subr.bf16.mxu1 %v3536_v27 }
  0x38   :  { %3308 = vmatmul.mubr.msk.f32.vlgmr.msra.gmra.mrb[0].mxu0 %vm80_vm0, %v64_v13 }
  0x39   :  { %3539 = vmatpush3.bf16.msra.mxu1 %v3536_v27  ;;  %3351 = vmatprep.mubr.msk.f32.mxu0 %vm3699_vm1, %v3698_v19 }
  0x3a   :  { %3329 = vmatprep.subr.mxu1 %v3698_v19 }
  0x3c   :  { %3327 = vmatmul.mubr.msk.f32.vlgmr.msra.gmra.mrb[0].mxu1 %vm80_vm0, %v163_v28 }
  0x3d   :  { %3331 = vmatprep.mubr.msk.f32.mxu1 %vm3699_vm1, %v3698_v19 }
 0x10b   :  { %v3309_v30 = vpop.f32.mrb[0].mxu0 }
 0x10c   :  { %v3844_v31 = vadd.f32 %v3309_v30, %v3138_v29  ;;  %v153_v32 = vpop.f32.mrb[1].mxu0 }
 0x10d   :  { %v3846_v33 = vadd.f32 %v3138_v29, %v153_v32 }
 0x10f   :  { %425 = vrot.lane.b32.xlu1 %v3846_v33, %s3700_s21  ;;  %261 = vrot.lane.b32.xlu0 %v3846_v33, %s3701_s22  ;;  %v3328_v39 = vpop.f32.mrb[0].mxu1 }
 0x110   :  { %v3876_v40 = vadd.f32 %v3328_v39, %v3141_v37  ;;  %v251_v41 = vpop.f32.mrb[1].mxu1 }
 0x111   :  { %v3879_v42 = vadd.f32 %v3141_v37, %v251_v41 }
 0x113   :  { %423 = vrot.lane.b32.xlu1 %v3846_v33, %s3702_s25 }
 0x117   :  { %592 = vrot.lane.b32.xlu1 %v3846_v33, %s3703_s26 }
 0x11b   :  { %590 = vrot.lane.b32.xlu1 %v3846_v33, %s3704_s3 }
 0x11f   :  { %758 = vrot.lane.b32.xlu1 %v3846_v33, %s3705_s6 }
 0x123   :  { %924 = vrot.lane.b32.xlu1 %v3846_v33, %s3706_s23 }
 0x181   :  { %v3862_v34 = vpop.permute.xlu1 %425  ;;  %v262_v35 = vpop.permute.xlu0 %261 }
 0x182   :  { %3330 = vmatpush3.xpose.msk.msra.mxu1 %vm263_vm2, %v262_v35 }
 0x183   :  { %3334 = vmatprep.subr.mxu1 %v3698_v19 }
 0x185   :  { %v3866_v36 = vpop.permute.xlu1 %423  ;;  %3332 = vmatmul.mubr.msk.f32.vlgmr.msra.gmra.mrb[2].mxu1 %vm263_vm2, %v3846_v33 }
 0x186   :  { %3336 = vmatprep.mubr.msk.f32.mxu1 %vm3699_vm1, %v3698_v19  ;;  %3335 = vmatpush3.msra.mxu1 %v3879_v42 }
 0x187   :  { %3339 = vmatprep.subr.mxu1 %v3698_v19 }
 0x189   :  { %v593_v38 = vpop.permute.xlu1 %592 }
 0x18a   :  { %3350 = vmatpush3.xpose.msk.msra.mxu0 %vm263_vm2, %v593_v38 }
 0x18b   :  { %3359 = vmatprep.subr.mxu0 %v3698_v19 }
 0x18d   :  { %v591_v43 = vpop.permute.xlu1 %590 }
 0x18e   :  { %3352 = vmatmul.mubr.msk.f32.vlgmr.msra.gmra.mrb[2].mxu0 %vm263_vm2, %v591_v43 }
 0x18f   :  { %3361 = vmatprep.mubr.msk.f32.mxu0 %vm3699_vm1, %v3698_v19 }
 0x191   :  { %v759_v44 = vpop.permute.xlu1 %758 }
 0x192   :  { %3360 = vmatpush3.xpose.msk.msra.mxu0 %vm263_vm2, %v759_v44 }
 0x193   :  { %3369 = vmatprep.subr.mxu0 %v3698_v19 }
 0x195   :  { %v925_v55 = vpop.permute.xlu1 %924 }
 0x258   :  { %v334_v45 = vpop.f32.mrb[2].mxu1 }
 0x259   :  { %v338_v46 = vmul.f32 0.35355338, %v334_v45  ;;  %v3333_v47 = vpop.f32.mrb[3].mxu1 }
 0x25b   :  { %v339_v48 = vsel %vm263_vm2, %v338_v46, -inf }
 0x25c   :  { %340 = vmax.xlane.f32.xlu0 %v339_v48 }
 0x261   :  { %v664_v49 = vpop.f32.mrb[2].mxu0 }
 0x262   :  { %v3353_v50 = vpop.f32.mrb[3].mxu0  ;;  %v3941_v58 = vmul.f32 0.35355338, %v664_v49 }
 0x264   :  { %v669_v59 = vsel %vm263_vm2, %v3941_v58, -inf }
 0x272   :  { %756 = vrot.lane.b32.xlu0 %v3846_v33, %s3707_s5 }
 0x276   :  { %1254 = vrot.lane.b32.xlu0 %v3846_v33, %s3708_s29 }
 0x27a   :  { %1420 = vrot.lane.b32.xlu0 %v3846_v33, %s3709_s30 }
 0x27e   :  { %1791 = vrot.lane.b32.xlu0 %v3844_v31, %s3700_s21 }
 0x282   :  { %1958 = vrot.lane.b32.xlu0 %v3844_v31, %s3703_s26 }
 0x286   :  { %2124 = vrot.lane.b32.xlu0 %v3844_v31, %s3705_s6 }
 0x28a   :  { %2290 = vrot.lane.b32.xlu0 %v3844_v31, %s3706_s23 }
 0x28e   :  { %2456 = vrot.lane.b32.xlu0 %v3844_v31, %s3710_s11 }
 0x292   :  { %2622 = vrot.lane.b32.xlu0 %v3844_v31, %s3711_s12 }
 0x296   :  { %2788 = vrot.lane.b32.xlu0 %v3844_v31, %s3696_s24 }
 0x2e9   :  { %v341_v51 = vpop.xlane.xlu0 %340 }
 0x2ea   :  { %v342_v52 = vsub.f32 %v338_v46, %v341_v51 }
 0x2ec   :  { %v343_v53 = vmul.f32 1.442695, %v342_v52 }
 0x2ed   :  { %v757_v54 = vpop.permute.xlu0 %756 }
 0x2ee   :  { %3576 = vpow2.f32 %v343_v53  ;;  %3362 = vmatmul.mubr.msk.f32.vlgmr.msra.gmra.mrb[4].mxu0 %vm263_vm2, %v757_v54 }
 0x2ef   :  { %3370 = vmatpush3.xpose.msk.msra.mxu0 %vm263_vm2, %v925_v55  ;;  %3371 = vmatprep.mubr.msk.f32.mxu0 %vm3699_vm1, %v3698_v19 }
 0x2f0   :  { %3379 = vmatprep.subr.mxu0 %v3698_v19 }
 0x2f1   :  { %v1255_v61 = vpop.permute.xlu0 %1254 }
 0x2f5   :  { %v1421_v0 = vpop.permute.xlu0 %1420 }
 0x2f8   :  { %v3577_v56 = vpop.eup %3576 }
 0x2f9   :  { %v345_v57 = vsel %vm263_vm2, %v3577_v56, 0.0  ;;  %v1792_v4 = vpop.permute.xlu0 %1791 }
 0x2fa   :  { %346 = vadd.xlane.f32.xlu1 %v345_v57 }
 0x2fd   :  { %v1959_v7 = vpop.permute.xlu0 %1958 }
 0x301   :  { %v2125_v9 = vpop.permute.xlu0 %2124 }
 0x305   :  { %v2291_v12 = vpop.permute.xlu0 %2290 }
 0x309   :  { %v2457_v14 = vpop.permute.xlu0 %2456 }
 0x30b   :  { %922 = vrot.lane.b32.xlu1 %v3846_v33, %s3712_s13 }
 0x30d   :  { %v2623_v17 = vpop.permute.xlu0 %2622 }
 0x30f   :  { %1090 = vrot.lane.b32.xlu1 %v3846_v33, %s3710_s11 }
 0x311   :  { %v2789_v20 = vpop.permute.xlu0 %2788 }
 0x313   :  { %1088 = vrot.lane.b32.xlu1 %v3846_v33, %s3713_s15 }
 0x317   :  { %1256 = vrot.lane.b32.xlu1 %v3846_v33, %s3711_s12 }
 0x31b   :  { %1422 = vrot.lane.b32.xlu1 %v3846_v33, %s3696_s24 }
 0x31f   :  { %1628 = vrot.lane.b32.xlu1 %v3844_v31, %s3701_s22 }
 0x323   :  { %1789 = vrot.lane.b32.xlu1 %v3844_v31, %s3702_s25 }
 0x327   :  { %1956 = vrot.lane.b32.xlu1 %v3844_v31, %s3704_s3 }
 0x32b   :  { %2122 = vrot.lane.b32.xlu1 %v3844_v31, %s3707_s5 }
 0x32f   :  { %2288 = vrot.lane.b32.xlu1 %v3844_v31, %s3712_s13 }
 0x333   :  { %2454 = vrot.lane.b32.xlu1 %v3844_v31, %s3713_s15 }
 0x337   :  { %2620 = vrot.lane.b32.xlu1 %v3844_v31, %s3708_s29 }
 0x33b   :  { %2786 = vrot.lane.b32.xlu1 %v3844_v31, %s3709_s30 }
 0x35f   :  { %670 = vmax.xlane.f32.xlu1 %v669_v59 }
 0x387   :  { %v347_v60 = vpop.xlane.xlu1 %346 }
 0x388   :  { %3578 = vrcp.f32 %v347_v60 }
 0x38b   :  { %v923_v62 = vpop.permute.xlu1 %922 }
 0x38c   :  { %3372 = vmatmul.mubr.msk.f32.vlgmr.msra.gmra.mrb[6].mxu0 %vm263_vm2, %v923_v62 }
 0x38d   :  { %3381 = vmatprep.mubr.msk.f32.mxu0 %vm3699_vm1, %v3698_v19 }
 0x38f   :  { %v1091_v63 = vpop.permute.xlu1 %1090 }
 0x390   :  { %3380 = vmatpush3.xpose.msk.msra.mxu0 %vm263_vm2, %v1091_v63 }
 0x391   :  { %3389 = vmatprep.subr.mxu0 %v3698_v19 }
 0x392   :  { %v3579_v1 = vpop.eup %3578 }
 0x393   :  { %v349_v2 = vmul.f32 %v3579_v1, %v3577_v56  ;;  %v1089_v3 = vpop.permute.xlu1 %1088 }
 0x394   :  { %3382 = vmatmul.mubr.msk.f32.vlgmr.msra.gmra.mrb[8].mxu0 %vm263_vm2, %v1089_v3 }
 0x395   :  { %3337 = vmatmul.mubr.msk.f32.vlgmr.msra.gmra.mrb[4].mxu1 %vm263_vm2, %v349_v2  ;;  %3391 = vmatprep.mubr.msk.f32.mxu0 %vm3699_vm1, %v3698_v19 }
 0x396   :  { %3340 = vmatpush3.xpose.msk.msra.mxu1 %vm263_vm2, %v3862_v34  ;;  %3341 = vmatprep.mubr.msk.f32.mxu1 %vm3699_vm1, %v3698_v19 }
 0x397   :  { %v1257_v5 = vpop.permute.xlu1 %1256  ;;  %3344 = vmatprep.subr.mxu1 %v3698_v19 }
 0x398   :  { %3390 = vmatpush3.xpose.msk.msra.mxu0 %vm263_vm2, %v1257_v5 }
 0x399   :  { %3342 = vmatmul.mubr.msk.f32.vlgmr.msra.gmra.mrb[6].mxu1 %vm263_vm2, %v3866_v36  ;;  %3399 = vmatprep.subr.mxu0 %v3698_v19 }
 0x39a   :  { %3346 = vmatprep.mubr.msk.f32.mxu1 %vm3699_vm1, %v3698_v19 }
 0x39b   :  { %v1423_v6 = vpop.permute.xlu1 %1422  ;;  %3392 = vmatmul.mubr.msk.f32.vlgmr.msra.gmra.mrb[10].mxu0 %vm263_vm2, %v1255_v61 }
 0x39c   :  { %3400 = vmatpush3.xpose.msk.msra.mxu0 %vm263_vm2, %v1423_v6  ;;  %3401 = vmatprep.mubr.msk.f32.mxu0 %vm3699_vm1, %v3698_v19 }
 0x39d   :  { %3409 = vmatprep.subr.mxu0 %v3698_v19 }
 0x39f   :  { %v1629_v8 = vpop.permute.xlu1 %1628  ;;  %3402 = vmatmul.mubr.msk.f32.vlgmr.msra.gmra.mrb[12].mxu0 %vm263_vm2, %v1421_v0 }
 0x3a0   :  { %3410 = vmatpush3.xpose.msk.msra.mxu0 %vm263_vm2, %v1629_v8  ;;  %3411 = vmatprep.mubr.msk.f32.mxu0 %vm3699_vm1, %v3698_v19 }
 0x3a1   :  { %3419 = vmatprep.subr.mxu0 %v3698_v19 }
 0x3a3   :  { %v1790_v10 = vpop.permute.xlu1 %1789  ;;  %3412 = vmatmul.mubr.msk.f32.vlgmr.msra.gmra.mrb[14].mxu0 %vm263_vm2, %v3844_v31 }
 0x3a4   :  { %3420 = vmatpush3.xpose.msk.msra.mxu0 %vm263_vm2, %v1792_v4  ;;  %3421 = vmatprep.mubr.msk.f32.mxu0 %vm3699_vm1, %v3698_v19 }
 0x3a5   :  { %3429 = vmatprep.subr.mxu0 %v3698_v19 }
 0x3a7   :  { %v1957_v11 = vpop.permute.xlu1 %1956  ;;  %3422 = vmatmul.mubr.msk.f32.vlgmr.msra.gmra.mrb[16].mxu0 %vm263_vm2, %v1790_v10 }
 0x3a8   :  { %3430 = vmatpush3.xpose.msk.msra.mxu0 %vm263_vm2, %v1959_v7  ;;  %3431 = vmatprep.mubr.msk.f32.mxu0 %vm3699_vm1, %v3698_v19 }
 0x3a9   :  { %3439 = vmatprep.subr.mxu0 %v3698_v19 }
 0x3ab   :  { %v2123_v13 = vpop.permute.xlu1 %2122  ;;  %3432 = vmatmul.mubr.msk.f32.vlgmr.msra.gmra.mrb[18].mxu0 %vm263_vm2, %v1957_v11 }
 0x3ac   :  { %3440 = vmatpush3.xpose.msk.msra.mxu0 %vm263_vm2, %v2125_v9  ;;  %3441 = vmatprep.mubr.msk.f32.mxu0 %vm3699_vm1, %v3698_v19 }
 0x3ad   :  { %3449 = vmatprep.subr.mxu0 %v3698_v19 }
 0x3af   :  { %v2289_v15 = vpop.permute.xlu1 %2288  ;;  %3442 = vmatmul.mubr.msk.f32.vlgmr.msra.gmra.mrb[20].mxu0 %vm263_vm2, %v2123_v13 }
 0x3b0   :  { %3450 = vmatpush3.xpose.msk.msra.mxu0 %vm263_vm2, %v2291_v12  ;;  %3451 = vmatprep.mubr.msk.f32.mxu0 %vm3699_vm1, %v3698_v19 }
 0x3b1   :  { %3459 = vmatprep.subr.mxu0 %v3698_v19 }
 0x3b3   :  { %v2455_v16 = vpop.permute.xlu1 %2454  ;;  %3452 = vmatmul.mubr.msk.f32.vlgmr.msra.gmra.mrb[22].mxu0 %vm263_vm2, %v2289_v15 }
 0x3b4   :  { %3460 = vmatpush3.xpose.msk.msra.mxu0 %vm263_vm2, %v2457_v14  ;;  %3461 = vmatprep.mubr.msk.f32.mxu0 %vm3699_vm1, %v3698_v19 }
 0x3b5   :  { %3469 = vmatprep.subr.mxu0 %v3698_v19 }
 0x3b7   :  { %3462 = vmatmul.mubr.msk.f32.vlgmr.msra.gmra.mrb[24].mxu0 %vm263_vm2, %v2455_v16  ;;  %v2621_v18 = vpop.permute.xlu1 %2620 }
 0x3b8   :  { %3470 = vmatpush3.xpose.msk.msra.mxu0 %vm263_vm2, %v2623_v17  ;;  %3471 = vmatprep.mubr.msk.f32.mxu0 %vm3699_vm1, %v3698_v19 }
 0x3b9   :  { %3479 = vmatprep.subr.mxu0 %v3698_v19 }
 0x3bb   :  { %3472 = vmatmul.mubr.msk.f32.vlgmr.msra.gmra.mrb[26].mxu0 %vm263_vm2, %v2621_v18  ;;  %v2787_v21 = vpop.permute.xlu1 %2786 }
 0x3bc   :  { %3480 = vmatpush3.xpose.msk.msra.mxu0 %vm263_vm2, %v2789_v20  ;;  %3481 = vmatprep.mubr.msk.f32.mxu0 %vm3699_vm1, %v3698_v19 }
 0x3bf   :  { %3482 = vmatmul.mubr.msk.f32.vlgmr.msra.gmra.mrb[28].mxu0 %vm263_vm2, %v2787_v21 }
 0x3c1   :  { %v830_v22 = vpop.f32.mrb[4].mxu0 }
 0x3c2   :  { %v4011_v23 = vmul.f32 0.35355338, %v830_v22  ;;  %v3363_v24 = vpop.f32.mrb[5].mxu0 }
 0x3c4   :  { %v835_v25 = vsel %vm263_vm2, %v4011_v23, -inf }
 0x3c5   :  { %836 = vmax.xlane.f32.xlu0 %v835_v25 }
 0x3ec   :  { %v671_v17 = vpop.xlane.xlu1 %670 }
 0x3ed   :  { %v672_v20 = vsub.f32 %v3941_v58, %v671_v17 }
 0x3ef   :  { %v673_v22 = vmul.f32 1.442695, %v672_v20 }
 0x3f1   :  { %3580 = vpow2.f32 %v673_v22 }
 0x3fb   :  { %v4075_v25 = vpop.eup %3580 }
 0x452   :  { %v837_v18 = vpop.xlane.xlu0 %836 }
 0x453   :  { %v838_v21 = vsub.f32 %v4011_v23, %v837_v18 }
 0x455   :  { %v839_v24 = vmul.f32 1.442695, %v838_v21 }
 0x457   :  { %3582 = vpow2.f32 %v839_v24 }
 0x45f   :  { %v996_v26 = vpop.f32.mrb[6].mxu0 }
 0x460   :  { %v4015_v27 = vmul.f32 0.35355338, %v996_v26  ;;  %v3373_v28 = vpop.f32.mrb[7].mxu0 }
 0x461   :  { %v4077_v26 = vpop.eup %3582  ;;  %v675_v28 = vsel %vm263_vm2, %v4075_v25, 0.0 }
 0x462   :  { %v1001_v29 = vsel %vm263_vm2, %v4015_v27, -inf }
 0x463   :  { %1002 = vmax.xlane.f32.xlu0 %v1001_v29  ;;  %v841_v29 = vsel %vm263_vm2, %v4077_v26, 0.0 }
 0x467   :  { %v1162_v30 = vpop.f32.mrb[8].mxu0 }
 0x468   :  { %v4019_v31 = vmul.f32 0.35355338, %v1162_v30  ;;  %v4021_v32 = vpop.f32.mrb[4].mxu1  ;;  %v3383_v33 = vpop.f32.mrb[9].mxu0 }
 0x469   :  { %v3338_v34 = vpop.f32.mrb[5].mxu1 }
 0x46a   :  { %v1167_v35 = vsel %vm263_vm2, %v4019_v31, -inf }
 0x46b   :  { %1168 = vmax.xlane.f32.xlu1 %v1167_v35 }
 0x46c   :  { %v4025_v36 = vpop.f32.mrb[6].mxu1 }
 0x46d   :  { %v3343_v37 = vpop.f32.mrb[7].mxu1 }
 0x46e   :  { %v1328_v38 = vpop.f32.mrb[10].mxu0 }
 0x46f   :  { %v4027_v39 = vmul.f32 0.35355338, %v1328_v38  ;;  %v3393_v41 = vpop.f32.mrb[11].mxu0 }
 0x471   :  { %v1333_v43 = vsel %vm263_vm2, %v4027_v39, -inf }
 0x472   :  { %1334 = vmax.xlane.f32.xlu0 %v1333_v43  ;;  %v1494_v44 = vpop.f32.mrb[12].mxu0 }
 0x473   :  { %v4031_v45 = vmul.f32 0.35355338, %v1494_v44  ;;  %v3403_v46 = vpop.f32.mrb[13].mxu0 }
 0x475   :  { %v1499_v47 = vsel %vm263_vm2, %v4031_v45, -inf }
 0x476   :  { %1500 = vmax.xlane.f32.xlu1 %v1499_v47  ;;  %v1700_v48 = vpop.f32.mrb[14].mxu0 }
 0x477   :  { %v4035_v49 = vmul.f32 0.35355338, %v1700_v48  ;;  %v3413_v50 = vpop.f32.mrb[15].mxu0 }
 0x479   :  { %v1705_v51 = vsel %vm263_vm2, %v4035_v49, -inf }
 0x47a   :  { %1706 = vmax.xlane.f32.xlu0 %v1705_v51  ;;  %v1863_v52 = vpop.f32.mrb[16].mxu0 }
 0x47b   :  { %v4039_v53 = vmul.f32 0.35355338, %v1863_v52  ;;  %v3423_v54 = vpop.f32.mrb[17].mxu0 }
 0x47d   :  { %v1868_v55 = vsel %vm263_vm2, %v4039_v53, -inf }
 0x47e   :  { %1869 = vmax.xlane.f32.xlu1 %v1868_v55  ;;  %v2030_v56 = vpop.f32.mrb[18].mxu0 }
 0x47f   :  { %v4043_v57 = vmul.f32 0.35355338, %v2030_v56  ;;  %v3433_v59 = vpop.f32.mrb[19].mxu0 }
 0x481   :  { %v2035_v60 = vsel %vm263_vm2, %v4043_v57, -inf }
 0x482   :  { %2036 = vmax.xlane.f32.xlu0 %v2035_v60  ;;  %v2196_v61 = vpop.f32.mrb[20].mxu0 }
 0x483   :  { %v4047_v62 = vmul.f32 0.35355338, %v2196_v61  ;;  %v3443_v63 = vpop.f32.mrb[21].mxu0 }
 0x485   :  { %v2201_v0 = vsel %vm263_vm2, %v4047_v62, -inf }
 0x486   :  { %2202 = vmax.xlane.f32.xlu1 %v2201_v0  ;;  %v2362_v1 = vpop.f32.mrb[22].mxu0 }
 0x487   :  { %v4051_v2 = vmul.f32 0.35355338, %v2362_v1  ;;  %v3453_v3 = vpop.f32.mrb[23].mxu0 }
 0x489   :  { %v2367_v4 = vsel %vm263_vm2, %v4051_v2, -inf }
 0x48a   :  { %2368 = vmax.xlane.f32.xlu0 %v2367_v4  ;;  %v2528_v5 = vpop.f32.mrb[24].mxu0  ;;  %v501_v4 = vmul.f32 0.35355338, %v4025_v36 }
 0x48b   :  { %v4055_v6 = vmul.f32 0.35355338, %v2528_v5  ;;  %v3463_v7 = vpop.f32.mrb[25].mxu0 }
 0x48d   :  { %v2533_v8 = vsel %vm263_vm2, %v4055_v6, -inf }
 0x48e   :  { %2534 = vmax.xlane.f32.xlu1 %v2533_v8  ;;  %v2694_v9 = vpop.f32.mrb[26].mxu0  ;;  %v502_v8 = vsel %vm263_vm2, %v501_v4, -inf }
 0x48f   :  { %v4059_v10 = vmul.f32 0.35355338, %v2694_v9  ;;  %v3473_v11 = vpop.f32.mrb[27].mxu0 }
 0x491   :  { %v2699_v12 = vsel %vm263_vm2, %v4059_v10, -inf }
 0x492   :  { %2700 = vmax.xlane.f32.xlu0 %v2699_v12  ;;  %v2860_v13 = vpop.f32.mrb[28].mxu0 }
 0x493   :  { %v4063_v14 = vmul.f32 0.35355338, %v2860_v13  ;;  %v3483_v15 = vpop.f32.mrb[29].mxu0 }
 0x495   :  { %v2865_v16 = vsel %vm263_vm2, %v4063_v14, -inf }
 0x496   :  { %2866 = vmax.xlane.f32.xlu1 %v2865_v16 }
 0x4a7   :  { %514 = vrot.lane.b32.xlu1 %v3879_v42, %s3702_s25 }
 0x4a8   :  { %680 = vrot.lane.b32.xlu0 %v3879_v42, %s3704_s3 }
 0x4ac   :  { %846 = vrot.lane.b32.xlu0 %v3879_v42, %s3707_s5 }
 0x4cb   :  { %676 = vadd.xlane.f32.xlu1 %v675_v28  ;;  %842 = vadd.xlane.f32.xlu0 %v841_v29 }
 0x4f0   :  { %v1003_v30 = vpop.xlane.xlu0 %1002 }
 0x4f1   :  { %v1004_v58 = vsub.f32 %v4015_v27, %v1003_v30 }
 0x4f3   :  { %v1005_v23 = vmul.f32 1.442695, %v1004_v58 }
 0x4f5   :  { %3584 = vpow2.f32 %v1005_v23 }
 0x4f8   :  { %v1169_v33 = vpop.xlane.xlu1 %1168 }
 0x4f9   :  { %v1170_v34 = vsub.f32 %v4019_v31, %v1169_v33 }
 0x4fb   :  { %v1171_v35 = vmul.f32 1.442695, %v1170_v34 }
 0x4fd   :  { %3586 = vpow2.f32 %v1171_v35 }
 0x4ff   :  { %v4085_v37 = vpop.eup %3584  ;;  %v1335_v38 = vpop.xlane.xlu0 %1334 }
 0x500   :  { %v1336_v41 = vsub.f32 %v4027_v39, %v1335_v38  ;;  %v1007_v43 = vsel %vm263_vm2, %v4085_v37, 0.0 }
 0x501   :  { %1008 = vadd.xlane.f32.xlu1 %v1007_v43 }
 0x502   :  { %v1337_v44 = vmul.f32 1.442695, %v1336_v41 }
 0x503   :  { %v1501_v46 = vpop.xlane.xlu1 %1500 }
 0x504   :  { %3588 = vpow2.f32 %v1337_v44  ;;  %v1502_v27 = vsub.f32 %v4031_v45, %v1501_v46 }
 0x506   :  { %v1503_v47 = vmul.f32 1.442695, %v1502_v27 }
 0x507   :  { %v4091_v48 = vpop.eup %3586  ;;  %v1707_v31 = vpop.xlane.xlu0 %1706 }
 0x508   :  { %3590 = vpow2.f32 %v1503_v47  ;;  %v1708_v50 = vsub.f32 %v4035_v49, %v1707_v31  ;;  %v1173_v51 = vsel %vm263_vm2, %v4091_v48, 0.0 }
 0x509   :  { %1174 = vadd.xlane.f32.xlu0 %v1173_v51 }
 0x50a   :  { %v1709_v39 = vmul.f32 1.442695, %v1708_v50 }
 0x50b   :  { %v1870_v52 = vpop.xlane.xlu1 %1869 }
 0x50c   :  { %3592 = vpow2.f32 %v1709_v39  ;;  %v1871_v54 = vsub.f32 %v4039_v53, %v1870_v52 }
 0x50e   :  { %v4097_v55 = vpop.eup %3588  ;;  %v1872_v56 = vmul.f32 1.442695, %v1871_v54 }
 0x50f   :  { %v2037_v45 = vpop.xlane.xlu0 %2036  ;;  %v1339_v59 = vsel %vm263_vm2, %v4097_v55, 0.0 }
 0x510   :  { %3594 = vpow2.f32 %v1872_v56  ;;  %v2038_v60 = vsub.f32 %v4043_v57, %v2037_v45  ;;  %1340 = vadd.xlane.f32.xlu1 %v1339_v59 }
 0x512   :  { %v4102_v49 = vpop.eup %3590  ;;  %v2039_v61 = vmul.f32 1.442695, %v2038_v60 }
 0x513   :  { %v2203_v63 = vpop.xlane.xlu1 %2202  ;;  %v1505_v0 = vsel %vm263_vm2, %v4102_v49, 0.0 }
 0x514   :  { %3596 = vpow2.f32 %v2039_v61  ;;  %v2204_v53 = vsub.f32 %v4047_v62, %v2203_v63  ;;  %1506 = vadd.xlane.f32.xlu0 %v1505_v0 }
 0x516   :  { %v4107_v1 = vpop.eup %3592  ;;  %v2205_v3 = vmul.f32 1.442695, %v2204_v53 }
 0x517   :  { %v1711_v57 = vsel %vm263_vm2, %v4107_v1, 0.0  ;;  %v2369_v16 = vpop.xlane.xlu0 %2368 }
 0x518   :  { %3598 = vpow2.f32 %v2205_v3  ;;  %1712 = vadd.xlane.f32.xlu0 %v1711_v57  ;;  %v2370_v17 = vsub.f32 %v4051_v2, %v2369_v16 }
 0x51a   :  { %v4112_v5 = vpop.eup %3594  ;;  %v2371_v18 = vmul.f32 1.442695, %v2370_v17 }
 0x51b   :  { %v1874_v7 = vsel %vm263_vm2, %v4112_v5, 0.0  ;;  %v2535_v9 = vpop.xlane.xlu1 %2534 }
 0x51c   :  { %1875 = vadd.xlane.f32.xlu1 %v1874_v7  ;;  %503 = vmax.xlane.f32.xlu0 %v502_v8  ;;  %3600 = vpow2.f32 %v2371_v18  ;;  %v2536_v46 = vsub.f32 %v4055_v6, %v2535_v9 }
 0x51e   :  { %v4117_v62 = vpop.eup %3596  ;;  %v2537_v27 = vmul.f32 1.442695, %v2536_v46 }
 0x51f   :  { %v2041_v36 = vsel %vm263_vm2, %v4117_v62, 0.0  ;;  %v2701_v22 = vpop.xlane.xlu0 %2700 }
 0x520   :  { %2042 = vadd.xlane.f32.xlu0 %v2041_v36  ;;  %v2702_v24 = vsub.f32 %v4059_v10, %v2701_v22 }
 0x522   :  { %v4121_v11 = vpop.eup %3598  ;;  %v2703_v28 = vmul.f32 1.442695, %v2702_v24 }
 0x523   :  { %v2867_v12 = vpop.xlane.xlu1 %2866  ;;  %v2207_v13 = vsel %vm263_vm2, %v4121_v11, 0.0  ;;  %v681_v30 = vpop.permute.xlu0 %680 }
 0x524   :  { %2208 = vadd.xlane.f32.xlu0 %v2207_v13  ;;  %3602 = vpow2.f32 %v2703_v28  ;;  %v2868_v47 = vsub.f32 %v4063_v14, %v2867_v12 }
 0x526   :  { %v4131_v20 = vpop.eup %3600  ;;  %v2869_v31 = vmul.f32 1.442695, %v2868_v47 }
 0x527   :  { %v515_v15 = vpop.permute.xlu1 %514  ;;  %v2373_v21 = vsel %vm263_vm2, %v4131_v20, 0.0  ;;  %v847_v58 = vpop.permute.xlu0 %846 }
 0x528   :  { %3345 = vmatpush3.msra.mxu1 %v515_v15 }
 0x529   :  { %3354 = vmatprep.subr.mxu1 %v3698_v19 }
 0x52d   :  { %1012 = vrot.lane.b32.xlu1 %v3879_v42, %s3712_s13 }
 0x52e   :  { %v4138_v29 = vpop.eup %3602 }
 0x52f   :  { %v2705_v2 = vsel %vm263_vm2, %v4138_v29, 0.0 }
 0x53a   :  { %1178 = vrot.lane.b32.xlu0 %v3879_v42, %s3713_s15 }
 0x551   :  { %2374 = vadd.xlane.f32.xlu1 %v2373_v21 }
 0x558   :  { %v843_v23 = vpop.xlane.xlu0 %842  ;;  %v677_v54 = vpop.xlane.xlu1 %676 }
 0x562   :  { %1510 = vrot.lane.b32.xlu1 %v3879_v42, %s3709_s30 }
 0x586   :  { %2706 = vadd.xlane.f32.xlu1 %v2705_v2 }
 0x58e   :  { %v1009_v45 = vpop.xlane.xlu1 %1008 }
 0x596   :  { %v1175_v33 = vpop.xlane.xlu0 %1174 }
 0x597   :  { %2544 = vrot.lane.b32.xlu1 %v3876_v40, %s3713_s15 }
 0x59d   :  { %v1341_v60 = vpop.xlane.xlu1 %1340 }
 0x5a1   :  { %v1507_v34 = vpop.xlane.xlu0 %1506 }
 0x5a5   :  { %v4144_v35 = vpop.xlane.xlu0 %1712 }
 0x5a9   :  { %v504_v38 = vpop.xlane.xlu0 %503  ;;  %v1876_v53 = vpop.xlane.xlu1 %1875 }
 0x5aa   :  { %v505_v10 = vsub.f32 %v501_v4, %v504_v38 }
 0x5ac   :  { %v506_v41 = vmul.f32 1.442695, %v505_v10 }
 0x5ad   :  { %v1013_v7 = vpop.permute.xlu1 %1012 }
 0x5ae   :  { %3604 = vpow2.f32 %v506_v41 }
 0x5af   :  { %3606 = vpow2.f32 %v2537_v27 }
 0x5b0   :  { %3608 = vpow2.f32 %v2869_v31 }
 0x5b8   :  { %v3605_v43 = vpop.eup %3604 }
 0x5b9   :  { %v508_v44 = vsel %vm263_vm2, %v3605_v43, 0.0  ;;  %v4151_v50 = vpop.eup %3606 }
 0x5ba   :  { %509 = vadd.xlane.f32.xlu0 %v508_v44  ;;  %v2539_v51 = vsel %vm263_vm2, %v4151_v50, 0.0  ;;  %v4155_v39 = vpop.eup %3608 }
 0x5bb   :  { %v2871_v52 = vsel %vm263_vm2, %v4155_v39, 0.0 }
 0x5d0   :  { %1344 = vrot.lane.b32.xlu0 %v3879_v42, %s3708_s29  ;;  %v4171_v42 = vpop.xlane.xlu0 %2042 }
 0x5d4   :  { %v4173_v6 = vpop.xlane.xlu0 %2208 }
 0x5d8   :  { %v1179_v14 = vpop.permute.xlu0 %1178 }
 0x5de   :  { %v2375_v9 = vpop.xlane.xlu1 %2374 }
 0x5e2   :  { %v1511_v15 = vpop.permute.xlu1 %1510 }
 0x5ef   :  { %2540 = vadd.xlane.f32.xlu0 %v2539_v51 }
 0x5f3   :  { %2872 = vadd.xlane.f32.xlu0 %v2871_v52 }
 0x609   :  { %1880 = vrot.lane.b32.xlu0 %v3876_v40, %s3702_s25 }
 0x60d   :  { %2046 = vrot.lane.b32.xlu0 %v3876_v40, %s3704_s3 }
 0x611   :  { %2212 = vrot.lane.b32.xlu0 %v3876_v40, %s3707_s5 }
 0x613   :  { %v2707_v24 = vpop.xlane.xlu1 %2706 }
 0x615   :  { %2378 = vrot.lane.b32.xlu0 %v3876_v40, %s3712_s13 }
 0x619   :  { %2710 = vrot.lane.b32.xlu0 %v3876_v40, %s3708_s29 }
 0x61d   :  { %2876 = vrot.lane.b32.xlu0 %v3876_v40, %s3709_s30 }
 0x647   :  { %v510_v56 = vpop.xlane.xlu0 %509 }
 0x648   :  { %3610 = vrcp.f32 %v510_v56 }
 0x649   :  { %3612 = vrcp.f32 %v677_v54 }
 0x64a   :  { %3614 = vrcp.f32 %v843_v23 }
 0x64b   :  { %3616 = vrcp.f32 %v1009_v45  ;;  %v1345_v12 = vpop.permute.xlu0 %1344  ;;  %v2987_v45 = vld [vmem:[#allocation4] sm:$0xff] }
 0x64c   :  { %3618 = vrcp.f32 %v1175_v33 }
 0x64d   :  { %3620 = vrcp.f32 %v1341_v60 }
 0x64e   :  { %3622 = vrcp.f32 %v1507_v34  ;;  %v2545_v34 = vpop.permute.xlu1 %2544 }
 0x64f   :  { %3624 = vrcp.f32 %v4144_v35 }
 0x650   :  { %3626 = vrcp.f32 %v1876_v53 }
 0x651   :  { %3628 = vrcp.f32 %v4171_v42 }
 0x652   :  { %v3611_v59 = vpop.eup %3610  ;;  %3630 = vrcp.f32 %v4173_v6 }
 0x653   :  { %v512_v61 = vmul.f32 %v3611_v59, %v3605_v43  ;;  %v3613_v63 = vpop.eup %3612  ;;  %3632 = vrcp.f32 %v2375_v9  ;;  %v2988_v59 = vld [vmem:[#allocation4 + $0x8] sm:$0xff]  ;;  %v2994_v9 = vld [vmem:[#allocation4 + $0x38] sm:$0xff] }
 0x654   :  { %v679_v0 = vmul.f32 %v3613_v63, %v4075_v25  ;;  %v3615_v3 = vpop.eup %3614  ;;  %v3540_v60 = vpack.c.bf16 %v2988_v59, %v2987_v45  ;;  %v2990_v63 = vld [vmem:[#allocation4 + $0x18] sm:$0xff] }
 0x655   :  { %3347 = vmatmul.mubr.msk.f32.vlgmr.msra.gmra.mrb[8].mxu1 %vm263_vm2, %v512_v61  ;;  %v845_v4 = vmul.f32 %v3615_v3, %v4077_v26  ;;  %v3617_v57 = vpop.eup %3616  ;;  %v2989_v61 = vld [vmem:[#allocation4 + $0x10] sm:$0xff] }
 0x656   :  { %3355 = vmatpush3.msra.mxu1 %v681_v30  ;;  %3356 = vmatprep.mubr.msk.f32.mxu1 %vm3699_vm1, %v3698_v19  ;;  %v1011_v25 = vmul.f32 %v3617_v57, %v4085_v37  ;;  %v3619_v8 = vpop.eup %3618  ;;  %v3544_v53 = vpack.c.bf16 %v2990_v63, %v2989_v61  ;;  %v2992_v57 = vld [vmem:[#allocation4 + $0x28] sm:$0xff] }
 0x657   :  { %3364 = vmatprep.subr.mxu1 %v3698_v19  ;;  %v1177_v26 = vmul.f32 %v3619_v8, %v4091_v48  ;;  %v3621_v36 = vpop.eup %3620  ;;  %3541 = vmatprep.subr.bf16.mxu0 %v3540_v60 }
 0x658   :  { %v1343_v37 = vmul.f32 %v3621_v36, %v4097_v55  ;;  %v3623_v13 = vpop.eup %3622  ;;  %3543 = vmatpush3.bf16.msra.mxu0 %v3540_v60 }
 0x659   :  { %3357 = vmatmul.mubr.msk.f32.vlgmr.msra.gmra.mrb[10].mxu1 %vm263_vm2, %v679_v0  ;;  %v1509_v48 = vmul.f32 %v3623_v13, %v4102_v49  ;;  %v3625_v16 = vpop.eup %3624  ;;  %3545 = vmatprep.subr.bf16.mxu0 %v3544_v53 }
 0x65a   :  { %3365 = vmatpush3.msra.mxu1 %v847_v58  ;;  %3366 = vmatprep.mubr.msk.f32.mxu1 %vm3699_vm1, %v3698_v19  ;;  %v1715_v55 = vmul.f32 %v3625_v16, %v4107_v1 }
 0x65b   :  { %3374 = vmatprep.subr.mxu1 %v3698_v19 }
 0x65c   :  { %3547 = vmatpush3.bf16.msra.mxu0 %v3544_v53 }
 0x65d   :  { %3367 = vmatmul.mubr.msk.f32.vlgmr.msra.gmra.mrb[12].mxu1 %vm263_vm2, %v845_v4  ;;  %v2991_v4 = vld [vmem:[#allocation4 + $0x20] sm:$0xff] }
 0x65e   :  { %3375 = vmatpush3.msra.mxu1 %v1013_v7  ;;  %3376 = vmatprep.mubr.msk.f32.mxu1 %vm3699_vm1, %v3698_v19 }
 0x65f   :  { %3384 = vmatprep.subr.mxu1 %v3698_v19 }
 0x661   :  { %3377 = vmatmul.mubr.msk.f32.vlgmr.msra.gmra.mrb[14].mxu1 %vm263_vm2, %v1011_v25  ;;  %v3548_v25 = vpack.c.bf16 %v2992_v57, %v2991_v4 }
 0x662   :  { %3385 = vmatpush3.msra.mxu1 %v1179_v14  ;;  %3386 = vmatprep.mubr.msk.f32.mxu1 %vm3699_vm1, %v3698_v19 }
 0x663   :  { %3394 = vmatprep.subr.mxu1 %v3698_v19  ;;  %3549 = vmatprep.subr.bf16.mxu0 %v3548_v25 }
 0x664   :  { %3551 = vmatpush3.bf16.msra.mxu0 %v3548_v25 }
 0x665   :  { %3387 = vmatmul.mubr.msk.f32.vlgmr.msra.gmra.mrb[16].mxu1 %vm263_vm2, %v1177_v26  ;;  %v2993_v26 = vld [vmem:[#allocation4 + $0x30] sm:$0xff] }
 0x666   :  { %3395 = vmatpush3.msra.mxu1 %v1345_v12  ;;  %3396 = vmatprep.mubr.msk.f32.mxu1 %vm3699_vm1, %v3698_v19  ;;  %v3552_v12 = vpack.c.bf16 %v2994_v9, %v2993_v26 }
 0x667   :  { %3404 = vmatprep.subr.mxu1 %v3698_v19 }
 0x668   :  { %3553 = vmatprep.subr.bf16.mxu0 %v3552_v12 }
 0x669   :  { %3397 = vmatmul.mubr.msk.f32.vlgmr.msra.gmra.mrb[18].mxu1 %vm263_vm2, %v1343_v37  ;;  %3555 = vmatpush3.bf16.msra.mxu0 %v3552_v12 }
 0x66a   :  { %3405 = vmatpush3.msra.mxu1 %v1511_v15  ;;  %3406 = vmatprep.mubr.msk.f32.mxu1 %vm3699_vm1, %v3698_v19 }
 0x66b   :  { %3414 = vmatprep.subr.mxu1 %v3698_v19 }
 0x66d   :  { %3407 = vmatmul.mubr.msk.f32.vlgmr.msra.gmra.mrb[20].mxu1 %vm263_vm2, %v1509_v48 }
 0x66e   :  { %3415 = vmatpush3.msra.mxu1 %v3876_v40  ;;  %3416 = vmatprep.mubr.msk.f32.mxu1 %vm3699_vm1, %v3698_v19  ;;  %v3627_v40 = vpop.eup %3626 }
 0x66f   :  { %3424 = vmatprep.subr.mxu1 %v3698_v19  ;;  %v1878_v18 = vmul.f32 %v3627_v40, %v4112_v5  ;;  %v3629_v1 = vpop.eup %3628 }
 0x670   :  { %v2045_v22 = vmul.f32 %v3629_v1, %v4117_v62  ;;  %v3631_v2 = vpop.eup %3630 }
 0x671   :  { %3417 = vmatmul.mubr.msk.f32.vlgmr.msra.gmra.mrb[22].mxu1 %vm263_vm2, %v1715_v55  ;;  %v2211_v5 = vmul.f32 %v3631_v2, %v4121_v11  ;;  %v3633_v58 = vpop.eup %3632 }
 0x672   :  { %3426 = vmatprep.mubr.msk.f32.mxu1 %vm3699_vm1, %v3698_v19  ;;  %v2377_v62 = vmul.f32 %v3633_v58, %v4131_v20 }
 0x67c   :  { %v2541_v49 = vpop.xlane.xlu0 %2540 }
 0x67d   :  { %3634 = vrcp.f32 %v2541_v49 }
 0x67e   :  { %3636 = vrcp.f32 %v2707_v24 }
 0x680   :  { %v2873_v17 = vpop.xlane.xlu0 %2872 }
 0x681   :  { %3638 = vrcp.f32 %v2873_v17 }
 0x684   :  { %v1881_v21 = vpop.permute.xlu0 %1880 }
 0x685   :  { %3425 = vmatpush3.msra.mxu1 %v1881_v21 }
 0x686   :  { %3427 = vmatmul.mubr.msk.f32.vlgmr.msra.gmra.mrb[24].mxu1 %vm263_vm2, %v1878_v18  ;;  %3434 = vmatprep.subr.mxu1 %v3698_v19 }
 0x687   :  { %3436 = vmatprep.mubr.msk.f32.mxu1 %vm3699_vm1, %v3698_v19  ;;  %v3635_v33 = vpop.eup %3634 }
 0x688   :  { %v2047_v28 = vpop.permute.xlu0 %2046  ;;  %v2543_v11 = vmul.f32 %v3635_v33, %v4151_v50  ;;  %v3637_v38 = vpop.eup %3636 }
 0x689   :  { %3435 = vmatpush3.msra.mxu1 %v2047_v28  ;;  %v2709_v20 = vmul.f32 %v3637_v38, %v4138_v29 }
 0x68a   :  { %3437 = vmatmul.mubr.msk.f32.vlgmr.msra.gmra.mrb[26].mxu1 %vm263_vm2, %v2045_v22  ;;  %3444 = vmatprep.subr.mxu1 %v3698_v19 }
 0x68b   :  { %3446 = vmatprep.mubr.msk.f32.mxu1 %vm3699_vm1, %v3698_v19  ;;  %v3639_v41 = vpop.eup %3638 }
 0x68c   :  { %v2213_v30 = vpop.permute.xlu0 %2212  ;;  %v2875_v43 = vmul.f32 %v3639_v41, %v4155_v39 }
 0x68d   :  { %3445 = vmatpush3.msra.mxu1 %v2213_v30 }
 0x68e   :  { %3447 = vmatmul.mubr.msk.f32.vlgmr.msra.gmra.mrb[28].mxu1 %vm263_vm2, %v2211_v5  ;;  %3454 = vmatprep.subr.mxu1 %v3698_v19 }
 0x68f   :  { %3456 = vmatprep.mubr.msk.f32.mxu1 %vm3699_vm1, %v3698_v19 }
 0x690   :  { %v2379_v23 = vpop.permute.xlu0 %2378 }
 0x691   :  { %3455 = vmatpush3.msra.mxu1 %v2379_v23 }
 0x692   :  { %3457 = vmatmul.mubr.msk.f32.vlgmr.msra.gmra.mrb[30].mxu1 %vm263_vm2, %v2377_v62  ;;  %3464 = vmatprep.subr.mxu1 %v3698_v19 }
 0x693   :  { %3465 = vmatpush3.msra.mxu1 %v2545_v34  ;;  %3466 = vmatprep.mubr.msk.f32.mxu1 %vm3699_vm1, %v3698_v19 }
 0x694   :  { %v2711_v35 = vpop.permute.xlu0 %2710  ;;  %3474 = vmatprep.subr.mxu1 %v3698_v19 }
 0x696   :  { %3467 = vmatmul.mubr.msk.f32.vlgmr.msra.gmra.mrb[32].mxu1 %vm263_vm2, %v2543_v11 }
 0x697   :  { %3475 = vmatpush3.msra.mxu1 %v2711_v35  ;;  %3476 = vmatprep.mubr.msk.f32.mxu1 %vm3699_vm1, %v3698_v19 }
 0x698   :  { %v2877_v10 = vpop.permute.xlu0 %2876  ;;  %3484 = vmatprep.subr.mxu1 %v3698_v19 }
 0x69a   :  { %3477 = vmatmul.mubr.msk.f32.vlgmr.msra.gmra.mrb[34].mxu1 %vm263_vm2, %v2709_v20 }
 0x69b   :  { %3485 = vmatpush3.msra.mxu1 %v2877_v10  ;;  %3486 = vmatprep.mubr.msk.f32.mxu1 %vm3699_vm1, %v3698_v19 }
 0x69e   :  { %3487 = vmatmul.mubr.msk.f32.vlgmr.msra.gmra.mrb[36].mxu1 %vm263_vm2, %v2875_v43 }
 0x728   :  { %v586_v44 = vpop.f32.mrb[8].mxu1 }
 0x729   :  { %1587 = vrot.lane.b32.xlu0 %v586_v44, %s3696_s24  ;;  %v3348_v46 = vpop.f32.mrb[9].mxu1 }
 0x72c   :  { %v752_v27 = vpop.f32.mrb[10].mxu1 }
 0x72d   :  { %1591 = vrot.lane.b32.xlu0 %v752_v27, %s3711_s12  ;;  %v3358_v29 = vpop.f32.mrb[11].mxu1 }
 0x730   :  { %v918_v47 = vpop.f32.mrb[12].mxu1 }
 0x731   :  { %1595 = vrot.lane.b32.xlu0 %v918_v47, %s3710_s11  ;;  %v3368_v31 = vpop.f32.mrb[13].mxu1 }
 0x734   :  { %v1084_v50 = vpop.f32.mrb[14].mxu1 }
 0x735   :  { %1599 = vrot.lane.b32.xlu0 %v1084_v50, %s3706_s23  ;;  %v3378_v19 = vpop.f32.mrb[15].mxu1  ;;  %v3192_v50 = vld [vmem:[%s4317_s7] ss:$0 sm:$0xff] }
 0x738   :  { %v1250_v51 = vpop.f32.mrb[16].mxu1 }
 0x739   :  { %1603 = vrot.lane.b32.xlu0 %v1250_v51, %s3705_s6  ;;  %v3388_v39 = vpop.f32.mrb[17].mxu1 }
 0x73c   :  { %v1416_v52 = vpop.f32.mrb[18].mxu1 }
 0x73d   :  { %1607 = vrot.lane.b32.xlu0 %v1416_v52, %s3703_s26  ;;  %v3398_v42 = vpop.f32.mrb[19].mxu1 }
 0x73e   :  { %v3644_v42 = vld [vmem:[%s4311_s1 + $0x8] sm:$0xff] }
 0x740   :  { %v1582_v6 = vpop.f32.mrb[20].mxu1 }
 0x741   :  { %1611 = vrot.lane.b32.xlu0 %v1582_v6, %s3700_s21  ;;  %v3408_v14 = vpop.f32.mrb[21].mxu1 }
 0x742   :  { %v3645_v14 = vld [vmem:[%s4311_s1] sm:$0xff] }
 0x744   :  { %v4256_v54 = vpop.f32.mrb[22].mxu1 }
 0x745   :  { %v3418_v56 = vpop.f32.mrb[23].mxu1 }
 0x759   :  { %v1952_v0 = vpop.f32.mrb[24].mxu1 }
 0x75a   :  { %2953 = vrot.lane.b32.xlu1 %v1952_v0, %s3696_s24  ;;  %v3428_v3 = vpop.f32.mrb[25].mxu1 }
 0x75d   :  { %v2118_v7 = vpop.f32.mrb[26].mxu1 }
 0x75e   :  { %2957 = vrot.lane.b32.xlu1 %v2118_v7, %s3711_s12  ;;  %v3438_v8 = vpop.f32.mrb[27].mxu1 }
 0x761   :  { %v2284_v36 = vpop.f32.mrb[28].mxu1 }
 0x762   :  { %2961 = vrot.lane.b32.xlu1 %v2284_v36, %s3710_s11  ;;  %v3448_v37 = vpop.f32.mrb[29].mxu1 }
 0x765   :  { %v2450_v13 = vpop.f32.mrb[30].mxu1 }
 0x766   :  { %2965 = vrot.lane.b32.xlu1 %v2450_v13, %s3706_s23  ;;  %v3458_v15 = vpop.f32.mrb[31].mxu1  ;;  %v3195_v13 = vld [vmem:[%s4318_s8] ss:$0 sm:$0xff] }
 0x769   :  { %v2616_v48 = vpop.f32.mrb[32].mxu1 }
 0x76a   :  { %2969 = vrot.lane.b32.xlu1 %v2616_v48, %s3705_s6  ;;  %v3468_v16 = vpop.f32.mrb[33].mxu1 }
 0x76b   :  { %v3196_v16 = vld [vmem:[%s4319_s9] ss:$0 sm:$0xff] }
 0x76d   :  { %v2782_v55 = vpop.f32.mrb[34].mxu1 }
 0x76e   :  { %2973 = vrot.lane.b32.xlu1 %v2782_v55, %s3703_s26  ;;  %v3478_v49 = vpop.f32.mrb[35].mxu1 }
 0x771   :  { %v2948_v17 = vpop.f32.mrb[36].mxu1 }
 0x772   :  { %2977 = vrot.lane.b32.xlu0 %v2948_v17, %s3700_s21  ;;  %v3488_v40 = vpop.f32.mrb[37].mxu1 }
 0x79b   :  { %v1588_v18 = vpop.permute.xlu0 %1587 }
 0x79c   :  { %v1614_v28 = vsel %vm263_vm2, %v4021_v32, %v1588_v18 }
 0x79f   :  { %v1592_v21 = vpop.permute.xlu0 %1591 }
 0x7a0   :  { %v1616_v2 = vsel %vm1615_vm3, %v1614_v28, %v1592_v21 }
 0x7a3   :  { %v1596_v1 = vpop.permute.xlu0 %1595 }
 0x7a4   :  { %v1618_v30 = vsel %vm1617_vm4, %v1616_v2, %v1596_v1 }
 0x7a7   :  { %v1600_v22 = vpop.permute.xlu0 %1599 }
 0x7a8   :  { %v1620_v58 = vsel %vm1619_vm5, %v1618_v30, %v1600_v22 }
 0x7ab   :  { %v1604_v24 = vpop.permute.xlu0 %1603 }
 0x7ac   :  { %v1622_v62 = vsel %vm1621_vm6, %v1620_v58, %v1604_v24 }
 0x7af   :  { %v1608_v5 = vpop.permute.xlu0 %1607 }
 0x7b0   :  { %v1624_v23 = vsel %vm1623_vm7, %v1622_v62, %v1608_v5 }
 0x7b3   :  { %v1612_v33 = vpop.permute.xlu0 %1611 }
 0x7b4   :  { %v1626_v34 = vsel %vm1625_vm8, %v1624_v23, %v1612_v33 }
 0x7b5   :  { %3505 = vmatprep.mubr.msk.f32.mxu0 %vm80_vm0, %v1626_v34 }
 0x7cc   :  { %v2954_v32 = vpop.permute.xlu1 %2953 }
 0x7cd   :  { %v2980_v10 = vsel %vm263_vm2, %v4256_v54, %v2954_v32 }
 0x7d0   :  { %v2958_v11 = vpop.permute.xlu1 %2957 }
 0x7d1   :  { %v2981_v41 = vsel %vm1615_vm3, %v2980_v10, %v2958_v11 }
 0x7d4   :  { %v2962_v35 = vpop.permute.xlu1 %2961 }
 0x7d5   :  { %v2982_v43 = vsel %vm1617_vm4, %v2981_v41, %v2962_v35 }
 0x7d8   :  { %v2966_v38 = vpop.permute.xlu1 %2965 }
 0x7d9   :  { %v2983_v46 = vsel %vm1619_vm5, %v2982_v43, %v2966_v38 }
 0x7dc   :  { %v2970_v20 = vpop.permute.xlu1 %2969 }
 0x7dd   :  { %v2984_v27 = vsel %vm1621_vm6, %v2983_v46, %v2970_v20 }
 0x7e0   :  { %v2974_v44 = vpop.permute.xlu1 %2973 }
 0x7e1   :  { %v2985_v29 = vsel %vm1623_vm7, %v2984_v27, %v2974_v44 }
 0x7e4   :  { %v2978_v47 = vpop.permute.xlu0 %2977 }
 0x7e5   :  { %v2986_v31 = vsel %vm1625_vm8, %v2985_v29, %v2978_v47 }
 0x7e6   :  { %3506 = vmatmul.mubr.msk.f32.vlgmr.msra.gmra.mrb[30].mxu0 %vm80_vm0, %v2986_v31 }
 0x8b9   :  { %v3507_v19 = vpop.f32.mrb[30].mxu0 }
 0x8ba   :  { %v3080_v51 = vadd.f32 %v3507_v19, %v3192_v50  ;;  %v3074_v39 = vpop.f32.mrb[31].mxu0 }
 0x8bb   :  { %v3075_v52 = vadd.f32 %v3192_v50, %v3074_v39 }
 0x8bc   :  { %v3084_v6 = vadd.f32 %v3644_v42, %v3080_v51 }
 0x8bd   :  { %v3083_v54 = vadd.f32 %v3645_v14, %v3075_v52 }
 0x8be   :  { %v3090_v56 = vsel %vm80_vm0, %v3084_v6, 0.0 }
 0x8bf   :  { %3091 = vadd.xlane.f32.xlu0 %v3090_v56  ;;  %v3087_v45 = vsel %vm80_vm0, %v3083_v54, 0.0 }
 0x8c0   :  { %3088 = vadd.xlane.f32.xlu1 %v3087_v45 }
 0x94c   :  { %v3092_v59 = vpop.xlane.xlu0 %3091 }
 0x94d   :  { %v3095_v60 = vmul.f32 0.015625, %v3092_v59  ;;  %v3089_v61 = vpop.xlane.xlu1 %3088 }
 0x94e   :  { %v3094_v63 = vmul.f32 0.015625, %v3089_v61 }
 0x94f   :  { %v3097_v0 = vsub.f32 %v3084_v6, %v3095_v60 }
 0x950   :  { %v3096_v53 = vsub.f32 %v3083_v54, %v3094_v63 }
 0x951   :  { %v3099_v3 = vmul.f32 %v3097_v0, %v3097_v0 }
 0x952   :  { %v3098_v4 = vmul.f32 %v3096_v53, %v3096_v53 }
 0x953   :  { %v3103_v57 = vsel %vm80_vm0, %v3099_v3, 0.0 }
 0x954   :  { %3104 = vadd.xlane.f32.xlu1 %v3103_v57  ;;  %v3100_v7 = vsel %vm80_vm0, %v3098_v4, 0.0 }
 0x955   :  { %3101 = vadd.xlane.f32.xlu0 %v3100_v7 }
 0x9e1   :  { %v3105_v25 = vpop.xlane.xlu1 %3104 }
 0x9e2   :  { %v3107_v8 = vmul.f32 0.015625, %v3105_v25  ;;  %v3102_v26 = vpop.xlane.xlu0 %3101 }
 0x9e3   :  { %v3106_v9 = vmul.f32 0.015625, %v3102_v26 }
 0x9e4   :  { %v3109_v36 = vadd.f32 1e-05, %v3107_v8 }
 0x9e5   :  { %v3108_v12 = vadd.f32 1e-05, %v3106_v9 }
 0x9e6   :  { %3640 = vrsqrt.f32 %v3109_v36 }
 0x9e7   :  { %3642 = vrsqrt.f32 %v3108_v12 }
 0x9f0   :  { %v3641_v37 = vpop.eup %3640 }
 0x9f1   :  { %v3643_v15 = vpop.eup %3642  ;;  %v3113_v48 = vmul.f32 %v3641_v37, %v3097_v0 }
 0x9f2   :  { %v3112_v55 = vmul.f32 %v3643_v15, %v3096_v53 }
 0x9f3   :  { %v3121_v49 = vmul.f32 %v3195_v13, %v3113_v48 }
 0x9f4   :  { %v3120_v17 = vmul.f32 %v3195_v13, %v3112_v55 }
 0x9f5   :  { %v3129_v40 = vadd.f32 %v3196_v16, %v3121_v49 }
 0x9f6   :  { %v3128_v18 = vadd.f32 %v3196_v16, %v3120_v17 }
 0x9f7   :  { %3131 = vst.msk [vmem:[%s4320_s10 + $0x8] sm:$0xff] %vm80_vm0, %v3129_v40 }
 0x9f8   :  { %3130 = vst.msk [vmem:[%s4320_s10] sm:$0xff] %vm80_vm0, %v3128_v18 }
 0x9f9   :  { %3136 = vsyncpa [#allocation3], 1 }
 0x9fa   :  { %3137 = vsyncpa [#allocation5], 1 }

// kernel: run.6
= control target key start
LH: loop header
LB: loop body
LE: loop exit
PB: predicated region body
PF: predicated region fallthrough
CT: control target
= control target key end

     0   :  { %vm40_vm0 = vcmask 523264   ;;  %s325_s2 = inlined_call_operand.vmem [shape: f32[64,64], index: 2, kind: input, shape index: {}]   ;;  %s326_s0 = inlined_call_operand.vmem [shape: f32[16,64], index: 0, kind: input, shape index: {}]   ;;  %s327_s3 = inlined_call_operand.vmem [shape: f32[1,64], index: 3, kind: input, shape index: {}]   ;;  %s328_s1 = inlined_call_operand.vmem [shape: f32[16,64], index: 1, kind: input, shape index: {}]   ;;  %s329_s4 = inlined_call_operand.vmem [shape: f32[1,64], index: 4, kind: input, shape index: {}]   ;;  %s330_s5 = inlined_call_operand.vmem [shape: f32[1,64], index: 5, kind: input, shape index: {}]   ;;  %s331_s6 = inlined_call_operand.vmem [shape: f32[16,64], index: 6, kind: output, shape index: {}]  }
   0x1   :  { %v25_v0 = vld [vmem:[%s325_s2] sm:$0xff]  ;;  %v26_v1 = vld [vmem:[%s325_s2 + $0x8] sm:$0xff]  ;;  %v27_v2 = vld [vmem:[%s325_s2 + $0x10] sm:$0xff] }
   0x2   :  { %v211_v3 = vpack.c.bf16 %v26_v1, %v25_v0  ;;  %v28_v4 = vld [vmem:[%s325_s2 + $0x18] sm:$0xff]  ;;  %v29_v6 = vld [vmem:[%s325_s2 + $0x20] sm:$0xff]  ;;  %v30_v7 = vld [vmem:[%s325_s2 + $0x28] sm:$0xff] }
   0x3   :  { %v215_v5 = vpack.c.bf16 %v28_v4, %v27_v2  ;;  %v23_v8 = vld [vmem:[%s326_s0] sm:$0xff]  ;;  %v219_v9 = vpack.c.bf16 %v30_v7, %v29_v6  ;;  %v31_v10 = vld [vmem:[%s325_s2 + $0x30] sm:$0xff]  ;;  %v32_v11 = vld [vmem:[%s325_s2 + $0x38] sm:$0xff] }
   0x4   :  { %212 = vmatprep.subr.bf16.mxu0 %v211_v3  ;;  %208 = vmatprep.mubr.msk.f32.mxu0 %vm40_vm0, %v23_v8  ;;  %v223_v12 = vpack.c.bf16 %v32_v11, %v31_v10  ;;  %v24_v13 = vld [vmem:[%s326_s0 + $0x8] sm:$0xff]  ;;  %v177_v14 = vld [vmem:[%s327_s3] ss:$0 sm:$0xff] }
   0x5   :  { %214 = vmatpush3.bf16.msra.mxu0 %v211_v3  ;;  %v122_v17 = vld [vmem:[%s328_s1] sm:$0xff]  ;;  %v123_v20 = vld [vmem:[%s328_s1 + $0x8] sm:$0xff] }
   0x6   :  { %216 = vmatprep.subr.bf16.mxu0 %v215_v5  ;;  %v180_v42 = vld [vmem:[%s329_s4] ss:$0 sm:$0xff] }
   0x7   :  { %v181_v44 = vld [vmem:[%s330_s5] ss:$0 sm:$0xff] }
   0x9   :  { %218 = vmatpush3.bf16.msra.mxu0 %v215_v5 }
   0xa   :  { %220 = vmatprep.subr.bf16.mxu0 %v219_v9 }
   0xd   :  { %222 = vmatpush3.bf16.msra.mxu0 %v219_v9 }
   0xe   :  { %224 = vmatprep.subr.bf16.mxu0 %v223_v12 }
  0x11   :  { %226 = vmatpush3.bf16.msra.mxu0 %v223_v12 }
  0x14   :  { %209 = vmatmul.mubr.msk.f32.vlgmr.msra.gmra.mrb[0].mxu0 %vm40_vm0, %v24_v13 }
  0xe7   :  { %v210_v15 = vpop.f32.mrb[0].mxu0 }
  0xe8   :  { %v113_v16 = vpop.f32.mrb[1].mxu0  ;;  %v119_v18 = vadd.f32 %v210_v15, %v177_v14 }
  0xe9   :  { %v114_v19 = vadd.f32 %v177_v14, %v113_v16 }
  0xea   :  { %v125_v23 = vadd.f32 %v123_v20, %v119_v18 }
  0xeb   :  { %v124_v21 = vadd.f32 %v122_v17, %v114_v19 }
  0xec   :  { %v131_v24 = vsel %vm40_vm0, %v125_v23, 0.0 }
  0xed   :  { %v128_v22 = vsel %vm40_vm0, %v124_v21, 0.0 }
  0xee   :  { %129 = vadd.xlane.f32.xlu0 %v128_v22 }
  0xf2   :  { %132 = vadd.xlane.f32.xlu0 %v131_v24 }
 0x17b   :  { %v130_v25 = vpop.xlane.xlu0 %129 }
 0x17c   :  { %v135_v26 = vmul.f32 0.015625, %v130_v25 }
 0x17e   :  { %v137_v27 = vsub.f32 %v124_v21, %v135_v26 }
 0x17f   :  { %v133_v28 = vpop.xlane.xlu0 %132 }
 0x180   :  { %v136_v29 = vmul.f32 0.015625, %v133_v28  ;;  %v139_v30 = vmul.f32 %v137_v27, %v137_v27 }
 0x182   :  { %v138_v31 = vsub.f32 %v125_v23, %v136_v29  ;;  %v141_v32 = vsel %vm40_vm0, %v139_v30, 0.0 }
 0x183   :  { %142 = vadd.xlane.f32.xlu1 %v141_v32 }
 0x184   :  { %v140_v33 = vmul.f32 %v138_v31, %v138_v31 }
 0x186   :  { %v144_v34 = vsel %vm40_vm0, %v140_v33, 0.0 }
 0x187   :  { %145 = vadd.xlane.f32.xlu1 %v144_v34 }
 0x210   :  { %v143_v35 = vpop.xlane.xlu1 %142 }
 0x211   :  { %v147_v36 = vmul.f32 0.015625, %v143_v35 }
 0x213   :  { %v149_v37 = vadd.f32 1e-05, %v147_v36 }
 0x214   :  { %v146_v38 = vpop.xlane.xlu1 %145 }
 0x215   :  { %227 = vrsqrt.f32 %v149_v37  ;;  %v148_v39 = vmul.f32 0.015625, %v146_v38 }
 0x217   :  { %v150_v40 = vadd.f32 1e-05, %v148_v39 }
 0x219   :  { %229 = vrsqrt.f32 %v150_v40 }
 0x21f   :  { %v228_v41 = vpop.eup %227 }
 0x220   :  { %v153_v43 = vmul.f32 %v228_v41, %v137_v27 }
 0x222   :  { %v161_v45 = vmul.f32 %v180_v42, %v153_v43 }
 0x223   :  { %v230_v46 = vpop.eup %229 }
 0x224   :  { %v169_v47 = vadd.f32 %v181_v44, %v161_v45  ;;  %v154_v48 = vmul.f32 %v230_v46, %v138_v31 }
 0x226   :  { %171 = vst.msk [vmem:[%s331_s6] sm:$0xff] %vm40_vm0, %v169_v47  ;;  %v162_v49 = vmul.f32 %v180_v42, %v154_v48 }
 0x228   :  { %v170_v50 = vadd.f32 %v181_v44, %v162_v49 }
 0x22a   :  { %172 = vst.msk [vmem:[%s331_s6 + $0x8] sm:$0xff] %vm40_vm0, %v170_v50 }

// kernel: run.7
= control target key start
LH: loop header
LB: loop body
LE: loop exit
PB: predicated region body
PF: predicated region fallthrough
CT: control target
= control target key end

     0   :  { %vm44_vm0 = vcmask 523264   ;;  %s641_s0 = inlined_call_operand.vmem [shape: f32[16,64], index: 0, kind: input, shape index: {}]   ;;  %s642_s1 = inlined_call_operand.vmem [shape: f32[64,128], index: 1, kind: input, shape index: {}]   ;;  %s643_s2 = inlined_call_operand.vmem [shape: f32[1,128], index: 2, kind: input, shape index: {}]   ;;  %s644_s3 = inlined_call_operand.vmem [shape: f32[128,64], index: 3, kind: input, shape index: {}]   ;;  %s645_s4 = inlined_call_operand.vmem [shape: f32[1,64], index: 4, kind: input, shape index: {}]   ;;  %s646_s5 = inlined_call_operand.vmem [shape: f32[1,64], index: 5, kind: input, shape index: {}]   ;;  %s647_s6 = inlined_call_operand.vmem [shape: f32[1,64], index: 6, kind: input, shape index: {}]   ;;  %s648_s7 = inlined_call_operand.hbm [shape: f32[16,64], index: 7, kind: output, shape index: {}]  }
   0x1   :  { %v29_v0 = vld [vmem:[%s642_s1] sm:$0xff]  ;;  %v30_v1 = vld [vmem:[%s642_s1 + $0x8] sm:$0xff]  ;;  %v31_v2 = vld [vmem:[%s642_s1 + $0x10] sm:$0xff] }
   0x2   :  { %v393_v3 = vpack.c.bf16 %v30_v1, %v29_v0  ;;  %v32_v4 = vld [vmem:[%s642_s1 + $0x18] sm:$0xff]  ;;  %v33_v6 = vld [vmem:[%s642_s1 + $0x20] sm:$0xff]  ;;  %v34_v7 = vld [vmem:[%s642_s1 + $0x28] sm:$0xff] }
   0x3   :  { %v397_v5 = vpack.c.bf16 %v32_v4, %v31_v2  ;;  %v544_v8 = vld [vmem:[%s641_s0] sm:$0xff] }
   0x4   :  { %394 = vmatprep.subr.bf16.mxu0 %v393_v3  ;;  %355 = vmatprep.mubr.msk.f32.mxu0 %vm44_vm0, %v544_v8 }
   0x5   :  { %12 = vsyncpa [#allocation3], 0  ;;  %396 = vmatpush3.bf16.msra.mxu0 %v393_v3  ;;  %v401_v9 = vpack.c.bf16 %v34_v7, %v33_v6  ;;  %v35_v10 = vld [vmem:[%s642_s1 + $0x30] sm:$0xff]  ;;  %v36_v11 = vld [vmem:[%s642_s1 + $0x38] sm:$0xff]  ;;  %s480_s8 = smov [#allocation2]  }
   0x6   :  { %398 = vmatprep.subr.bf16.mxu0 %v397_v5  ;;  %v405_v12 = vpack.c.bf16 %v36_v11, %v35_v10  ;;  %v557_v13 = vld [vmem:[%s641_s0 + $0x8] sm:$0xff]  ;;  %v140_v14 = vld [vmem:[%s644_s3] sm:$0xff]  ;;  %v142_v17 = vld [vmem:[%s644_s3 + $0x10] sm:$0xff]  ;;  %s292_s9 = sshll.u32 %s480_s8, 4  ;;  %s293_s9 = int_to_ptr.vmem [resolvable:$true] %s292_s9 }
   0x7   :  { %v141_v15 = vld [vmem:[%s644_s3 + $0x8] sm:$0xff]  ;;  %v143_v18 = vld [vmem:[%s644_s3 + $0x18] sm:$0xff]  ;;  %v144_v20 = vld [vmem:[%s644_s3 + $0x20] sm:$0xff]  ;;  %s456_s10 = scalar_lea.vmem %s293_s9, 256  ;;  %p461_p1 = scmp.lt.s32.totalorder %s293_s9, %s293_s9 }
   0x8   :  { %v409_v16 = vpack.c.bf16 %v141_v15, %v140_v14  ;;  %v413_v19 = vpack.c.bf16 %v143_v18, %v142_v17  ;;  %v145_v21 = vld [vmem:[%s644_s3 + $0x28] sm:$0xff]  ;;  %v146_v23 = vld [vmem:[%s644_s3 + $0x30] sm:$0xff]  ;;  %v147_v24 = vld [vmem:[%s644_s3 + $0x38] sm:$0xff]  ;;  %p457_p0 = scmp.ne.s32.totalorder %s293_s9, %s456_s10  ;;  %p462_p2 = scmp.lt.s32.totalorder %s456_s10, %s456_s10 }
   0x9   :  { %400 = vmatpush3.bf16.msra.mxu0 %v397_v5  ;;  %v417_v22 = vpack.c.bf16 %v145_v21, %v144_v20  ;;  %v421_v25 = vpack.c.bf16 %v147_v24, %v146_v23  ;;  %v148_v26 = vld [vmem:[%s644_s3 + $0x40] sm:$0xff]  ;;  %v149_v27 = vld [vmem:[%s644_s3 + $0x48] sm:$0xff]  ;;  %v150_v29 = vld [vmem:[%s644_s3 + $0x50] sm:$0xff] }
   0xa   :  { %402 = vmatprep.subr.bf16.mxu0 %v401_v9  ;;  %410 = vmatprep.subr.bf16.mxu1 %v409_v16  ;;  %v425_v28 = vpack.c.bf16 %v149_v27, %v148_v26  ;;  %v151_v30 = vld [vmem:[%s644_s3 + $0x58] sm:$0xff]  ;;  %v152_v32 = vld [vmem:[%s644_s3 + $0x60] sm:$0xff]  ;;  %v153_v33 = vld [vmem:[%s644_s3 + $0x68] sm:$0xff]  ;;  %p463_p3 = por %p462_p2, %p461_p1 }
   0xb   :  { %412 = vmatpush3.bf16.msra.mxu1 %v409_v16  ;;  %v429_v31 = vpack.c.bf16 %v151_v30, %v150_v29  ;;  %v433_v34 = vpack.c.bf16 %v153_v33, %v152_v32  ;;  %v154_v35 = vld [vmem:[%s644_s3 + $0x70] sm:$0xff]  ;;  %v155_v36 = vld [vmem:[%s644_s3 + $0x78] sm:$0xff]  ;;  %v303_v38 = vld [vmem:[%s643_s2] ss:$0 sm:$0xff] }
   0xc   :  { %414 = vmatprep.subr.bf16.mxu1 %v413_v19  ;;  %v437_v37 = vpack.c.bf16 %v155_v36, %v154_v35  ;;  %v308_v53 = vld [vmem:[%s645_s4] ss:$0 sm:$0xff]  ;;  %p464_p4 = pnand %p463_p3, %p457_p0 }
   0xd   :  { %404 = vmatpush3.bf16.msra.mxu0 %v401_v9  ;;  %v309_v15 = vld [vmem:[%s646_s5] ss:$0 sm:$0xff] }
   0xe   :  { %406 = vmatprep.subr.bf16.mxu0 %v405_v12  ;;  %v310_v17 = vld [vmem:[%s647_s6] ss:$0 sm:$0xff] }
   0xf   :  { %416 = vmatpush3.bf16.msra.mxu1 %v413_v19 }
  0x10   :  { %418 = vmatprep.subr.bf16.mxu1 %v417_v22 }
  0x11   :  { %408 = vmatpush3.bf16.msra.mxu0 %v405_v12 }
  0x13   :  { %420 = vmatpush3.bf16.msra.mxu1 %v417_v22 }
  0x14   :  { %356 = vmatmul.mubr.msk.f32.vlgmr.msra.gmra.mrb[0].mxu0 %vm44_vm0, %v557_v13  ;;  %422 = vmatprep.subr.bf16.mxu1 %v421_v25 }
  0x17   :  { %424 = vmatpush3.bf16.msra.mxu1 %v421_v25 }
  0x18   :  { %426 = vmatprep.subr.bf16.mxu1 %v425_v28 }
  0x1b   :  { %428 = vmatpush3.bf16.msra.mxu1 %v425_v28 }
  0x1c   :  { %430 = vmatprep.subr.bf16.mxu1 %v429_v31 }
  0x1f   :  { %432 = vmatpush3.bf16.msra.mxu1 %v429_v31 }
  0x20   :  { %434 = vmatprep.subr.bf16.mxu1 %v433_v34 }
  0x23   :  { %436 = vmatpush3.bf16.msra.mxu1 %v433_v34 }
  0x24   :  { %438 = vmatprep.subr.bf16.mxu1 %v437_v37 }
  0x27   :  { %440 = vmatpush3.bf16.msra.mxu1 %v437_v37 }
  0xe7   :  { %v357_v39 = vpop.f32.mrb[0].mxu0 }
  0xe8   :  { %v123_v40 = vadd.f32 %v357_v39, %v303_v38  ;;  %v117_v41 = vpop.f32.mrb[1].mxu0 }
  0xe9   :  { %v118_v42 = vadd.f32 %v303_v38, %v117_v41 }
  0xea   :  { %v307_v43 = vmul.f32 -1.442695, %v123_v40 }
  0xeb   :  { %v306_v44 = vmul.f32 -1.442695, %v118_v42 }
  0xec   :  { %444 = vpow2.f32 %v307_v43 }
  0xed   :  { %446 = vpow2.f32 %v306_v44 }
  0xf6   :  { %v445_v45 = vpop.eup %444 }
  0xf7   :  { %v447_v46 = vpop.eup %446  ;;  %v133_v47 = vadd.f32 1.0, %v445_v45 }
  0xf8   :  { %v132_v48 = vadd.f32 1.0, %v447_v46 }
  0xf9   :  { %448 = vrcp.f32 %v133_v47 }
  0xfa   :  { %450 = vrcp.f32 %v132_v48 }
 0x103   :  { %v449_v49 = vpop.eup %448 }
 0x104   :  { %v451_v50 = vpop.eup %450  ;;  %v139_v52 = vmul.f32 %v449_v49, %v123_v40 }
 0x105   :  { %v138_v51 = vmul.f32 %v451_v50, %v118_v42 }
 0x107   :  { %390 = vmatprep.mubr.f32.mxu1 %v138_v51 }
 0x108   :  { %391 = vmatmul.mubr.f32.vlgmr.msra.gmra.mrb[0].mxu1 %v139_v52 }
 0x1db   :  { %v392_v54 = vpop.f32.mrb[0].mxu1 }
 0x1dc   :  { %v229_v55 = vpop.f32.mrb[1].mxu1  ;;  %v235_v56 = vadd.f32 %v392_v54, %v308_v53 }
 0x1dd   :  { %v230_v57 = vadd.f32 %v308_v53, %v229_v55 }
 0x1de   :  { %v239_v60 = vadd.f32 %v235_v56, %v557_v13 }
 0x1df   :  { %v238_v58 = vadd.f32 %v230_v57, %v544_v8 }
 0x1e0   :  { %v245_v61 = vsel %vm44_vm0, %v239_v60, 0.0 }
 0x1e1   :  { %v242_v59 = vsel %vm44_vm0, %v238_v58, 0.0 }
 0x1e2   :  { %243 = vadd.xlane.f32.xlu0 %v242_v59 }
 0x1e6   :  { %246 = vadd.xlane.f32.xlu0 %v245_v61 }
 0x26f   :  { %v244_v62 = vpop.xlane.xlu0 %243 }
 0x270   :  { %v249_v63 = vmul.f32 0.015625, %v244_v62 }
 0x272   :  { %v251_v0 = vsub.f32 %v238_v58, %v249_v63 }
 0x273   :  { %v247_v1 = vpop.xlane.xlu0 %246 }
 0x274   :  { %v250_v2 = vmul.f32 0.015625, %v247_v1  ;;  %v253_v3 = vmul.f32 %v251_v0, %v251_v0 }
 0x276   :  { %v252_v4 = vsub.f32 %v239_v60, %v250_v2  ;;  %v255_v5 = vsel %vm44_vm0, %v253_v3, 0.0 }
 0x277   :  { %256 = vadd.xlane.f32.xlu1 %v255_v5 }
 0x278   :  { %v254_v6 = vmul.f32 %v252_v4, %v252_v4 }
 0x27a   :  { %v258_v7 = vsel %vm44_vm0, %v254_v6, 0.0 }
 0x27b   :  { %259 = vadd.xlane.f32.xlu1 %v258_v7 }
 0x304   :  { %v257_v8 = vpop.xlane.xlu1 %256 }
 0x305   :  { %v261_v9 = vmul.f32 0.015625, %v257_v8 }
 0x307   :  { %v263_v10 = vadd.f32 1e-05, %v261_v9 }
 0x308   :  { %v260_v11 = vpop.xlane.xlu1 %259 }
 0x309   :  { %452 = vrsqrt.f32 %v263_v10  ;;  %v262_v12 = vmul.f32 0.015625, %v260_v11 }
 0x30b   :  { %v264_v13 = vadd.f32 1e-05, %v262_v12 }
 0x30d   :  { %454 = vrsqrt.f32 %v264_v13 }
 0x313   :  { %v453_v14 = vpop.eup %452 }
 0x314   :  { %v267_v16 = vmul.f32 %v453_v14, %v251_v0 }
 0x316   :  { %v275_v18 = vmul.f32 %v309_v15, %v267_v16 }
 0x317   :  { %v455_v19 = vpop.eup %454 }
 0x318   :  { %v268_v20 = vmul.f32 %v455_v19, %v252_v4  ;;  %v283_v21 = vadd.f32 %v310_v17, %v275_v18 }
 0x31a   :  { %v276_v22 = vmul.f32 %v309_v15, %v268_v20  ;;  %285 = vst.msk [vmem:[#allocation2] sm:$0xff] %vm44_vm0, %v283_v21 }
 0x31c   :  { %v284_v23 = vadd.f32 %v310_v17, %v276_v22 }
 0x31e   :  { %286 = vst.msk [vmem:[#allocation2 + $0x8] sm:$0xff] %vm44_vm0, %v284_v23 }
 0x31f   :  { %467 = shalt.err (!%p464_p4)
}
 0x320   :  { %s468_s11 = scalar_lea.hbm %s648_s7, 256 }
 0x321   :  { %p469_p5 = scmp.ne.s32.totalorder %s648_s7, %s468_s11  ;;  %p472_p6 = scmp.lt.u32.totalorder %s468_s11, %s648_s7 }
 0x323   :  { %p474_p7 = pnand %p472_p6, %p469_p5 }
 0x325   :  { %477 = shalt.err (!%p474_p7)
}
 0x326   :  { %s481_s16 = smov 128   ;;  %s482_s17 = smov 8  }
 0x327   :  { %298 = dma.vmem_to_hbm [thread:$0]  %s293_s9, 256, %s648_s7, [#allocation3], %s481_s16, %s481_s16, %s482_s17  }
 0x328   :  { %478 = dma.done.wait [#allocation3], 256  }
 0x329   :  { %479 = vsyncadd [#allocation3], 4294967040 }
 0x32a   :  { %302 = vsyncpa [#allocation3], 1 }

</bundles_post_ra>
